<compile_context>
chip_gen: v7x
topology: tpu7x:2x2x1
jax: 0.10.0
libtpu: 0.0.40
codegen_flags: <defaults>
</compile_context>

<pallas_src>
import functools

import jax
import jax.numpy as jnp
from jax.experimental import pallas as pl
from jax.experimental.pallas import tpu as pltpu


# ---------------------------------------------------------------------------
# Fused per-batch kernel: conv1+PReLU -> attention -> LayerNorm -> conv2+PReLU
# ---------------------------------------------------------------------------
def _self_path_kernel(xpad_ref, w1_ref, b1_ref, a_ref, wqkv_ref, wout_ref,
                      bout_ref, gamma_ref, beta_ref, w2_ref, b2_ref,
                      o_ref, pad2_ref, *, H, W, C, heads, dim_head, scale, eps):
    N = H * W
    inner = heads * dim_head
    alpha = a_ref[0, 0]

    def prelu(y):
        return jnp.maximum(y, 0.0) + alpha * jnp.minimum(y, 0.0)

    def conv3x3(load, w_ref, b_ref):
        # im2col entirely in VMEM: 9 shifted (N, C) slices -> (N, 9C) patches,
        # then a single (N, 9C) @ (9C, Cout) MXU matmul (K=9C instead of 9 K=C matmuls).
        cols = [load(di, dj).reshape(N, C) for di in range(3) for dj in range(3)]
        patches = jnp.concatenate(cols, axis=-1)
        return jnp.dot(patches, w_ref[...],
                       preferred_element_type=jnp.float32) + b_ref[...]

    # ---- conv1 + PReLU -> tokens (N, C), row-major (h*W + w) order, which matches
    #      x.flatten(2).transpose(1, 2) in the PyTorch module.
    t = prelu(conv3x3(lambda di, dj: xpad_ref[0, di:di + H, dj:dj + W, :],
                      w1_ref, b1_ref))

    # ---- fused QKV: all heads in one lane-dense matmul (N, C) @ (C, 3*inner).
    qkv = jnp.dot(t, wqkv_ref[...], preferred_element_type=jnp.float32)

    # ---- per-head attention (static unroll); per-head views are static lane slices.
    outs = []
    for h in range(heads):
        lo = h * dim_head
        qh = qkv[:, lo:lo + dim_head]
        kh = qkv[:, inner + lo:inner + lo + dim_head]
        vh = qkv[:, 2 * inner + lo:2 * inner + lo + dim_head]
        dots = jax.lax.dot_general(qh, kh, (((1,), (1,)), ((), ())),
                                   preferred_element_type=jnp.float32) * scale
        m = jnp.max(dots, axis=-1, keepdims=True)
        p = jnp.exp(dots - m)
        attn = p * pl.reciprocal(jnp.sum(p, axis=-1, keepdims=True), approx=True)
        outs.append(jnp.dot(attn, vh, preferred_element_type=jnp.float32))   # (N, dh)

    # ---- heads concatenated on lanes -> single (N, inner) @ (inner, C) projection.
    y = jnp.dot(jnp.concatenate(outs, axis=-1), wout_ref[...],
                preferred_element_type=jnp.float32) + bout_ref[...]

    # ---- LayerNorm over channels (torch default eps).
    mu = jnp.mean(y, axis=-1, keepdims=True)
    var = jnp.mean(jnp.square(y - mu), axis=-1, keepdims=True)
    yn = (y - mu) * jax.lax.rsqrt(var + eps) * gamma_ref[...] + beta_ref[...]

    # ---- conv2 + PReLU: re-pad the intermediate inside VMEM (no HBM round trip).
    pad2_ref[...] = jnp.zeros_like(pad2_ref)
    pad2_ref[1:H + 1, 1:W + 1, :] = yn.reshape(H, W, C)
    y2 = prelu(conv3x3(lambda di, dj: pad2_ref[di:di + H, dj:dj + W, :],
                       w2_ref, b2_ref))

    # ---- emit channels-first (C, N): the wrapper reshape to (B, C, H, W) is free.
    o_ref[0] = y2.T


# ---------------------------------------------------------------------------
# Wrapper: weight packing + single fused pallas_call (grid over batch)
# ---------------------------------------------------------------------------
def self_path_forward(x_nchw, p):
    B, C, H, W = x_nchw.shape
    heads, _, dim_head = p["wq"].shape
    inner = heads * dim_head
    N = H * W

    # Small XLA glue: NHWC + zero padding for conv1 (im2col itself is in-kernel).
    x_pad = jnp.pad(jnp.transpose(x_nchw, (0, 2, 3, 1)),
                    ((0, 0), (1, 1), (1, 1), (0, 0)))

    # Weight packing: (kh, kw, cin)-ordered rows for the convs; heads folded onto
    # lanes for the fused QKV and output projections.
    w1 = jnp.transpose(p["conv1_w"], (2, 3, 1, 0)).reshape(9 * C, C)
    w2 = jnp.transpose(p["conv2_w"], (2, 3, 1, 0)).reshape(9 * C, C)

    def head_mat(w):                       # (heads, C, dh) -> (C, heads*dh)
        return jnp.transpose(w, (1, 0, 2)).reshape(C, inner)

    wqkv = jnp.concatenate([head_mat(p["wq"]), head_mat(p["wk"]),
                            head_mat(p["wv"])], axis=1)          # (C, 3*inner)
    wout = p["wout"].reshape(inner, C)                            # (inner, C)

    kernel = functools.partial(
        _self_path_kernel, H=H, W=W, C=C, heads=heads, dim_head=dim_head,
        scale=dim_head ** (-0.5), eps=1e-5)

    out = pl.pallas_call(
        kernel,
        out_shape=jax.ShapeDtypeStruct((B, C, N), jnp.float32),
        grid=(B,),
        in_specs=[
            pl.BlockSpec((1, H + 2, W + 2, C), lambda b: (b, 0, 0, 0)),  # padded input
            pl.BlockSpec((9 * C, C), lambda b: (0, 0)),                  # conv1 weight
            pl.BlockSpec((1, C), lambda b: (0, 0)),                      # conv1 bias
            pl.BlockSpec((1, 1), lambda b: (0, 0)),                      # PReLU alpha
            pl.BlockSpec((C, 3 * inner), lambda b: (0, 0)),              # fused QKV weight
            pl.BlockSpec((inner, C), lambda b: (0, 0)),                  # out-proj weight
            pl.BlockSpec((1, C), lambda b: (0, 0)),                      # out-proj bias
            pl.BlockSpec((1, C), lambda b: (0, 0)),                      # LN gamma
            pl.BlockSpec((1, C), lambda b: (0, 0)),                      # LN beta
            pl.BlockSpec((9 * C, C), lambda b: (0, 0)),                  # conv2 weight
            pl.BlockSpec((1, C), lambda b: (0, 0)),                      # conv2 bias
        ],
        out_specs=pl.BlockSpec((1, C, N), lambda b: (b, 0, 0)),
        scratch_shapes=[pltpu.VMEM((H + 2, W + 2, C), jnp.float32)],     # conv2 re-pad
        compiler_params=pltpu.CompilerParams(
            dimension_semantics=("parallel",),        # batch -> megacore / 2nd TC on v7x
            vmem_limit_bytes=32 * 1024 * 1024),
    )(x_pad, w1, p["conv1_b"].reshape(1, C), p["prelu_a"].reshape(1, 1),
      wqkv, wout, p["bout"].reshape(1, C), p["gamma"].reshape(1, C),
      p["beta"].reshape(1, C), w2, p["conv2_b"].reshape(1, C))

    # (B, C, H*W) -> (B, C, H, W): contiguous reshape, no transpose needed.
    return out.reshape(B, C, H, W)


# ---------------------------------------------------------------------------
# Pure-JAX reference for correctness check
# ---------------------------------------------------------------------------
def reference(x_nchw, p):
    B, C, H, W = x_nchw.shape

    def conv(xh, w, b):
        return jax.lax.conv_general_dilated(
            xh, jnp.transpose(w, (2, 3, 1, 0)), (1, 1), "SAME",
            dimension_numbers=("NHWC", "HWIO", "NHWC")) + b

    def prelu(y, a):
        return jnp.maximum(y, 0.0) + a * jnp.minimum(y, 0.0)

    xh = jnp.transpose(x_nchw, (0, 2, 3, 1))
    r = prelu(conv(xh, p["conv1_w"], p["conv1_b"]), p["prelu_a"])
    t = r.reshape(B, H * W, C)
    q = jnp.einsum("bnd,hde->bhne", t, p["wq"])
    k = jnp.einsum("bnd,hde->bhne", t, p["wk"])
    v = jnp.einsum("bnd,hde->bhne", t, p["wv"])
    dots = jnp.einsum("bhne,bhme->bhnm", q, k) * (p["wq"].shape[-1] ** -0.5)
    attn = jax.nn.softmax(dots, axis=-1)
    o = jnp.einsum("bhnm,bhme->bhne", attn, v)
    y = jnp.einsum("bhne,hed->bnd", o, p["wout"]) + p["bout"]
    mu = y.mean(-1, keepdims=True)
    var = ((y - mu) ** 2).mean(-1, keepdims=True)
    yn = (y - mu) * jax.lax.rsqrt(var + 1e-5) * p["gamma"] + p["beta"]
    nh = yn.reshape(B, H, W, C)
    out = prelu(conv(nh, p["conv2_w"], p["conv2_b"]), p["prelu_a"])
    return jnp.transpose(out, (0, 3, 1, 2))


# ---------------------------------------------------------------------------
if __name__ == "__main__":
    # Shapes consistent with the module: dim=8, heads=8, dim_head=64, 8x8 spatial.
    B, C, H, W = 2, 8, 8, 8
    heads, dim_head = 8, 64

    key = jax.random.PRNGKey(0)
    ks = jax.random.split(key, 12)
    f32 = jnp.float32
    params = dict(
        conv1_w=0.1 * jax.random.normal(ks[0], (C, C, 3, 3), f32),
        conv1_b=0.1 * jax.random.normal(ks[1], (C,), f32),
        conv2_w=0.1 * jax.random.normal(ks[2], (C, C, 3, 3), f32),
        conv2_b=0.1 * jax.random.normal(ks[3], (C,), f32),
        prelu_a=jnp.array(0.25, f32),                         # torch PReLU default
        wq=0.1 * jax.random.normal(ks[4], (heads, C, dim_head), f32),
        wk=0.1 * jax.random.normal(ks[5], (heads, C, dim_head), f32),
        wv=0.1 * jax.random.normal(ks[6], (heads, C, dim_head), f32),
        wout=0.1 * jax.random.normal(ks[7], (heads, dim_head, C), f32),
        bout=0.1 * jax.random.normal(ks[8], (C,), f32),
        gamma=jnp.ones((C,), f32),                            # LayerNorm weight
        beta=jnp.zeros((C,), f32),                            # LayerNorm bias
    )

    x = jax.random.normal(ks[9], (B, C, H, W), f32)

    fwd = jax.jit(self_path_forward)
    out = jax.block_until_ready(fwd(x, params))
    ref = jax.block_until_ready(reference(x, params))
    assert out.shape == (B, C, H, W), out.shape
    assert jnp.allclose(out, ref, rtol=2e-3, atol=2e-3), "mismatch vs reference"
    print("KERNEL_OK")
</pallas_src>

<mosaic_0001>
module attributes {stable_mosaic.version = 11 : i64} {
  func.func @_self_path_kernel(%arg0: i32, %arg1: memref<1x10x10x8xf32, #tpu.memory_space<vmem>>, %arg2: memref<72x8xf32, #tpu.memory_space<vmem>>, %arg3: memref<1x8xf32, #tpu.memory_space<vmem>>, %arg4: memref<1x1xf32, #tpu.memory_space<vmem>>, %arg5: memref<8x1536xf32, #tpu.memory_space<vmem>>, %arg6: memref<512x8xf32, #tpu.memory_space<vmem>>, %arg7: memref<1x8xf32, #tpu.memory_space<vmem>>, %arg8: memref<1x8xf32, #tpu.memory_space<vmem>>, %arg9: memref<1x8xf32, #tpu.memory_space<vmem>>, %arg10: memref<72x8xf32, #tpu.memory_space<vmem>>, %arg11: memref<1x8xf32, #tpu.memory_space<vmem>>, %arg12: memref<1x8x64xf32, #tpu.memory_space<vmem>>, %arg13: memref<10x10x8xf32, #tpu.memory_space<vmem>>) attributes {dimension_semantics = [#tpu.dimension_semantics<parallel>], iteration_bounds = array<i64: 2>, scalar_prefetch = 0 : i64, scratch_operands = 1 : i64, tpu.core_type = #tpu.core_type<tc>, window_params = [{transform_indices = @transform_0, window_bounds = array<i64: 1, 10, 10, 8>}, {pipeline_mode = #tpu.pipeline_mode<synchronous>, transform_indices = @transform_1, window_bounds = array<i64: 72, 8>}, {pipeline_mode = #tpu.pipeline_mode<synchronous>, transform_indices = @transform_2, window_bounds = array<i64: 1, 8>}, {pipeline_mode = #tpu.pipeline_mode<synchronous>, transform_indices = @transform_3, window_bounds = array<i64: 1, 1>}, {pipeline_mode = #tpu.pipeline_mode<synchronous>, transform_indices = @transform_4, window_bounds = array<i64: 8, 1536>}, {pipeline_mode = #tpu.pipeline_mode<synchronous>, transform_indices = @transform_5, window_bounds = array<i64: 512, 8>}, {pipeline_mode = #tpu.pipeline_mode<synchronous>, transform_indices = @transform_6, window_bounds = array<i64: 1, 8>}, {pipeline_mode = #tpu.pipeline_mode<synchronous>, transform_indices = @transform_7, window_bounds = array<i64: 1, 8>}, {pipeline_mode = #tpu.pipeline_mode<synchronous>, transform_indices = @transform_8, window_bounds = array<i64: 1, 8>}, {pipeline_mode = #tpu.pipeline_mode<synchronous>, transform_indices = @transform_9, window_bounds = array<i64: 72, 8>}, {pipeline_mode = #tpu.pipeline_mode<synchronous>, transform_indices = @transform_10, window_bounds = array<i64: 1, 8>}, {transform_indices = @transform_11, window_bounds = array<i64: 1, 8, 64>}]} {
    %c0 = arith.constant 0 : index
    %c0_0 = arith.constant 0 : index
    %0 = vector.load %arg4[%c0, %c0_0] : memref<1x1xf32, #tpu.memory_space<vmem>>, vector<1x1xf32>
    %1 = vector.extract %0[0, 0] : f32 from vector<1x1xf32>
    %c0_1 = arith.constant 0 : index
    %c0_2 = arith.constant 0 : index
    %c0_3 = arith.constant 0 : index
    %c0_4 = arith.constant 0 : index
    %2 = vector.load %arg1[%c0_1, %c0_2, %c0_3, %c0_4] : memref<1x10x10x8xf32, #tpu.memory_space<vmem>>, vector<1x8x8x8xf32>
    %3 = vector.shape_cast %2 : vector<1x8x8x8xf32> to vector<8x8x8xf32>
    %4 = vector.shape_cast %3 : vector<8x8x8xf32> to vector<64x8xf32>
    %c0_5 = arith.constant 0 : index
    %c0_6 = arith.constant 0 : index
    %c1 = arith.constant 1 : index
    %c0_7 = arith.constant 0 : index
    %5 = vector.load %arg1[%c0_5, %c0_6, %c1, %c0_7] : memref<1x10x10x8xf32, #tpu.memory_space<vmem>>, vector<1x8x8x8xf32>
    %6 = vector.shape_cast %5 : vector<1x8x8x8xf32> to vector<8x8x8xf32>
    %7 = vector.shape_cast %6 : vector<8x8x8xf32> to vector<64x8xf32>
    %c0_8 = arith.constant 0 : index
    %c0_9 = arith.constant 0 : index
    %c2 = arith.constant 2 : index
    %c0_10 = arith.constant 0 : index
    %8 = vector.load %arg1[%c0_8, %c0_9, %c2, %c0_10] : memref<1x10x10x8xf32, #tpu.memory_space<vmem>>, vector<1x8x8x8xf32>
    %9 = vector.shape_cast %8 : vector<1x8x8x8xf32> to vector<8x8x8xf32>
    %10 = vector.shape_cast %9 : vector<8x8x8xf32> to vector<64x8xf32>
    %c0_11 = arith.constant 0 : index
    %c1_12 = arith.constant 1 : index
    %c0_13 = arith.constant 0 : index
    %c0_14 = arith.constant 0 : index
    %11 = vector.load %arg1[%c0_11, %c1_12, %c0_13, %c0_14] : memref<1x10x10x8xf32, #tpu.memory_space<vmem>>, vector<1x8x8x8xf32>
    %12 = vector.shape_cast %11 : vector<1x8x8x8xf32> to vector<8x8x8xf32>
    %13 = vector.shape_cast %12 : vector<8x8x8xf32> to vector<64x8xf32>
    %c0_15 = arith.constant 0 : index
    %c1_16 = arith.constant 1 : index
    %c1_17 = arith.constant 1 : index
    %c0_18 = arith.constant 0 : index
    %14 = vector.load %arg1[%c0_15, %c1_16, %c1_17, %c0_18] : memref<1x10x10x8xf32, #tpu.memory_space<vmem>>, vector<1x8x8x8xf32>
    %15 = vector.shape_cast %14 : vector<1x8x8x8xf32> to vector<8x8x8xf32>
    %16 = vector.shape_cast %15 : vector<8x8x8xf32> to vector<64x8xf32>
    %c0_19 = arith.constant 0 : index
    %c1_20 = arith.constant 1 : index
    %c2_21 = arith.constant 2 : index
    %c0_22 = arith.constant 0 : index
    %17 = vector.load %arg1[%c0_19, %c1_20, %c2_21, %c0_22] : memref<1x10x10x8xf32, #tpu.memory_space<vmem>>, vector<1x8x8x8xf32>
    %18 = vector.shape_cast %17 : vector<1x8x8x8xf32> to vector<8x8x8xf32>
    %19 = vector.shape_cast %18 : vector<8x8x8xf32> to vector<64x8xf32>
    %c0_23 = arith.constant 0 : index
    %c2_24 = arith.constant 2 : index
    %c0_25 = arith.constant 0 : index
    %c0_26 = arith.constant 0 : index
    %20 = vector.load %arg1[%c0_23, %c2_24, %c0_25, %c0_26] : memref<1x10x10x8xf32, #tpu.memory_space<vmem>>, vector<1x8x8x8xf32>
    %21 = vector.shape_cast %20 : vector<1x8x8x8xf32> to vector<8x8x8xf32>
    %22 = vector.shape_cast %21 : vector<8x8x8xf32> to vector<64x8xf32>
    %c0_27 = arith.constant 0 : index
    %c2_28 = arith.constant 2 : index
    %c1_29 = arith.constant 1 : index
    %c0_30 = arith.constant 0 : index
    %23 = vector.load %arg1[%c0_27, %c2_28, %c1_29, %c0_30] : memref<1x10x10x8xf32, #tpu.memory_space<vmem>>, vector<1x8x8x8xf32>
    %24 = vector.shape_cast %23 : vector<1x8x8x8xf32> to vector<8x8x8xf32>
    %25 = vector.shape_cast %24 : vector<8x8x8xf32> to vector<64x8xf32>
    %c0_31 = arith.constant 0 : index
    %c2_32 = arith.constant 2 : index
    %c2_33 = arith.constant 2 : index
    %c0_34 = arith.constant 0 : index
    %26 = vector.load %arg1[%c0_31, %c2_32, %c2_33, %c0_34] : memref<1x10x10x8xf32, #tpu.memory_space<vmem>>, vector<1x8x8x8xf32>
    %27 = vector.shape_cast %26 : vector<1x8x8x8xf32> to vector<8x8x8xf32>
    %28 = vector.shape_cast %27 : vector<8x8x8xf32> to vector<64x8xf32>
    %29 = tpu.concatenate %4, %7, %10, %13, %16, %19, %22, %25, %28 in 1 : vector<64x8xf32>, vector<64x8xf32>, vector<64x8xf32>, vector<64x8xf32>, vector<64x8xf32>, vector<64x8xf32>, vector<64x8xf32>, vector<64x8xf32>, vector<64x8xf32> -> vector<64x72xf32>
    %c0_35 = arith.constant 0 : index
    %c0_36 = arith.constant 0 : index
    %30 = vector.load %arg2[%c0_35, %c0_36] : memref<72x8xf32, #tpu.memory_space<vmem>>, vector<72x8xf32>
    %cst = arith.constant dense<0.000000e+00> : vector<64x8xf32>
    %31 = tpu.matmul %29, %30, %cst {dimension_numbers = #tpu.dot_dimension_numbers<[1], [0], [0], [1], [0, 0, 1, 1], [], []>} : vector<64x72xf32>, vector<72x8xf32>, vector<64x8xf32> -> vector<64x8xf32>
    %c0_37 = arith.constant 0 : index
    %c0_38 = arith.constant 0 : index
    %32 = vector.load %arg3[%c0_37, %c0_38] : memref<1x8xf32, #tpu.memory_space<vmem>>, vector<1x8xf32>
    %33 = vector.broadcast %32 : vector<1x8xf32> to vector<64x8xf32>
    %34 = arith.addf %31, %33 : vector<64x8xf32>
    %cst_39 = arith.constant 0.000000e+00 : f32
    %35 = vector.broadcast %cst_39 : f32 to vector<64x8xf32>
    %36 = arith.maximumf %34, %35 : vector<64x8xf32>
    %cst_40 = arith.constant 0.000000e+00 : f32
    %37 = vector.broadcast %cst_40 : f32 to vector<64x8xf32>
    %38 = arith.minimumf %34, %37 : vector<64x8xf32>
    %39 = vector.broadcast %1 : f32 to vector<64x8xf32>
    %40 = arith.mulf %39, %38 : vector<64x8xf32>
    %41 = arith.addf %36, %40 : vector<64x8xf32>
    %c0_41 = arith.constant 0 : index
    %c0_42 = arith.constant 0 : index
    %42 = vector.load %arg5[%c0_41, %c0_42] : memref<8x1536xf32, #tpu.memory_space<vmem>>, vector<8x1536xf32>
    %cst_43 = arith.constant dense<0.000000e+00> : vector<64x1536xf32>
    %43 = tpu.matmul %41, %42, %cst_43 {dimension_numbers = #tpu.dot_dimension_numbers<[1], [0], [0], [1], [0, 0, 1, 1], [], []>} : vector<64x8xf32>, vector<8x1536xf32>, vector<64x1536xf32> -> vector<64x1536xf32>
    %44 = vector.extract_strided_slice %43 {offsets = [0, 0], sizes = [64, 64], strides = [1, 1]} : vector<64x1536xf32> to vector<64x64xf32>
    %45 = vector.extract_strided_slice %43 {offsets = [0, 512], sizes = [64, 64], strides = [1, 1]} : vector<64x1536xf32> to vector<64x64xf32>
    %46 = vector.extract_strided_slice %43 {offsets = [0, 1024], sizes = [64, 64], strides = [1, 1]} : vector<64x1536xf32> to vector<64x64xf32>
    %cst_44 = arith.constant dense<0.000000e+00> : vector<64x64xf32>
    %47 = tpu.matmul %44, %45, %cst_44 {dimension_numbers = #tpu.dot_dimension_numbers<[1], [1], [0], [0], [0, 0, 1, 0], [], []>} : vector<64x64xf32>, vector<64x64xf32>, vector<64x64xf32> -> vector<64x64xf32>
    %cst_45 = arith.constant 1.250000e-01 : f32
    %48 = vector.broadcast %cst_45 : f32 to vector<64x64xf32>
    %49 = arith.mulf %47, %48 : vector<64x64xf32>
    %cst_46 = arith.constant dense<0xFF800000> : vector<64xf32>
    %50 = vector.multi_reduction <maximumf>, %49, %cst_46 [1] : vector<64x64xf32> to vector<64xf32>
    %51 = vector.shape_cast %50 : vector<64xf32> to vector<64x1xf32>
    %52 = vector.broadcast %51 : vector<64x1xf32> to vector<64x64xf32>
    %53 = arith.subf %49, %52 : vector<64x64xf32>
    %54 = math.exp %53 : vector<64x64xf32>
    %cst_47 = arith.constant dense<0.000000e+00> : vector<64xf32>
    %55 = vector.multi_reduction <add>, %54, %cst_47 [1] : vector<64x64xf32> to vector<64xf32>
    %56 = vector.shape_cast %55 : vector<64xf32> to vector<64x1xf32>
    %57 = tpu.reciprocal %56 {approx = true} : vector<64x1xf32> -> vector<64x1xf32>
    %58 = vector.broadcast %57 : vector<64x1xf32> to vector<64x64xf32>
    %59 = arith.mulf %54, %58 : vector<64x64xf32>
    %cst_48 = arith.constant dense<0.000000e+00> : vector<64x64xf32>
    %60 = tpu.matmul %59, %46, %cst_48 {dimension_numbers = #tpu.dot_dimension_numbers<[1], [0], [0], [1], [0, 0, 1, 1], [], []>} : vector<64x64xf32>, vector<64x64xf32>, vector<64x64xf32> -> vector<64x64xf32>
    %61 = vector.extract_strided_slice %43 {offsets = [0, 64], sizes = [64, 64], strides = [1, 1]} : vector<64x1536xf32> to vector<64x64xf32>
    %62 = vector.extract_strided_slice %43 {offsets = [0, 576], sizes = [64, 64], strides = [1, 1]} : vector<64x1536xf32> to vector<64x64xf32>
    %63 = vector.extract_strided_slice %43 {offsets = [0, 1088], sizes = [64, 64], strides = [1, 1]} : vector<64x1536xf32> to vector<64x64xf32>
    %cst_49 = arith.constant dense<0.000000e+00> : vector<64x64xf32>
    %64 = tpu.matmul %61, %62, %cst_49 {dimension_numbers = #tpu.dot_dimension_numbers<[1], [1], [0], [0], [0, 0, 1, 0], [], []>} : vector<64x64xf32>, vector<64x64xf32>, vector<64x64xf32> -> vector<64x64xf32>
    %cst_50 = arith.constant 1.250000e-01 : f32
    %65 = vector.broadcast %cst_50 : f32 to vector<64x64xf32>
    %66 = arith.mulf %64, %65 : vector<64x64xf32>
    %cst_51 = arith.constant dense<0xFF800000> : vector<64xf32>
    %67 = vector.multi_reduction <maximumf>, %66, %cst_51 [1] : vector<64x64xf32> to vector<64xf32>
    %68 = vector.shape_cast %67 : vector<64xf32> to vector<64x1xf32>
    %69 = vector.broadcast %68 : vector<64x1xf32> to vector<64x64xf32>
    %70 = arith.subf %66, %69 : vector<64x64xf32>
    %71 = math.exp %70 : vector<64x64xf32>
    %cst_52 = arith.constant dense<0.000000e+00> : vector<64xf32>
    %72 = vector.multi_reduction <add>, %71, %cst_52 [1] : vector<64x64xf32> to vector<64xf32>
    %73 = vector.shape_cast %72 : vector<64xf32> to vector<64x1xf32>
    %74 = tpu.reciprocal %73 {approx = true} : vector<64x1xf32> -> vector<64x1xf32>
    %75 = vector.broadcast %74 : vector<64x1xf32> to vector<64x64xf32>
    %76 = arith.mulf %71, %75 : vector<64x64xf32>
    %cst_53 = arith.constant dense<0.000000e+00> : vector<64x64xf32>
    %77 = tpu.matmul %76, %63, %cst_53 {dimension_numbers = #tpu.dot_dimension_numbers<[1], [0], [0], [1], [0, 0, 1, 1], [], []>} : vector<64x64xf32>, vector<64x64xf32>, vector<64x64xf32> -> vector<64x64xf32>
    %78 = vector.extract_strided_slice %43 {offsets = [0, 128], sizes = [64, 64], strides = [1, 1]} : vector<64x1536xf32> to vector<64x64xf32>
    %79 = vector.extract_strided_slice %43 {offsets = [0, 640], sizes = [64, 64], strides = [1, 1]} : vector<64x1536xf32> to vector<64x64xf32>
    %80 = vector.extract_strided_slice %43 {offsets = [0, 1152], sizes = [64, 64], strides = [1, 1]} : vector<64x1536xf32> to vector<64x64xf32>
    %cst_54 = arith.constant dense<0.000000e+00> : vector<64x64xf32>
    %81 = tpu.matmul %78, %79, %cst_54 {dimension_numbers = #tpu.dot_dimension_numbers<[1], [1], [0], [0], [0, 0, 1, 0], [], []>} : vector<64x64xf32>, vector<64x64xf32>, vector<64x64xf32> -> vector<64x64xf32>
    %cst_55 = arith.constant 1.250000e-01 : f32
    %82 = vector.broadcast %cst_55 : f32 to vector<64x64xf32>
    %83 = arith.mulf %81, %82 : vector<64x64xf32>
    %cst_56 = arith.constant dense<0xFF800000> : vector<64xf32>
    %84 = vector.multi_reduction <maximumf>, %83, %cst_56 [1] : vector<64x64xf32> to vector<64xf32>
    %85 = vector.shape_cast %84 : vector<64xf32> to vector<64x1xf32>
    %86 = vector.broadcast %85 : vector<64x1xf32> to vector<64x64xf32>
    %87 = arith.subf %83, %86 : vector<64x64xf32>
    %88 = math.exp %87 : vector<64x64xf32>
    %cst_57 = arith.constant dense<0.000000e+00> : vector<64xf32>
    %89 = vector.multi_reduction <add>, %88, %cst_57 [1] : vector<64x64xf32> to vector<64xf32>
    %90 = vector.shape_cast %89 : vector<64xf32> to vector<64x1xf32>
    %91 = tpu.reciprocal %90 {approx = true} : vector<64x1xf32> -> vector<64x1xf32>
    %92 = vector.broadcast %91 : vector<64x1xf32> to vector<64x64xf32>
    %93 = arith.mulf %88, %92 : vector<64x64xf32>
    %cst_58 = arith.constant dense<0.000000e+00> : vector<64x64xf32>
    %94 = tpu.matmul %93, %80, %cst_58 {dimension_numbers = #tpu.dot_dimension_numbers<[1], [0], [0], [1], [0, 0, 1, 1], [], []>} : vector<64x64xf32>, vector<64x64xf32>, vector<64x64xf32> -> vector<64x64xf32>
    %95 = vector.extract_strided_slice %43 {offsets = [0, 192], sizes = [64, 64], strides = [1, 1]} : vector<64x1536xf32> to vector<64x64xf32>
    %96 = vector.extract_strided_slice %43 {offsets = [0, 704], sizes = [64, 64], strides = [1, 1]} : vector<64x1536xf32> to vector<64x64xf32>
    %97 = vector.extract_strided_slice %43 {offsets = [0, 1216], sizes = [64, 64], strides = [1, 1]} : vector<64x1536xf32> to vector<64x64xf32>
    %cst_59 = arith.constant dense<0.000000e+00> : vector<64x64xf32>
    %98 = tpu.matmul %95, %96, %cst_59 {dimension_numbers = #tpu.dot_dimension_numbers<[1], [1], [0], [0], [0, 0, 1, 0], [], []>} : vector<64x64xf32>, vector<64x64xf32>, vector<64x64xf32> -> vector<64x64xf32>
    %cst_60 = arith.constant 1.250000e-01 : f32
    %99 = vector.broadcast %cst_60 : f32 to vector<64x64xf32>
    %100 = arith.mulf %98, %99 : vector<64x64xf32>
    %cst_61 = arith.constant dense<0xFF800000> : vector<64xf32>
    %101 = vector.multi_reduction <maximumf>, %100, %cst_61 [1] : vector<64x64xf32> to vector<64xf32>
    %102 = vector.shape_cast %101 : vector<64xf32> to vector<64x1xf32>
    %103 = vector.broadcast %102 : vector<64x1xf32> to vector<64x64xf32>
    %104 = arith.subf %100, %103 : vector<64x64xf32>
    %105 = math.exp %104 : vector<64x64xf32>
    %cst_62 = arith.constant dense<0.000000e+00> : vector<64xf32>
    %106 = vector.multi_reduction <add>, %105, %cst_62 [1] : vector<64x64xf32> to vector<64xf32>
    %107 = vector.shape_cast %106 : vector<64xf32> to vector<64x1xf32>
    %108 = tpu.reciprocal %107 {approx = true} : vector<64x1xf32> -> vector<64x1xf32>
    %109 = vector.broadcast %108 : vector<64x1xf32> to vector<64x64xf32>
    %110 = arith.mulf %105, %109 : vector<64x64xf32>
    %cst_63 = arith.constant dense<0.000000e+00> : vector<64x64xf32>
    %111 = tpu.matmul %110, %97, %cst_63 {dimension_numbers = #tpu.dot_dimension_numbers<[1], [0], [0], [1], [0, 0, 1, 1], [], []>} : vector<64x64xf32>, vector<64x64xf32>, vector<64x64xf32> -> vector<64x64xf32>
    %112 = vector.extract_strided_slice %43 {offsets = [0, 256], sizes = [64, 64], strides = [1, 1]} : vector<64x1536xf32> to vector<64x64xf32>
    %113 = vector.extract_strided_slice %43 {offsets = [0, 768], sizes = [64, 64], strides = [1, 1]} : vector<64x1536xf32> to vector<64x64xf32>
    %114 = vector.extract_strided_slice %43 {offsets = [0, 1280], sizes = [64, 64], strides = [1, 1]} : vector<64x1536xf32> to vector<64x64xf32>
    %cst_64 = arith.constant dense<0.000000e+00> : vector<64x64xf32>
    %115 = tpu.matmul %112, %113, %cst_64 {dimension_numbers = #tpu.dot_dimension_numbers<[1], [1], [0], [0], [0, 0, 1, 0], [], []>} : vector<64x64xf32>, vector<64x64xf32>, vector<64x64xf32> -> vector<64x64xf32>
    %cst_65 = arith.constant 1.250000e-01 : f32
    %116 = vector.broadcast %cst_65 : f32 to vector<64x64xf32>
    %117 = arith.mulf %115, %116 : vector<64x64xf32>
    %cst_66 = arith.constant dense<0xFF800000> : vector<64xf32>
    %118 = vector.multi_reduction <maximumf>, %117, %cst_66 [1] : vector<64x64xf32> to vector<64xf32>
    %119 = vector.shape_cast %118 : vector<64xf32> to vector<64x1xf32>
    %120 = vector.broadcast %119 : vector<64x1xf32> to vector<64x64xf32>
    %121 = arith.subf %117, %120 : vector<64x64xf32>
    %122 = math.exp %121 : vector<64x64xf32>
    %cst_67 = arith.constant dense<0.000000e+00> : vector<64xf32>
    %123 = vector.multi_reduction <add>, %122, %cst_67 [1] : vector<64x64xf32> to vector<64xf32>
    %124 = vector.shape_cast %123 : vector<64xf32> to vector<64x1xf32>
    %125 = tpu.reciprocal %124 {approx = true} : vector<64x1xf32> -> vector<64x1xf32>
    %126 = vector.broadcast %125 : vector<64x1xf32> to vector<64x64xf32>
    %127 = arith.mulf %122, %126 : vector<64x64xf32>
    %cst_68 = arith.constant dense<0.000000e+00> : vector<64x64xf32>
    %128 = tpu.matmul %127, %114, %cst_68 {dimension_numbers = #tpu.dot_dimension_numbers<[1], [0], [0], [1], [0, 0, 1, 1], [], []>} : vector<64x64xf32>, vector<64x64xf32>, vector<64x64xf32> -> vector<64x64xf32>
    %129 = vector.extract_strided_slice %43 {offsets = [0, 320], sizes = [64, 64], strides = [1, 1]} : vector<64x1536xf32> to vector<64x64xf32>
    %130 = vector.extract_strided_slice %43 {offsets = [0, 832], sizes = [64, 64], strides = [1, 1]} : vector<64x1536xf32> to vector<64x64xf32>
    %131 = vector.extract_strided_slice %43 {offsets = [0, 1344], sizes = [64, 64], strides = [1, 1]} : vector<64x1536xf32> to vector<64x64xf32>
    %cst_69 = arith.constant dense<0.000000e+00> : vector<64x64xf32>
    %132 = tpu.matmul %129, %130, %cst_69 {dimension_numbers = #tpu.dot_dimension_numbers<[1], [1], [0], [0], [0, 0, 1, 0], [], []>} : vector<64x64xf32>, vector<64x64xf32>, vector<64x64xf32> -> vector<64x64xf32>
    %cst_70 = arith.constant 1.250000e-01 : f32
    %133 = vector.broadcast %cst_70 : f32 to vector<64x64xf32>
    %134 = arith.mulf %132, %133 : vector<64x64xf32>
    %cst_71 = arith.constant dense<0xFF800000> : vector<64xf32>
    %135 = vector.multi_reduction <maximumf>, %134, %cst_71 [1] : vector<64x64xf32> to vector<64xf32>
    %136 = vector.shape_cast %135 : vector<64xf32> to vector<64x1xf32>
    %137 = vector.broadcast %136 : vector<64x1xf32> to vector<64x64xf32>
    %138 = arith.subf %134, %137 : vector<64x64xf32>
    %139 = math.exp %138 : vector<64x64xf32>
    %cst_72 = arith.constant dense<0.000000e+00> : vector<64xf32>
    %140 = vector.multi_reduction <add>, %139, %cst_72 [1] : vector<64x64xf32> to vector<64xf32>
    %141 = vector.shape_cast %140 : vector<64xf32> to vector<64x1xf32>
    %142 = tpu.reciprocal %141 {approx = true} : vector<64x1xf32> -> vector<64x1xf32>
    %143 = vector.broadcast %142 : vector<64x1xf32> to vector<64x64xf32>
    %144 = arith.mulf %139, %143 : vector<64x64xf32>
    %cst_73 = arith.constant dense<0.000000e+00> : vector<64x64xf32>
    %145 = tpu.matmul %144, %131, %cst_73 {dimension_numbers = #tpu.dot_dimension_numbers<[1], [0], [0], [1], [0, 0, 1, 1], [], []>} : vector<64x64xf32>, vector<64x64xf32>, vector<64x64xf32> -> vector<64x64xf32>
    %146 = vector.extract_strided_slice %43 {offsets = [0, 384], sizes = [64, 64], strides = [1, 1]} : vector<64x1536xf32> to vector<64x64xf32>
    %147 = vector.extract_strided_slice %43 {offsets = [0, 896], sizes = [64, 64], strides = [1, 1]} : vector<64x1536xf32> to vector<64x64xf32>
    %148 = vector.extract_strided_slice %43 {offsets = [0, 1408], sizes = [64, 64], strides = [1, 1]} : vector<64x1536xf32> to vector<64x64xf32>
    %cst_74 = arith.constant dense<0.000000e+00> : vector<64x64xf32>
    %149 = tpu.matmul %146, %147, %cst_74 {dimension_numbers = #tpu.dot_dimension_numbers<[1], [1], [0], [0], [0, 0, 1, 0], [], []>} : vector<64x64xf32>, vector<64x64xf32>, vector<64x64xf32> -> vector<64x64xf32>
    %cst_75 = arith.constant 1.250000e-01 : f32
    %150 = vector.broadcast %cst_75 : f32 to vector<64x64xf32>
    %151 = arith.mulf %149, %150 : vector<64x64xf32>
    %cst_76 = arith.constant dense<0xFF800000> : vector<64xf32>
    %152 = vector.multi_reduction <maximumf>, %151, %cst_76 [1] : vector<64x64xf32> to vector<64xf32>
    %153 = vector.shape_cast %152 : vector<64xf32> to vector<64x1xf32>
    %154 = vector.broadcast %153 : vector<64x1xf32> to vector<64x64xf32>
    %155 = arith.subf %151, %154 : vector<64x64xf32>
    %156 = math.exp %155 : vector<64x64xf32>
    %cst_77 = arith.constant dense<0.000000e+00> : vector<64xf32>
    %157 = vector.multi_reduction <add>, %156, %cst_77 [1] : vector<64x64xf32> to vector<64xf32>
    %158 = vector.shape_cast %157 : vector<64xf32> to vector<64x1xf32>
    %159 = tpu.reciprocal %158 {approx = true} : vector<64x1xf32> -> vector<64x1xf32>
    %160 = vector.broadcast %159 : vector<64x1xf32> to vector<64x64xf32>
    %161 = arith.mulf %156, %160 : vector<64x64xf32>
    %cst_78 = arith.constant dense<0.000000e+00> : vector<64x64xf32>
    %162 = tpu.matmul %161, %148, %cst_78 {dimension_numbers = #tpu.dot_dimension_numbers<[1], [0], [0], [1], [0, 0, 1, 1], [], []>} : vector<64x64xf32>, vector<64x64xf32>, vector<64x64xf32> -> vector<64x64xf32>
    %163 = vector.extract_strided_slice %43 {offsets = [0, 448], sizes = [64, 64], strides = [1, 1]} : vector<64x1536xf32> to vector<64x64xf32>
    %164 = vector.extract_strided_slice %43 {offsets = [0, 960], sizes = [64, 64], strides = [1, 1]} : vector<64x1536xf32> to vector<64x64xf32>
    %165 = vector.extract_strided_slice %43 {offsets = [0, 1472], sizes = [64, 64], strides = [1, 1]} : vector<64x1536xf32> to vector<64x64xf32>
    %cst_79 = arith.constant dense<0.000000e+00> : vector<64x64xf32>
    %166 = tpu.matmul %163, %164, %cst_79 {dimension_numbers = #tpu.dot_dimension_numbers<[1], [1], [0], [0], [0, 0, 1, 0], [], []>} : vector<64x64xf32>, vector<64x64xf32>, vector<64x64xf32> -> vector<64x64xf32>
    %cst_80 = arith.constant 1.250000e-01 : f32
    %167 = vector.broadcast %cst_80 : f32 to vector<64x64xf32>
    %168 = arith.mulf %166, %167 : vector<64x64xf32>
    %cst_81 = arith.constant dense<0xFF800000> : vector<64xf32>
    %169 = vector.multi_reduction <maximumf>, %168, %cst_81 [1] : vector<64x64xf32> to vector<64xf32>
    %170 = vector.shape_cast %169 : vector<64xf32> to vector<64x1xf32>
    %171 = vector.broadcast %170 : vector<64x1xf32> to vector<64x64xf32>
    %172 = arith.subf %168, %171 : vector<64x64xf32>
    %173 = math.exp %172 : vector<64x64xf32>
    %cst_82 = arith.constant dense<0.000000e+00> : vector<64xf32>
    %174 = vector.multi_reduction <add>, %173, %cst_82 [1] : vector<64x64xf32> to vector<64xf32>
    %175 = vector.shape_cast %174 : vector<64xf32> to vector<64x1xf32>
    %176 = tpu.reciprocal %175 {approx = true} : vector<64x1xf32> -> vector<64x1xf32>
    %177 = vector.broadcast %176 : vector<64x1xf32> to vector<64x64xf32>
    %178 = arith.mulf %173, %177 : vector<64x64xf32>
    %cst_83 = arith.constant dense<0.000000e+00> : vector<64x64xf32>
    %179 = tpu.matmul %178, %165, %cst_83 {dimension_numbers = #tpu.dot_dimension_numbers<[1], [0], [0], [1], [0, 0, 1, 1], [], []>} : vector<64x64xf32>, vector<64x64xf32>, vector<64x64xf32> -> vector<64x64xf32>
    %180 = tpu.concatenate %60, %77, %94, %111, %128, %145, %162, %179 in 1 : vector<64x64xf32>, vector<64x64xf32>, vector<64x64xf32>, vector<64x64xf32>, vector<64x64xf32>, vector<64x64xf32>, vector<64x64xf32>, vector<64x64xf32> -> vector<64x512xf32>
    %c0_84 = arith.constant 0 : index
    %c0_85 = arith.constant 0 : index
    %181 = vector.load %arg6[%c0_84, %c0_85] : memref<512x8xf32, #tpu.memory_space<vmem>>, vector<512x8xf32>
    %cst_86 = arith.constant dense<0.000000e+00> : vector<64x8xf32>
    %182 = tpu.matmul %180, %181, %cst_86 {dimension_numbers = #tpu.dot_dimension_numbers<[1], [0], [0], [1], [0, 0, 1, 1], [], []>} : vector<64x512xf32>, vector<512x8xf32>, vector<64x8xf32> -> vector<64x8xf32>
    %c0_87 = arith.constant 0 : index
    %c0_88 = arith.constant 0 : index
    %183 = vector.load %arg7[%c0_87, %c0_88] : memref<1x8xf32, #tpu.memory_space<vmem>>, vector<1x8xf32>
    %184 = vector.broadcast %183 : vector<1x8xf32> to vector<64x8xf32>
    %185 = arith.addf %182, %184 : vector<64x8xf32>
    %cst_89 = arith.constant dense<0.000000e+00> : vector<64xf32>
    %186 = vector.multi_reduction <add>, %185, %cst_89 [1] : vector<64x8xf32> to vector<64xf32>
    %187 = vector.shape_cast %186 : vector<64xf32> to vector<64x1xf32>
    %cst_90 = arith.constant 8.000000e+00 : f32
    %188 = vector.broadcast %cst_90 : f32 to vector<64x1xf32>
    %189 = arith.divf %187, %188 : vector<64x1xf32>
    %190 = vector.broadcast %189 : vector<64x1xf32> to vector<64x8xf32>
    %191 = arith.subf %185, %190 : vector<64x8xf32>
    %192 = arith.mulf %191, %191 : vector<64x8xf32>
    %cst_91 = arith.constant dense<0.000000e+00> : vector<64xf32>
    %193 = vector.multi_reduction <add>, %192, %cst_91 [1] : vector<64x8xf32> to vector<64xf32>
    %194 = vector.shape_cast %193 : vector<64xf32> to vector<64x1xf32>
    %cst_92 = arith.constant 8.000000e+00 : f32
    %195 = vector.broadcast %cst_92 : f32 to vector<64x1xf32>
    %196 = arith.divf %194, %195 : vector<64x1xf32>
    %197 = vector.broadcast %189 : vector<64x1xf32> to vector<64x8xf32>
    %198 = arith.subf %185, %197 : vector<64x8xf32>
    %cst_93 = arith.constant 9.99999974E-6 : f32
    %199 = vector.broadcast %cst_93 : f32 to vector<64x1xf32>
    %200 = arith.addf %196, %199 : vector<64x1xf32>
    %201 = math.rsqrt %200 : vector<64x1xf32>
    %202 = vector.broadcast %201 : vector<64x1xf32> to vector<64x8xf32>
    %203 = arith.mulf %198, %202 : vector<64x8xf32>
    %c0_94 = arith.constant 0 : index
    %c0_95 = arith.constant 0 : index
    %204 = vector.load %arg8[%c0_94, %c0_95] : memref<1x8xf32, #tpu.memory_space<vmem>>, vector<1x8xf32>
    %205 = vector.broadcast %204 : vector<1x8xf32> to vector<64x8xf32>
    %206 = arith.mulf %203, %205 : vector<64x8xf32>
    %c0_96 = arith.constant 0 : index
    %c0_97 = arith.constant 0 : index
    %207 = vector.load %arg9[%c0_96, %c0_97] : memref<1x8xf32, #tpu.memory_space<vmem>>, vector<1x8xf32>
    %208 = vector.broadcast %207 : vector<1x8xf32> to vector<64x8xf32>
    %209 = arith.addf %206, %208 : vector<64x8xf32>
    %cst_98 = arith.constant 0.000000e+00 : f32
    %210 = vector.broadcast %cst_98 : f32 to vector<10x10x8xf32>
    %c0_99 = arith.constant 0 : index
    %c0_100 = arith.constant 0 : index
    %c0_101 = arith.constant 0 : index
    %211 = vector.load %arg13[%c0_99, %c0_100, %c0_101] : memref<10x10x8xf32, #tpu.memory_space<vmem>>, vector<10x10x8xf32>
    tpu.vector_store %arg13[%c0_99, %c0_100, %c0_101], %210 {strides = array<i32>} : memref<10x10x8xf32, #tpu.memory_space<vmem>>, vector<10x10x8xf32>,
    %212 = vector.shape_cast %209 : vector<64x8xf32> to vector<8x8x8xf32>
    %c1_102 = arith.constant 1 : index
    %c1_103 = arith.constant 1 : index
    %c0_104 = arith.constant 0 : index
    %213 = vector.load %arg13[%c1_102, %c1_103, %c0_104] : memref<10x10x8xf32, #tpu.memory_space<vmem>>, vector<8x8x8xf32>
    tpu.vector_store %arg13[%c1_102, %c1_103, %c0_104], %212 {strides = array<i32>} : memref<10x10x8xf32, #tpu.memory_space<vmem>>, vector<8x8x8xf32>,
    %c0_105 = arith.constant 0 : index
    %c0_106 = arith.constant 0 : index
    %c0_107 = arith.constant 0 : index
    %214 = vector.load %arg13[%c0_105, %c0_106, %c0_107] : memref<10x10x8xf32, #tpu.memory_space<vmem>>, vector<8x8x8xf32>
    %215 = vector.shape_cast %214 : vector<8x8x8xf32> to vector<64x8xf32>
    %c0_108 = arith.constant 0 : index
    %c1_109 = arith.constant 1 : index
    %c0_110 = arith.constant 0 : index
    %216 = vector.load %arg13[%c0_108, %c1_109, %c0_110] : memref<10x10x8xf32, #tpu.memory_space<vmem>>, vector<8x8x8xf32>
    %217 = vector.shape_cast %216 : vector<8x8x8xf32> to vector<64x8xf32>
    %c0_111 = arith.constant 0 : index
    %c2_112 = arith.constant 2 : index
    %c0_113 = arith.constant 0 : index
    %218 = vector.load %arg13[%c0_111, %c2_112, %c0_113] : memref<10x10x8xf32, #tpu.memory_space<vmem>>, vector<8x8x8xf32>
    %219 = vector.shape_cast %218 : vector<8x8x8xf32> to vector<64x8xf32>
    %c1_114 = arith.constant 1 : index
    %c0_115 = arith.constant 0 : index
    %c0_116 = arith.constant 0 : index
    %220 = vector.load %arg13[%c1_114, %c0_115, %c0_116] : memref<10x10x8xf32, #tpu.memory_space<vmem>>, vector<8x8x8xf32>
    %221 = vector.shape_cast %220 : vector<8x8x8xf32> to vector<64x8xf32>
    %c1_117 = arith.constant 1 : index
    %c1_118 = arith.constant 1 : index
    %c0_119 = arith.constant 0 : index
    %222 = vector.load %arg13[%c1_117, %c1_118, %c0_119] : memref<10x10x8xf32, #tpu.memory_space<vmem>>, vector<8x8x8xf32>
    %223 = vector.shape_cast %222 : vector<8x8x8xf32> to vector<64x8xf32>
    %c1_120 = arith.constant 1 : index
    %c2_121 = arith.constant 2 : index
    %c0_122 = arith.constant 0 : index
    %224 = vector.load %arg13[%c1_120, %c2_121, %c0_122] : memref<10x10x8xf32, #tpu.memory_space<vmem>>, vector<8x8x8xf32>
    %225 = vector.shape_cast %224 : vector<8x8x8xf32> to vector<64x8xf32>
    %c2_123 = arith.constant 2 : index
    %c0_124 = arith.constant 0 : index
    %c0_125 = arith.constant 0 : index
    %226 = vector.load %arg13[%c2_123, %c0_124, %c0_125] : memref<10x10x8xf32, #tpu.memory_space<vmem>>, vector<8x8x8xf32>
    %227 = vector.shape_cast %226 : vector<8x8x8xf32> to vector<64x8xf32>
    %c2_126 = arith.constant 2 : index
    %c1_127 = arith.constant 1 : index
    %c0_128 = arith.constant 0 : index
    %228 = vector.load %arg13[%c2_126, %c1_127, %c0_128] : memref<10x10x8xf32, #tpu.memory_space<vmem>>, vector<8x8x8xf32>
    %229 = vector.shape_cast %228 : vector<8x8x8xf32> to vector<64x8xf32>
    %c2_129 = arith.constant 2 : index
    %c2_130 = arith.constant 2 : index
    %c0_131 = arith.constant 0 : index
    %230 = vector.load %arg13[%c2_129, %c2_130, %c0_131] : memref<10x10x8xf32, #tpu.memory_space<vmem>>, vector<8x8x8xf32>
    %231 = vector.shape_cast %230 : vector<8x8x8xf32> to vector<64x8xf32>
    %232 = tpu.concatenate %215, %217, %219, %221, %223, %225, %227, %229, %231 in 1 : vector<64x8xf32>, vector<64x8xf32>, vector<64x8xf32>, vector<64x8xf32>, vector<64x8xf32>, vector<64x8xf32>, vector<64x8xf32>, vector<64x8xf32>, vector<64x8xf32> -> vector<64x72xf32>
    %c0_132 = arith.constant 0 : index
    %c0_133 = arith.constant 0 : index
    %233 = vector.load %arg10[%c0_132, %c0_133] : memref<72x8xf32, #tpu.memory_space<vmem>>, vector<72x8xf32>
    %cst_134 = arith.constant dense<0.000000e+00> : vector<64x8xf32>
    %234 = tpu.matmul %232, %233, %cst_134 {dimension_numbers = #tpu.dot_dimension_numbers<[1], [0], [0], [1], [0, 0, 1, 1], [], []>} : vector<64x72xf32>, vector<72x8xf32>, vector<64x8xf32> -> vector<64x8xf32>
    %c0_135 = arith.constant 0 : index
    %c0_136 = arith.constant 0 : index
    %235 = vector.load %arg11[%c0_135, %c0_136] : memref<1x8xf32, #tpu.memory_space<vmem>>, vector<1x8xf32>
    %236 = vector.broadcast %235 : vector<1x8xf32> to vector<64x8xf32>
    %237 = arith.addf %234, %236 : vector<64x8xf32>
    %cst_137 = arith.constant 0.000000e+00 : f32
    %238 = vector.broadcast %cst_137 : f32 to vector<64x8xf32>
    %239 = arith.maximumf %237, %238 : vector<64x8xf32>
    %cst_138 = arith.constant 0.000000e+00 : f32
    %240 = vector.broadcast %cst_138 : f32 to vector<64x8xf32>
    %241 = arith.minimumf %237, %240 : vector<64x8xf32>
    %242 = vector.broadcast %1 : f32 to vector<64x8xf32>
    %243 = arith.mulf %242, %241 : vector<64x8xf32>
    %244 = arith.addf %239, %243 : vector<64x8xf32>
    %245 = tpu.transpose %244, [1, 0] : vector<64x8xf32> -> vector<8x64xf32>
    %c0_139 = arith.constant 0 : index
    %c0_140 = arith.constant 0 : index
    %c0_141 = arith.constant 0 : index
    %246 = vector.load %arg12[%c0_139, %c0_140, %c0_141] : memref<1x8x64xf32, #tpu.memory_space<vmem>>, vector<1x8x64xf32>
    %247 = vector.shape_cast %246 : vector<1x8x64xf32> to vector<8x64xf32>
    %248 = vector.shape_cast %245 : vector<8x64xf32> to vector<1x8x64xf32>
    tpu.vector_store %arg12[%c0_139, %c0_140, %c0_141], %248 {strides = array<i32>} : memref<1x8x64xf32, #tpu.memory_space<vmem>>, vector<1x8x64xf32>,
    return
  }
  func.func @transform_0(%arg0: i32) -> (i32, i32, i32, i32) {
    %c0_i32 = arith.constant 0 : i32
    %c0_i32_0 = arith.constant 0 : i32
    %c0_i32_1 = arith.constant 0 : i32
    %c0_i32_2 = arith.constant 0 : i32
    return %arg0, %c0_i32, %c0_i32_0, %c0_i32_1 : i32, i32, i32, i32
  }
  func.func @transform_1(%arg0: i32) -> (i32, i32) {
    %c0_i32 = arith.constant 0 : i32
    %c0_i32_0 = arith.constant 0 : i32
    %c0_i32_1 = arith.constant 0 : i32
    return %c0_i32, %c0_i32_0 : i32, i32
  }
  func.func @transform_2(%arg0: i32) -> (i32, i32) {
    %c0_i32 = arith.constant 0 : i32
    %c0_i32_0 = arith.constant 0 : i32
    %c0_i32_1 = arith.constant 0 : i32
    return %c0_i32, %c0_i32_0 : i32, i32
  }
  func.func @transform_3(%arg0: i32) -> (i32, i32) {
    %c0_i32 = arith.constant 0 : i32
    %c0_i32_0 = arith.constant 0 : i32
    %c0_i32_1 = arith.constant 0 : i32
    return %c0_i32, %c0_i32_0 : i32, i32
  }
  func.func @transform_4(%arg0: i32) -> (i32, i32) {
    %c0_i32 = arith.constant 0 : i32
    %c0_i32_0 = arith.constant 0 : i32
    %c0_i32_1 = arith.constant 0 : i32
    return %c0_i32, %c0_i32_0 : i32, i32
  }
  func.func @transform_5(%arg0: i32) -> (i32, i32) {
    %c0_i32 = arith.constant 0 : i32
    %c0_i32_0 = arith.constant 0 : i32
    %c0_i32_1 = arith.constant 0 : i32
    return %c0_i32, %c0_i32_0 : i32, i32
  }
  func.func @transform_6(%arg0: i32) -> (i32, i32) {
    %c0_i32 = arith.constant 0 : i32
    %c0_i32_0 = arith.constant 0 : i32
    %c0_i32_1 = arith.constant 0 : i32
    return %c0_i32, %c0_i32_0 : i32, i32
  }
  func.func @transform_7(%arg0: i32) -> (i32, i32) {
    %c0_i32 = arith.constant 0 : i32
    %c0_i32_0 = arith.constant 0 : i32
    %c0_i32_1 = arith.constant 0 : i32
    return %c0_i32, %c0_i32_0 : i32, i32
  }
  func.func @transform_8(%arg0: i32) -> (i32, i32) {
    %c0_i32 = arith.constant 0 : i32
    %c0_i32_0 = arith.constant 0 : i32
    %c0_i32_1 = arith.constant 0 : i32
    return %c0_i32, %c0_i32_0 : i32, i32
  }
  func.func @transform_9(%arg0: i32) -> (i32, i32) {
    %c0_i32 = arith.constant 0 : i32
    %c0_i32_0 = arith.constant 0 : i32
    %c0_i32_1 = arith.constant 0 : i32
    return %c0_i32, %c0_i32_0 : i32, i32
  }
  func.func @transform_10(%arg0: i32) -> (i32, i32) {
    %c0_i32 = arith.constant 0 : i32
    %c0_i32_0 = arith.constant 0 : i32
    %c0_i32_1 = arith.constant 0 : i32
    return %c0_i32, %c0_i32_0 : i32, i32
  }
  func.func @transform_11(%arg0: i32) -> (i32, i32, i32) {
    %c0_i32 = arith.constant 0 : i32
    %c0_i32_0 = arith.constant 0 : i32
    %c0_i32_1 = arith.constant 0 : i32
    return %arg0, %c0_i32, %c0_i32_0 : i32, i32, i32
  }
}

</mosaic_0001>

<bundles_post_ra>
// kernel: self_path_forward.1
= control target key start
LH: loop header
LB: loop body
LE: loop exit
PB: predicated region body
PF: predicated region fallthrough
CT: control target
= control target key end

     0   :  { %s8420_s19 = smov 0   ;;  %s10966_s0 = inlined_call_operand.vmem [shape: f32[2,10,10,8], index: 0, kind: input, shape index: {}]   ;;  %s10967_s1 = inlined_call_operand.vmem [shape: f32[72,8], index: 1, kind: input, shape index: {}]   ;;  %s10968_s2 = inlined_call_operand.vmem [shape: f32[1,8], index: 2, kind: input, shape index: {}]   ;;  %s10969_s3 = inlined_call_operand.<no memory space> [shape: f32[1,1], index: 3, kind: input, shape index: {}]   ;;  %s10970_s4 = inlined_call_operand.vmem [shape: f32[8,1536], index: 4, kind: input, shape index: {}]   ;;  %s10971_s5 = inlined_call_operand.vmem [shape: f32[512,8], index: 5, kind: input, shape index: {}]   ;;  %s10972_s6 = inlined_call_operand.vmem [shape: f32[1,8], index: 6, kind: input, shape index: {}]   ;;  %s10973_s7 = inlined_call_operand.vmem [shape: f32[1,8], index: 7, kind: input, shape index: {}]   ;;  %s10974_s8 = inlined_call_operand.vmem [shape: f32[1,8], index: 8, kind: input, shape index: {}]   ;;  %s10975_s9 = inlined_call_operand.vmem [shape: f32[72,8], index: 9, kind: input, shape index: {}]   ;;  %s10976_s10 = inlined_call_operand.vmem [shape: f32[1,8], index: 10, kind: input, shape index: {}]   ;;  %s10977_s11 = inlined_call_operand.vmem [shape: f32[2,8,64], index: 11, kind: output, shape index: {}]  }
   0x1   :  { %v16_v0 = vstv %s10969_s3 }
   0x2   :  { %17 = vst [vmem:[#allocation3] sm:$0x1] %v16_v0 }
   0x3 LB: > { %s6162_s20 = sadd.s32 4294967295, %s8346_s19   ;;  %p6166_p0 = scmp.ge.s32.totalorder %s8346_s19, 1  ;;  %s8346_s19 = sphi %s8420_s19, %s23_s19  }
   0x4   : > { %p339_p1 = scmp.lt.s32.totalorder %s8346_s19, 3 }
   0x6   : > { %p340_p2 = pnand %p6166_p0, %p339_p1 }
   0x8   : > { %343 = sbr.rel (%p340_p2) target bundleno = 5775 (0x168f), region = 64 }
   0xf   : > { %p378_p3 = scmp.lt.s32.totalorder %s6162_s20, 1  ;;  %s8348_s24 = smov 16   ;;  %v791_v8 = vld [vmem:[%s10967_s1] sm:$0xff]  ;;  %v792_v9 = vld [vmem:[%s10967_s1 + $0x8] sm:$0xff]  ;;  %v793_v10 = vld [vmem:[%s10967_s1 + $0x10] sm:$0xff]  ;;  %vm719_vm0 = vcmask 64512  }
  0x10   : > { %s8349_s25 = smov 8   ;;  %s8350_s26 = smov 24   ;;  %v7390_v11 = vpack.c.bf16 %v792_v9, %v791_v8  ;;  %v794_v12 = vld [vmem:[%s10967_s1 + $0x18] sm:$0xff]  ;;  %v795_v14 = vld [vmem:[%s10967_s1 + $0x20] sm:$0xff]  ;;  %v796_v15 = vld [vmem:[%s10967_s1 + $0x28] sm:$0xff]  ;;  %vm728_vm1 = vcmask 130048  }
  0x11   : > { %s11276_s20 = smov (!%p378_p3, %s6162_s20), 1  ;;  %s11053_s16 = smov 32   ;;  %v7394_v13 = vpack.c.bf16 %v794_v12, %v793_v10  ;;  %v7398_v17 = vpack.c.bf16 %v796_v15, %v795_v14  ;;  %v797_v18 = vld [vmem:[%s10967_s1 + $0x30] sm:$0xff]  ;;  %v798_v19 = vld [vmem:[%s10967_s1 + $0x38] sm:$0xff]  ;;  %v799_v23 = vld [vmem:[%s10967_s1 + $0x40] sm:$0xff]  ;;  %vm737_vm2 = vcmask 195584  }
  0x12   : > { %s7808_s3 = smul.u32 160, %s11276_s20  ;;  %7391 = vmatprep.subr.bf16.mxu0 %v7390_v11  ;;  %s8352_s22 = smov 40   ;;  %v7402_v21 = vpack.c.bf16 %v798_v19, %v797_v18  ;;  %v387_v41 = vld [vmem:[#allocation3] sm:$0x1]  ;;  %vm746_vm3 = vcmask 261120   ;;  %vm755_vm4 = vcmask 326656  }
  0x13   : > { %7393 = vmatpush3.bf16.msra.mxu0 %v7390_v11  ;;  %s8353_s12 = smov 48   ;;  %s8354_s13 = smov 56   ;;  %7809 = vpush %v387_v41  ;;  %vm764_vm5 = vcmask 392192   ;;  %vm773_vm6 = vcmask 457728   ;;  %vm782_vm7 = vcmask 523264   ;;  %vm807_vm8 = vcmask 588800  }
  0x14   : > { %s8434_s23 = scalar_lea.vmem %s10966_s0, %s7808_s3  ;;  %7395 = vmatprep.subr.bf16.mxu0 %v7394_v13  ;;  %s8355_s17 = smov 64   ;;  %vm9068_vm9 = vmpackc.low %vm782_vm7, %vm782_vm7  ;;  %vm5477_vm10 = vcmask 58368  }
  0x15   : > { %v405_v1 = vld [vmem:[%s8434_s23 + $0x2] sm:$0xff]  ;;  %v406_v3 = vld [vmem:[%s8434_s23 + $0x12] sm:$0xff]  ;;  %s11273_s28 = smov 32  }
  0x16   : > { %v397_v2 = vld [vmem:[%s8434_s23 + $0x1] sm:$0xff]  ;;  %503 = vrot.lane.b32.xlu1 %v405_v1, %s8348_s24  ;;  %v398_v4 = vld [vmem:[%s8434_s23 + $0x11] sm:$0xff] }
  0x17   : > { %471 = vrot.lane.b32.xlu0 %v397_v2, %s8349_s25  ;;  %v8445_v5 = vld [vmem:[%s8434_s23 + $0x20] sm:$0xff]  ;;  %v8448_v6 = vld [vmem:[%s8434_s23 + $0x10] sm:$0xff]  ;;  %7397 = vmatpush3.bf16.msra.mxu0 %v7394_v13 }
  0x18   : > { %v6178_v7 = vld [vmem:[%s8434_s23 + $0x21] sm:$0xff]  ;;  %v8485_v20 = vld [vmem:[%s8434_s23 + $0x30] sm:$0xff]  ;;  %7399 = vmatprep.subr.bf16.mxu0 %v7398_v17 }
  0x19   : > { %v6186_v16 = vld [vmem:[%s8434_s23 + $0x22] sm:$0xff]  ;;  %v6202_v22 = vld [vmem:[%s8434_s23 + $0x31] sm:$0xff] }
  0x1a   : > { %505 = vrot.lane.b32.xlu1 %v406_v3, %s8348_s24  ;;  %v6210_v24 = vld [vmem:[%s8434_s23 + $0x32] sm:$0xff]  ;;  %v8505_v25 = vld [vmem:[%s8434_s23 + $0x40] sm:$0xff] }
  0x1b   : > { %473 = vrot.lane.b32.xlu0 %v398_v4, %s8349_s25  ;;  %7401 = vmatpush3.bf16.msra.mxu0 %v7398_v17  ;;  %v6180_v26 = vld [vmem:[%s8434_s23 + $0x41] sm:$0xff]  ;;  %v8518_v28 = vld [vmem:[%s8434_s23 + $0x50] sm:$0xff] }
  0x1c   : > { %7403 = vmatprep.subr.bf16.mxu0 %v7402_v21  ;;  %v6188_v27 = vld [vmem:[%s8434_s23 + $0x42] sm:$0xff]  ;;  %v6204_v29 = vld [vmem:[%s8434_s23 + $0x51] sm:$0xff] }
  0x1d   : > { %v6212_v30 = vld [vmem:[%s8434_s23 + $0x52] sm:$0xff]  ;;  %v8535_v31 = vld [vmem:[%s8434_s23 + $0x60] sm:$0xff] }
  0x1e   : > { %537 = vrot.lane.b32.xlu1 %v8445_v5, %s8350_s26  ;;  %v6182_v32 = vld [vmem:[%s8434_s23 + $0x61] sm:$0xff]  ;;  %v8548_v34 = vld [vmem:[%s8434_s23 + $0x70] sm:$0xff] }
  0x1f   : > { %535 = vrot.lane.b32.xlu0 %v8448_v6, %s8350_s26  ;;  %7405 = vmatpush3.bf16.msra.mxu0 %v7402_v21  ;;  %v6190_v33 = vld [vmem:[%s8434_s23 + $0x62] sm:$0xff]  ;;  %v6206_v35 = vld [vmem:[%s8434_s23 + $0x71] sm:$0xff] }
  0x20   : > { %6898 = vmatprep.subr.mxu0 %v799_v23  ;;  %v6214_v36 = vld [vmem:[%s8434_s23 + $0x72] sm:$0xff]  ;;  %v6176_v37 = vld [vmem:[%s8434_s23 + $0x80] sm:$0xff] }
  0x21   : > { %v6184_v38 = vld [vmem:[%s8434_s23 + $0x81] sm:$0xff]  ;;  %v6200_v40 = vld [vmem:[%s8434_s23 + $0x90] sm:$0xff] }
  0x22   : > { %569 = vrot.lane.b32.xlu1 %v6178_v7, %s11053_s16  ;;  %v6192_v39 = vld [vmem:[%s8434_s23 + $0x82] sm:$0xff]  ;;  %v6208_v44 = vld [vmem:[%s8434_s23 + $0x91] sm:$0xff] }
  0x23   : > { %567 = vrot.lane.b32.xlu0 %v398_v4, %s11053_s16  ;;  %6899 = vmatpush3.msra.mxu0 %v799_v23  ;;  %v6216_v47 = vld [vmem:[%s8434_s23 + $0x92] sm:$0xff]  ;;  %v389_v54 = vld [vmem:[%s8434_s23] sm:$0xff] }
  0x26   : > { %601 = vrot.lane.b32.xlu1 %v6186_v16, %s8352_s22 }
  0x27   : > { %599 = vrot.lane.b32.xlu0 %v406_v3, %s8352_s22 }
  0x2a   : > { %633 = vrot.lane.b32.xlu1 %v8485_v20, %s8353_s12 }
  0x2b   : > { %631 = vrot.lane.b32.xlu0 %v8445_v5, %s8353_s12 }
  0x2e   : > { %665 = vrot.lane.b32.xlu1 %v6202_v22, %s8354_s13 }
  0x2f   : > { %663 = vrot.lane.b32.xlu0 %v6178_v7, %s8354_s13 }
  0x32   : > { %475 = vrot.lane.b32.xlu1 %v6178_v7, %s8349_s25 }
  0x33   : > { %695 = vrot.lane.b32.xlu0 %v6186_v16, %s8355_s17 }
  0x36   : > { %477 = vrot.lane.b32.xlu1 %v6202_v22, %s8349_s25 }
  0x37   : > { %697 = vrot.lane.b32.xlu0 %v6210_v24, %s8355_s17 }
  0x3a   : > { %509 = vrot.lane.b32.xlu1 %v6210_v24, %s8348_s24 }
  0x3b   : > { %507 = vrot.lane.b32.xlu0 %v6186_v16, %s8348_s24 }
  0x3e   : > { %541 = vrot.lane.b32.xlu1 %v8505_v25, %s8350_s26 }
  0x3f   : > { %539 = vrot.lane.b32.xlu0 %v8485_v20, %s8350_s26 }
  0x42   : > { %573 = vrot.lane.b32.xlu1 %v6180_v26, %s11053_s16 }
  0x43   : > { %571 = vrot.lane.b32.xlu0 %v6202_v22, %s11053_s16 }
  0x44   : > { %s7810_s3 = spop %7809 }
  0x46   : > { %605 = vrot.lane.b32.xlu1 %v6188_v27, %s8352_s22 }
  0x47   : > { %603 = vrot.lane.b32.xlu0 %v6210_v24, %s8352_s22 }
  0x4a   : > { %637 = vrot.lane.b32.xlu1 %v8518_v28, %s8353_s12 }
  0x4b   : > { %635 = vrot.lane.b32.xlu0 %v8505_v25, %s8353_s12 }
  0x4e   : > { %669 = vrot.lane.b32.xlu1 %v6204_v29, %s8354_s13 }
  0x4f   : > { %667 = vrot.lane.b32.xlu0 %v6180_v26, %s8354_s13 }
  0x52   : > { %479 = vrot.lane.b32.xlu1 %v6180_v26, %s8349_s25 }
  0x53   : > { %699 = vrot.lane.b32.xlu0 %v6188_v27, %s8355_s17 }
  0x56   : > { %481 = vrot.lane.b32.xlu1 %v6204_v29, %s8349_s25 }
  0x57   : > { %701 = vrot.lane.b32.xlu0 %v6212_v30, %s8355_s17 }
  0x5a   : > { %513 = vrot.lane.b32.xlu1 %v6212_v30, %s8348_s24 }
  0x5b   : > { %511 = vrot.lane.b32.xlu0 %v6188_v27, %s8348_s24 }
  0x5e   : > { %545 = vrot.lane.b32.xlu1 %v8535_v31, %s8350_s26 }
  0x5f   : > { %543 = vrot.lane.b32.xlu0 %v8518_v28, %s8350_s26 }
  0x62   : > { %577 = vrot.lane.b32.xlu1 %v6182_v32, %s11053_s16 }
  0x63   : > { %575 = vrot.lane.b32.xlu0 %v6204_v29, %s11053_s16 }
  0x66   : > { %609 = vrot.lane.b32.xlu1 %v6190_v33, %s8352_s22 }
  0x67   : > { %607 = vrot.lane.b32.xlu0 %v6212_v30, %s8352_s22 }
  0x6a   : > { %641 = vrot.lane.b32.xlu1 %v8548_v34, %s8353_s12 }
  0x6b   : > { %639 = vrot.lane.b32.xlu0 %v8535_v31, %s8353_s12 }
  0x6e   : > { %673 = vrot.lane.b32.xlu1 %v6206_v35, %s8354_s13 }
  0x6f   : > { %671 = vrot.lane.b32.xlu0 %v6182_v32, %s8354_s13 }
  0x72   : > { %483 = vrot.lane.b32.xlu1 %v6182_v32, %s8349_s25 }
  0x73   : > { %703 = vrot.lane.b32.xlu0 %v6190_v33, %s8355_s17 }
  0x76   : > { %485 = vrot.lane.b32.xlu1 %v6206_v35, %s8349_s25 }
  0x77   : > { %705 = vrot.lane.b32.xlu0 %v6214_v36, %s8355_s17 }
  0x7a   : > { %517 = vrot.lane.b32.xlu1 %v6214_v36, %s8348_s24 }
  0x7b   : > { %515 = vrot.lane.b32.xlu0 %v6190_v33, %s8348_s24 }
  0x7e   : > { %549 = vrot.lane.b32.xlu1 %v6176_v37, %s8350_s26 }
  0x7f   : > { %547 = vrot.lane.b32.xlu0 %v8548_v34, %s8350_s26 }
  0x82   : > { %581 = vrot.lane.b32.xlu1 %v6184_v38, %s11053_s16 }
  0x83   : > { %579 = vrot.lane.b32.xlu0 %v6206_v35, %s11053_s16 }
  0x86   : > { %613 = vrot.lane.b32.xlu1 %v6192_v39, %s8352_s22 }
  0x87   : > { %611 = vrot.lane.b32.xlu0 %v6214_v36, %s8352_s22 }
  0x88   : > { %v504_v42 = vpop.permute.xlu1 %503 }
  0x89   : > { %v472_v43 = vpop.permute.xlu0 %471 }
  0x8a   : > { %645 = vrot.lane.b32.xlu1 %v6200_v40, %s8353_s12  ;;  %v720_v55 = vsel %vm719_vm0, %v389_v54, %v472_v43 }
  0x8b   : > { %643 = vrot.lane.b32.xlu0 %v6176_v37, %s8353_s12  ;;  %v729_v58 = vsel %vm728_vm1, %v720_v55, %v504_v42 }
  0x8c   : > { %v506_v45 = vpop.permute.xlu1 %505 }
  0x8d   : > { %v474_v46 = vpop.permute.xlu0 %473 }
  0x8e   : > { %677 = vrot.lane.b32.xlu1 %v6208_v44, %s8354_s13  ;;  %v721_v59 = vsel %vm719_vm0, %v8448_v6, %v474_v46 }
  0x8f   : > { %675 = vrot.lane.b32.xlu0 %v6184_v38, %s8354_s13  ;;  %v730_v1 = vsel %vm728_vm1, %v721_v59, %v506_v45 }
  0x90   : > { %v538_v48 = vpop.permute.xlu1 %537 }
  0x91   : > { %v536_v49 = vpop.permute.xlu0 %535  ;;  %v739_v3 = vsel %vm737_vm2, %v730_v1, %v538_v48 }
  0x92   : > { %709 = vrot.lane.b32.xlu1 %v6216_v47, %s8355_s17  ;;  %v738_v60 = vsel %vm737_vm2, %v729_v58, %v536_v49 }
  0x93   : > { %707 = vrot.lane.b32.xlu0 %v6192_v39, %s8355_s17 }
  0x94   : > { %v570_v50 = vpop.permute.xlu1 %569 }
  0x95   : > { %v568_v51 = vpop.permute.xlu0 %567  ;;  %v748_v8 = vsel %vm746_vm3, %v739_v3, %v570_v50 }
  0x96   : > { %v747_v63 = vsel %vm746_vm3, %v738_v60, %v568_v51 }
  0x98   : > { %v602_v52 = vpop.permute.xlu1 %601 }
  0x99   : > { %v600_v53 = vpop.permute.xlu0 %599  ;;  %v757_v10 = vsel %vm755_vm4, %v748_v8, %v602_v52 }
  0x9a   : > { %v756_v0 = vsel %vm755_vm4, %v747_v63, %v600_v53 }
  0x9c   : > { %v634_v56 = vpop.permute.xlu1 %633 }
  0x9d   : > { %v632_v57 = vpop.permute.xlu0 %631  ;;  %v766_v11 = vsel %vm764_vm5, %v757_v10, %v634_v56 }
  0x9e   : > { %v765_v2 = vsel %vm764_vm5, %v756_v0, %v632_v57 }
  0xa0   : > { %v666_v61 = vpop.permute.xlu1 %665 }
  0xa1   : > { %v664_v62 = vpop.permute.xlu0 %663  ;;  %v775_v12 = vsel %vm773_vm6, %v766_v11, %v666_v61 }
  0xa2   : > { %v774_v4 = vsel %vm773_vm6, %v765_v2, %v664_v62 }
  0xa4   : > { %v476_v6 = vpop.permute.xlu1 %475 }
  0xa5   : > { %v696_v7 = vpop.permute.xlu0 %695  ;;  %v722_v29 = vsel %vm719_vm0, %v8445_v5, %v476_v6 }
  0xa6   : > { %v783_v9 = vsel %vm782_vm7, %v774_v4, %v696_v7 }
  0xa7   : > { %6900 = vmatprep.mubr.msk.f32.mxu0 %vm807_vm8, %v783_v9 }
  0xa8   : > { %v478_v13 = vpop.permute.xlu1 %477 }
  0xa9   : > { %v698_v14 = vpop.permute.xlu0 %697  ;;  %v723_v37 = vsel %vm719_vm0, %v8485_v20, %v478_v13 }
  0xaa   : > { %v784_v15 = vsel %vm782_vm7, %v775_v12, %v698_v14 }
  0xab   : > { %6901 = vmatmul.mubr.msk.f32.vlgmr.msra.gmra.mrb[0].mxu0 %vm807_vm8, %v784_v15 }
  0xac   : > { %v510_v16 = vpop.permute.xlu1 %509 }
  0xad   : > { %v508_v17 = vpop.permute.xlu0 %507  ;;  %v732_v39 = vsel %vm728_vm1, %v723_v37, %v510_v16 }
  0xae   : > { %v731_v30 = vsel %vm728_vm1, %v722_v29, %v508_v17 }
  0xb0   : > { %v542_v18 = vpop.permute.xlu1 %541 }
  0xb1   : > { %v540_v19 = vpop.permute.xlu0 %539  ;;  %v741_v41 = vsel %vm737_vm2, %v732_v39, %v542_v18 }
  0xb2   : > { %v740_v32 = vsel %vm737_vm2, %v731_v30, %v540_v19 }
  0xb4   : > { %v574_v21 = vpop.permute.xlu1 %573 }
  0xb5   : > { %v572_v22 = vpop.permute.xlu0 %571  ;;  %v750_v44 = vsel %vm746_vm3, %v741_v41, %v574_v21 }
  0xb6   : > { %v749_v36 = vsel %vm746_vm3, %v740_v32, %v572_v22 }
  0xb8   : > { %v606_v23 = vpop.permute.xlu1 %605 }
  0xb9   : > { %v604_v24 = vpop.permute.xlu0 %603  ;;  %v759_v46 = vsel %vm755_vm4, %v750_v44, %v606_v23 }
  0xba   : > { %v758_v38 = vsel %vm755_vm4, %v749_v36, %v604_v24 }
  0xbc   : > { %v638_v26 = vpop.permute.xlu1 %637 }
  0xbd   : > { %v636_v27 = vpop.permute.xlu0 %635  ;;  %v768_v20 = vsel %vm764_vm5, %v759_v46, %v638_v26  ;;  %v972_v46 = vld [vmem:[%s10970_s4 + $0x10] sm:$0xff] }
  0xbe   : > { %v767_v40 = vsel %vm764_vm5, %v758_v38, %v636_v27 }
  0xc0   : > { %v670_v33 = vpop.permute.xlu1 %669 }
  0xc1   : > { %v668_v35 = vpop.permute.xlu0 %667  ;;  %v777_v47 = vsel %vm773_vm6, %v768_v20, %v670_v33 }
  0xc2   : > { %v776_v5 = vsel %vm773_vm6, %v767_v40, %v668_v35 }
  0xc4   : > { %v480_v42 = vpop.permute.xlu1 %479 }
  0xc5   : > { %v700_v43 = vpop.permute.xlu0 %699  ;;  %v724_v61 = vsel %vm719_vm0, %v8505_v25, %v480_v42  ;;  %v970_v42 = vld [vmem:[%s10970_s4] sm:$0xff] }
  0xc6   : > { %v785_v45 = vsel %vm782_vm7, %v776_v5, %v700_v43 }
  0xc7   : > { %6903 = vmatprep.mubr.msk.f32.mxu0 %vm807_vm8, %v785_v45  ;;  %v10978_v45 = vmov 0.0  }
  0xc8   : > { %v482_v48 = vpop.permute.xlu1 %481  ;;  %5476 = vst.msk [vmem:[#allocation2] sm:$0xff] %vm719_vm0, %v10978_v45  ;;  %5479 = vst.msk [vmem:[#allocation2 + $0x10] sm:$0xff] %vm719_vm0, %v10978_v45  ;;  %1070 = vmatprep.mubr.f32.mxu1 %v10978_v45 }
  0xc9   : > { %v702_v49 = vpop.permute.xlu0 %701  ;;  %v725_v3 = vsel %vm719_vm0, %v8518_v28, %v482_v48  ;;  %5481 = vst.msk [vmem:[#allocation2 + $0x20] sm:$0xff] %vm719_vm0, %v10978_v45  ;;  %5483 = vst.msk [vmem:[#allocation2 + $0x30] sm:$0xff] %vm719_vm0, %v10978_v45 }
  0xca   : > { %v786_v50 = vsel %vm782_vm7, %v777_v47, %v702_v49  ;;  %5485 = vst.msk [vmem:[#allocation2 + $0x40] sm:$0xff] %vm719_vm0, %v10978_v45  ;;  %5487 = vst.msk [vmem:[#allocation2 + $0x50] sm:$0xff] %vm719_vm0, %v10978_v45 }
  0xcb   : > { %6904 = vmatmul.mubr.msk.f32.gmra.mrb[2].mxu0 %vm807_vm8, %v786_v50  ;;  %5489 = vst.msk [vmem:[#allocation2 + $0x60] sm:$0xff] %vm719_vm0, %v10978_v45  ;;  %5491 = vst.msk [vmem:[#allocation2 + $0x70] sm:$0xff] %vm719_vm0, %v10978_v45 }
  0xcc   : > { %v514_v51 = vpop.permute.xlu1 %513  ;;  %5493 = vst.msk [vmem:[#allocation2 + $0x80] sm:$0xff] %vm719_vm0, %v10978_v45  ;;  %5495 = vst.msk [vmem:[#allocation2 + $0x90] sm:$0xff] %vm719_vm0, %v10978_v45 }
  0xcd   : > { %v512_v52 = vpop.permute.xlu0 %511  ;;  %v734_v6 = vsel %vm728_vm1, %v725_v3, %v514_v51  ;;  %v976_v3 = vld [vmem:[%s10970_s4 + $0x30] sm:$0xff] }
  0xce   : > { %v733_v62 = vsel %vm728_vm1, %v724_v61, %v512_v52 }
  0xd0   : > { %v546_v53 = vpop.permute.xlu1 %545 }
  0xd1   : > { %v544_v54 = vpop.permute.xlu0 %543  ;;  %v743_v8 = vsel %vm737_vm2, %v734_v6, %v546_v53  ;;  %v975_v6 = vld [vmem:[%s10970_s4 + $0x28] sm:$0xff] }
  0xd2   : > { %v742_v63 = vsel %vm737_vm2, %v733_v62, %v544_v54  ;;  %v977_v54 = vld [vmem:[%s10970_s4 + $0x38] sm:$0xff] }
  0xd4   : > { %v578_v55 = vpop.permute.xlu1 %577 }
  0xd5   : > { %v576_v56 = vpop.permute.xlu0 %575  ;;  %v752_v11 = vsel %vm746_vm3, %v743_v8, %v578_v55  ;;  %v8703_v55 = vld [vmem:[%s10968_s2] ss:$0 sm:$0xff] }
  0xd6   : > { %v751_v2 = vsel %vm746_vm3, %v742_v63, %v576_v56 }
  0xd8   : > { %v610_v57 = vpop.permute.xlu1 %609 }
  0xd9   : > { %v608_v58 = vpop.permute.xlu0 %607  ;;  %v761_v13 = vsel %vm755_vm4, %v752_v11, %v610_v57 }
  0xda   : > { %v760_v4 = vsel %vm755_vm4, %v751_v2, %v608_v58 }
  0xdc   : > { %v642_v59 = vpop.permute.xlu1 %641 }
  0xdd   : > { %v640_v60 = vpop.permute.xlu0 %639  ;;  %v770_v28 = vsel %vm764_vm5, %v761_v13, %v642_v59 }
  0xde   : > { %v769_v7 = vsel %vm764_vm5, %v760_v4, %v640_v60  ;;  %v8707_v60 = vstv %s7810_s3 }
  0xdf   : > { %11055 = vst [vmem:[#allocation4_spill] sm:$0xff] %v8707_v60 }
  0xe0   : > { %v674_v0 = vpop.permute.xlu1 %673 }
  0xe1   : > { %v672_v1 = vpop.permute.xlu0 %671  ;;  %v779_v14 = vsel %vm773_vm6, %v770_v28, %v674_v0 }
  0xe2   : > { %v778_v25 = vsel %vm773_vm6, %v769_v7, %v672_v1  ;;  %v981_v7 = vld [vmem:[%s10970_s4 + $0x58] sm:$0xff] }
  0xe4   : > { %v484_v9 = vpop.permute.xlu1 %483 }
  0xe5   : > { %v704_v10 = vpop.permute.xlu0 %703  ;;  %v726_v32 = vsel %vm719_vm0, %v8535_v31, %v484_v9  ;;  %v971_v31 = vld [vmem:[%s10970_s4 + $0x8] sm:$0xff] }
  0xe6   : > { %v787_v12 = vsel %vm782_vm7, %v778_v25, %v704_v10  ;;  %1006 = vmatprep.subr.mxu1 %v971_v31 }
  0xe7   : > { %6906 = vmatprep.mubr.msk.f32.mxu0 %vm807_vm8, %v787_v12  ;;  %1007 = vmatpush1.msra.mxu1 %v970_v42 }
  0xe8   : > { %v486_v15 = vpop.permute.xlu1 %485 }
  0xe9   : > { %v706_v16 = vpop.permute.xlu0 %705  ;;  %v727_v33 = vsel %vm719_vm0, %v8548_v34, %v486_v15  ;;  %v973_v34 = vld [vmem:[%s10970_s4 + $0x18] sm:$0xff] }
  0xea   : > { %v788_v17 = vsel %vm782_vm7, %v779_v14, %v706_v16  ;;  %1119 = vmatprep.subr.mxu0 %v973_v34  ;;  %7806 = vmatprep.subr.mxu1 %v973_v34 }
  0xeb   : > { %6907 = vmatmul.mubr.msk.f32.gmra.mrb[4].mxu0 %vm807_vm8, %v788_v17 }
  0xec   : > { %v518_v18 = vpop.permute.xlu1 %517  ;;  %1120 = vmatpush1.msra.mxu0 %v972_v46 }
  0xed   : > { %v516_v19 = vpop.permute.xlu0 %515  ;;  %v736_v35 = vsel %vm728_vm1, %v727_v33, %v518_v18  ;;  %1345 = vmatprep.subr.mxu0 %v977_v54 }
  0xee   : > { %v735_v36 = vsel %vm728_vm1, %v726_v32, %v516_v19 }
  0xf0   : > { %v550_v21 = vpop.permute.xlu1 %549 }
  0xf1   : > { %v548_v22 = vpop.permute.xlu0 %547  ;;  %v745_v37 = vsel %vm737_vm2, %v736_v35, %v550_v21 }
  0xf2   : > { %v744_v38 = vsel %vm737_vm2, %v735_v36, %v548_v22  ;;  %v980_v36 = vld [vmem:[%s10970_s4 + $0x50] sm:$0xff] }
  0xf4   : > { %v582_v23 = vpop.permute.xlu1 %581 }
  0xf5   : > { %v580_v24 = vpop.permute.xlu0 %579  ;;  %v754_v41 = vsel %vm746_vm3, %v745_v37, %v582_v23 }
  0xf6   : > { %v753_v5 = vsel %vm746_vm3, %v744_v38, %v580_v24 }
  0xf8   : > { %v614_v26 = vpop.permute.xlu1 %613 }
  0xf9   : > { %v612_v27 = vpop.permute.xlu0 %611  ;;  %v763_v43 = vsel %vm755_vm4, %v754_v41, %v614_v26 }
  0xfa   : > { %v762_v44 = vsel %vm755_vm4, %v753_v5, %v612_v27 }
  0xfc   : > { %v646_v29 = vpop.permute.xlu1 %645 }
  0xfd   : > { %v644_v30 = vpop.permute.xlu0 %643  ;;  %v772_v20 = vsel %vm764_vm5, %v763_v43, %v646_v29 }
  0xfe   : > { %v771_v47 = vsel %vm764_vm5, %v762_v44, %v644_v30 }
 0x100   : > { %v678_v39 = vpop.permute.xlu1 %677 }
 0x101   : > { %v676_v40 = vpop.permute.xlu0 %675  ;;  %v781_v48 = vsel %vm773_vm6, %v772_v20, %v678_v39  ;;  %v974_v20 = vld [vmem:[%s10970_s4 + $0x20] sm:$0xff] }
 0x102   : > { %v780_v49 = vsel %vm773_vm6, %v771_v47, %v676_v40  ;;  %v979_v47 = vld [vmem:[%s10970_s4 + $0x48] sm:$0xff] }
 0x104   : > { %v710_v50 = vpop.permute.xlu1 %709 }
 0x105   : > { %v708_v51 = vpop.permute.xlu0 %707  ;;  %v790_v52 = vsel %vm782_vm7, %v781_v48, %v710_v50  ;;  %v978_v48 = vld [vmem:[%s10970_s4 + $0x40] sm:$0xff] }
 0x106   : > { %v789_v53 = vsel %vm782_vm7, %v780_v49, %v708_v51 }
 0x107   : > { %6909 = vmatprep.mubr.msk.f32.mxu0 %vm807_vm8, %v789_v53 }
 0x108   : > { %6910 = vmatmul.mubr.msk.f32.gmra.mrb[6].mxu0 %vm807_vm8, %v790_v52 }
 0x109   : > { %1183 = vmatprep.mubr.f32.mxu0 %v10978_v45 }
 0x17e   : > { %v6902_v56 = vpop.f32.mrb[0].mxu0 }
 0x17f   : > { %v904_v57 = vadd.f32 %v6902_v56, %v8703_v55  ;;  %v898_v58 = vpop.f32.mrb[1].mxu0 }
 0x180   : > { %v899_v59 = vadd.f32 %v8703_v55, %v898_v58 }
 0x181   : > { %v946_v61 = vmin.f32 %v904_v57, 0.0  ;;  %v938_v4 = vmax.f32 %v904_v57, 0.0 }
 0x182   : > { %v945_v62 = vmin.f32 %v899_v59, 0.0  ;;  %v937_v63 = vmax.f32 %v899_v59, 0.0 }
 0x183   : > { %v955_v2 = vmul.f32 %v8707_v60, %v946_v61 }
 0x184   : > { %v954_v0 = vmul.f32 %v8707_v60, %v945_v62 }
 0x185   : > { %v8728_v8 = vadd.f32 %v955_v2, %v938_v4 }
 0x186   : > { %v8710_v1 = vadd.f32 %v954_v0, %v937_v63 }
 0x188   : > { %6226 = vmatmul.mubr.msk.f32.vlgmr.msra.gmra.mrb[0].mxu1 %vm719_vm0, %v8710_v1  ;;  %6234 = vmatmul.mubr.msk.f32.vlgmr.msra.gmra.mrb[8].mxu0 %vm719_vm0, %v8710_v1 }
 0x189   : > { %1076 = vmatprep.mubr.f32.mxu1 %v10978_v45  ;;  %1189 = vmatprep.mubr.f32.mxu0 %v10978_v45 }
 0x18a   : > { %7807 = vmatpush1.msra.mxu1 %v972_v46  ;;  %1346 = vmatpush1.msra.mxu0 %v976_v3 }
 0x18b   : > { %1232 = vmatprep.subr.mxu1 %v975_v6  ;;  %1571 = vmatprep.subr.mxu0 %v981_v7 }
 0x18c   : > { %6227 = vmatmul.mubr.msk.f32.gmra.mrb[2].mxu1 %vm719_vm0, %v8728_v8  ;;  %6235 = vmatmul.mubr.msk.f32.gmra.mrb[10].mxu0 %vm719_vm0, %v8728_v8 }
 0x18d   : > { %1082 = vmatprep.mubr.f32.mxu1 %v10978_v45  ;;  %1195 = vmatprep.mubr.f32.mxu0 %v10978_v45 }
 0x19e   : > { %v6905_v25 = vpop.f32.mrb[2].mxu0 }
 0x19f   : > { %v914_v9 = vadd.f32 %v6905_v25, %v8703_v55  ;;  %v908_v10 = vpop.f32.mrb[3].mxu0 }
 0x1a0   : > { %v909_v11 = vadd.f32 %v8703_v55, %v908_v10 }
 0x1a1   : > { %v948_v12 = vmin.f32 %v914_v9, 0.0  ;;  %v940_v17 = vmax.f32 %v914_v9, 0.0 }
 0x1a2   : > { %v947_v13 = vmin.f32 %v909_v11, 0.0  ;;  %v939_v28 = vmax.f32 %v909_v11, 0.0 }
 0x1a3   : > { %v957_v15 = vmul.f32 %v8707_v60, %v948_v12 }
 0x1a4   : > { %v956_v14 = vmul.f32 %v8707_v60, %v947_v13 }
 0x1a5   : > { %v8748_v18 = vadd.f32 %v957_v15, %v940_v17 }
 0x1a6   : > { %v8740_v16 = vadd.f32 %v956_v14, %v939_v28 }
 0x1a8   : > { %6228 = vmatmul.mubr.msk.f32.gmra.mrb[4].mxu1 %vm719_vm0, %v8740_v16  ;;  %6236 = vmatmul.mubr.msk.f32.gmra.mrb[12].mxu0 %vm719_vm0, %v8740_v16 }
 0x1a9   : > { %1088 = vmatprep.mubr.f32.mxu1 %v10978_v45  ;;  %1201 = vmatprep.mubr.f32.mxu0 %v10978_v45 }
 0x1ac   : > { %6229 = vmatmul.mubr.msk.f32.gmra.mrb[6].mxu1 %vm719_vm0, %v8748_v18  ;;  %6237 = vmatmul.mubr.msk.f32.gmra.mrb[14].mxu0 %vm719_vm0, %v8748_v18 }
 0x1ad   : > { %1094 = vmatprep.mubr.f32.mxu1 %v10978_v45  ;;  %1207 = vmatprep.mubr.f32.mxu0 %v10978_v45 }
 0x1be   : > { %v6908_v19 = vpop.f32.mrb[4].mxu0 }
 0x1bf   : > { %v924_v21 = vadd.f32 %v6908_v19, %v8703_v55  ;;  %v918_v22 = vpop.f32.mrb[5].mxu0 }
 0x1c0   : > { %v919_v23 = vadd.f32 %v8703_v55, %v918_v22 }
 0x1c1   : > { %v950_v24 = vmin.f32 %v924_v21, 0.0  ;;  %v942_v33 = vmax.f32 %v924_v21, 0.0 }
 0x1c2   : > { %v949_v26 = vmin.f32 %v919_v23, 0.0  ;;  %v941_v27 = vmax.f32 %v919_v23, 0.0 }
 0x1c3   : > { %v959_v30 = vmul.f32 %v8707_v60, %v950_v24 }
 0x1c4   : > { %v958_v29 = vmul.f32 %v8707_v60, %v949_v26 }
 0x1c5   : > { %v8768_v35 = vadd.f32 %v959_v30, %v942_v33 }
 0x1c6   : > { %v8760_v32 = vadd.f32 %v958_v29, %v941_v27 }
 0x1c8   : > { %6230 = vmatmul.mubr.msk.f32.gmra.mrb[8].mxu1 %vm719_vm0, %v8760_v32  ;;  %6238 = vmatmul.mubr.msk.f32.gmra.mrb[16].mxu0 %vm719_vm0, %v8760_v32 }
 0x1c9   : > { %1100 = vmatprep.mubr.f32.mxu1 %v10978_v45  ;;  %1213 = vmatprep.mubr.f32.mxu0 %v10978_v45 }
 0x1cc   : > { %6231 = vmatmul.mubr.msk.f32.gmra.mrb[10].mxu1 %vm719_vm0, %v8768_v35  ;;  %6239 = vmatmul.mubr.msk.f32.gmra.mrb[18].mxu0 %vm719_vm0, %v8768_v35 }
 0x1cd   : > { %1409 = vmatprep.mubr.f32.mxu0 %v10978_v45  ;;  %1106 = vmatprep.mubr.f32.mxu1 %v10978_v45 }
 0x1d0   : > { %6250 = vmatmul.mubr.msk.f32.vlgmr.msra.gmra.mrb[20].mxu0 %vm719_vm0, %v8710_v1 }
 0x1d1   : > { %1415 = vmatprep.mubr.f32.mxu0 %v10978_v45  ;;  %1572 = vmatpush1.msra.mxu0 %v980_v36 }
 0x1d4   : > { %6251 = vmatmul.mubr.msk.f32.gmra.mrb[22].mxu0 %vm719_vm0, %v8728_v8 }
 0x1d5   : > { %1421 = vmatprep.mubr.f32.mxu0 %v10978_v45 }
 0x1d8   : > { %6252 = vmatmul.mubr.msk.f32.gmra.mrb[24].mxu0 %vm719_vm0, %v8740_v16 }
 0x1d9   : > { %1427 = vmatprep.mubr.f32.mxu0 %v10978_v45 }
 0x1db   : > { %v6911_v37 = vpop.f32.mrb[6].mxu0 }
 0x1dc   : > { %v934_v38 = vadd.f32 %v6911_v37, %v8703_v55  ;;  %v928_v39 = vpop.f32.mrb[7].mxu0  ;;  %6253 = vmatmul.mubr.msk.f32.gmra.mrb[26].mxu0 %vm719_vm0, %v8748_v18 }
 0x1dd   : > { %v929_v40 = vadd.f32 %v8703_v55, %v928_v39  ;;  %1433 = vmatprep.mubr.f32.mxu0 %v10978_v45 }
 0x1de   : > { %v952_v41 = vmin.f32 %v934_v38, 0.0  ;;  %v944_v44 = vmax.f32 %v934_v38, 0.0 }
 0x1df   : > { %v951_v5 = vmin.f32 %v929_v40, 0.0  ;;  %v943_v31 = vmax.f32 %v929_v40, 0.0 }
 0x1e0   : > { %6254 = vmatmul.mubr.msk.f32.gmra.mrb[28].mxu0 %vm719_vm0, %v8760_v32  ;;  %v961_v42 = vmul.f32 %v8707_v60, %v952_v41 }
 0x1e1   : > { %v960_v34 = vmul.f32 %v8707_v60, %v951_v5  ;;  %1439 = vmatprep.mubr.f32.mxu0 %v10978_v45 }
 0x1e2   : > { %v969_v46 = vadd.f32 %v961_v42, %v944_v44 }
 0x1e3   : > { %v8798_v43 = vadd.f32 %v960_v34, %v943_v31 }
 0x1e4   : > { %6255 = vmatmul.mubr.msk.f32.gmra.mrb[30].mxu0 %vm719_vm0, %v8768_v35 }
 0x1e5   : > { %6232 = vmatmul.mubr.msk.f32.gmra.mrb[12].mxu1 %vm719_vm0, %v8798_v43  ;;  %1445 = vmatprep.mubr.f32.mxu0 %v10978_v45 }
 0x1e6   : > { %1112 = vmatprep.mubr.f32.mxu1 %v10978_v45 }
 0x1e8   : > { %6256 = vmatmul.mubr.msk.f32.gmra.mrb[32].mxu0 %vm719_vm0, %v8798_v43 }
 0x1e9   : > { %6233 = vmatmul.mubr.msk.f32.gmra.mrb[14].mxu1 %vm719_vm0, %v969_v46  ;;  %1451 = vmatprep.mubr.f32.mxu0 %v10978_v45 }
 0x1ea   : > { %1219 = vmatprep.mubr.f32.mxu1 %v10978_v45 }
 0x1ec   : > { %6257 = vmatmul.mubr.msk.f32.gmra.mrb[34].mxu0 %vm719_vm0, %v969_v46 }
 0x1ed   : > { %6240 = vmatmul.mubr.msk.f32.vlgmr.msra.gmra.mrb[16].mxu1 %vm719_vm0, %v8798_v43  ;;  %1635 = vmatprep.mubr.f32.mxu0 %v10978_v45 }
 0x1ee   : > { %1233 = vmatpush1.msra.mxu1 %v974_v20  ;;  %1225 = vmatprep.mubr.f32.mxu1 %v10978_v45 }
 0x1ef   : > { %1458 = vmatprep.subr.mxu1 %v979_v47 }
 0x1f0   : > { %6266 = vmatmul.mubr.msk.f32.vlgmr.msra.gmra.mrb[36].mxu0 %vm719_vm0, %v8710_v1 }
 0x1f1   : > { %6241 = vmatmul.mubr.msk.f32.gmra.mrb[18].mxu1 %vm719_vm0, %v969_v46  ;;  %1641 = vmatprep.mubr.f32.mxu0 %v10978_v45 }
 0x1f2   : > { %1296 = vmatprep.mubr.f32.mxu1 %v10978_v45 }
 0x1f4   : > { %6267 = vmatmul.mubr.msk.f32.gmra.mrb[38].mxu0 %vm719_vm0, %v8728_v8 }
 0x1f5   : > { %6242 = vmatmul.mubr.msk.f32.vlgmr.msra.gmra.mrb[20].mxu1 %vm719_vm0, %v8710_v1  ;;  %1647 = vmatprep.mubr.f32.mxu0 %v10978_v45 }
 0x1f6   : > { %1302 = vmatprep.mubr.f32.mxu1 %v10978_v45  ;;  %1459 = vmatpush1.msra.mxu1 %v978_v48 }
 0x1f8   : > { %6268 = vmatmul.mubr.msk.f32.gmra.mrb[40].mxu0 %vm719_vm0, %v8740_v16 }
 0x1f9   : > { %6243 = vmatmul.mubr.msk.f32.gmra.mrb[22].mxu1 %vm719_vm0, %v8728_v8  ;;  %1653 = vmatprep.mubr.f32.mxu0 %v10978_v45 }
 0x1fa   : > { %1308 = vmatprep.mubr.f32.mxu1 %v10978_v45 }
 0x1fc   : > { %6269 = vmatmul.mubr.msk.f32.gmra.mrb[42].mxu0 %vm719_vm0, %v8748_v18 }
 0x1fd   : > { %6244 = vmatmul.mubr.msk.f32.gmra.mrb[24].mxu1 %vm719_vm0, %v8740_v16  ;;  %1659 = vmatprep.mubr.f32.mxu0 %v10978_v45 }
 0x1fe   : > { %1314 = vmatprep.mubr.f32.mxu1 %v10978_v45 }
 0x200   : > { %6270 = vmatmul.mubr.msk.f32.gmra.mrb[44].mxu0 %vm719_vm0, %v8760_v32 }
 0x201   : > { %6245 = vmatmul.mubr.msk.f32.gmra.mrb[26].mxu1 %vm719_vm0, %v8748_v18  ;;  %1665 = vmatprep.mubr.f32.mxu0 %v10978_v45 }
 0x202   : > { %1320 = vmatprep.mubr.f32.mxu1 %v10978_v45 }
 0x204   : > { %6271 = vmatmul.mubr.msk.f32.gmra.mrb[46].mxu0 %vm719_vm0, %v8768_v35 }
 0x205   : > { %6246 = vmatmul.mubr.msk.f32.gmra.mrb[28].mxu1 %vm719_vm0, %v8760_v32  ;;  %1671 = vmatprep.mubr.f32.mxu0 %v10978_v45 }
 0x206   : > { %1326 = vmatprep.mubr.f32.mxu1 %v10978_v45 }
 0x208   : > { %6272 = vmatmul.mubr.msk.f32.gmra.mrb[48].mxu0 %vm719_vm0, %v8798_v43 }
 0x209   : > { %6247 = vmatmul.mubr.msk.f32.gmra.mrb[30].mxu1 %vm719_vm0, %v8768_v35  ;;  %1677 = vmatprep.mubr.f32.mxu0 %v10978_v45 }
 0x20a   : > { %1332 = vmatprep.mubr.f32.mxu1 %v10978_v45 }
 0x20c   : > { %6273 = vmatmul.mubr.msk.f32.gmra.mrb[50].mxu0 %vm719_vm0, %v969_v46 }
 0x20d   : > { %6248 = vmatmul.mubr.msk.f32.gmra.mrb[32].mxu1 %vm719_vm0, %v8798_v43 }
 0x20e   : > { %1338 = vmatprep.mubr.f32.mxu1 %v10978_v45 }
 0x211   : > { %6249 = vmatmul.mubr.msk.f32.gmra.mrb[34].mxu1 %vm719_vm0, %v969_v46 }
 0x212   : > { %1522 = vmatprep.mubr.f32.mxu1 %v10978_v45 }
 0x215   : > { %6258 = vmatmul.mubr.msk.f32.vlgmr.msra.gmra.mrb[36].mxu1 %vm719_vm0, %v8710_v1 }
 0x216   : > { %1528 = vmatprep.mubr.f32.mxu1 %v10978_v45 }
 0x219   : > { %6259 = vmatmul.mubr.msk.f32.gmra.mrb[38].mxu1 %vm719_vm0, %v8728_v8 }
 0x21a   : > { %1534 = vmatprep.mubr.f32.mxu1 %v10978_v45 }
 0x21d   : > { %6260 = vmatmul.mubr.msk.f32.gmra.mrb[40].mxu1 %vm719_vm0, %v8740_v16 }
 0x21e   : > { %1540 = vmatprep.mubr.f32.mxu1 %v10978_v45 }
 0x221   : > { %6261 = vmatmul.mubr.msk.f32.gmra.mrb[42].mxu1 %vm719_vm0, %v8748_v18 }
 0x222   : > { %1546 = vmatprep.mubr.f32.mxu1 %v10978_v45 }
 0x225   : > { %6262 = vmatmul.mubr.msk.f32.gmra.mrb[44].mxu1 %vm719_vm0, %v8760_v32 }
 0x226   : > { %1552 = vmatprep.mubr.f32.mxu1 %v10978_v45 }
 0x229   : > { %6263 = vmatmul.mubr.msk.f32.gmra.mrb[46].mxu1 %vm719_vm0, %v8768_v35 }
 0x22a   : > { %1558 = vmatprep.mubr.f32.mxu1 %v10978_v45 }
 0x22d   : > { %6264 = vmatmul.mubr.msk.f32.gmra.mrb[48].mxu1 %vm719_vm0, %v8798_v43 }
 0x22e   : > { %1564 = vmatprep.mubr.f32.mxu1 %v10978_v45 }
 0x231   : > { %6265 = vmatmul.mubr.msk.f32.gmra.mrb[50].mxu1 %vm719_vm0, %v969_v46 }
 0x25b   : > { %v8894_v49 = vpop.f32.mrb[0].mxu1  ;;  %v8896_v50 = vpop.f32.mrb[8].mxu0 }
 0x25c   : > { %11056 = vst [vmem:[#allocation5_spill] sm:$0xff] %v8896_v50  ;;  %v8898_v51 = vpop.f32.mrb[1].mxu1  ;;  %v8900_v52 = vpop.f32.mrb[9].mxu0  ;;  %6928 = vmatprep.mubr.msk.f32.mxu1 %vm782_vm7, %v8894_v49 }
 0x25d   : > { %11057 = vst [vmem:[#allocation6_spill] sm:$0xff] %v8900_v52 }
 0x25f   : > { %v8904_v53 = vpop.f32.mrb[2].mxu1  ;;  %v8906_v54 = vpop.f32.mrb[10].mxu0 }
 0x260   : > { %11058 = vst [vmem:[#allocation7_spill] sm:$0xff] %v8906_v54  ;;  %v8908_v55 = vpop.f32.mrb[3].mxu1  ;;  %v8910_v56 = vpop.f32.mrb[11].mxu0 }
 0x261   : > { %11059 = vst [vmem:[#allocation8_spill] sm:$0xff] %v8910_v56 }
 0x27b   : > { %v8912_v57 = vpop.f32.mrb[4].mxu1  ;;  %v8914_v58 = vpop.f32.mrb[12].mxu0 }
 0x27c   : > { %11060 = vst [vmem:[#allocation9_spill] sm:$0xff] %v8914_v58  ;;  %v8916_v59 = vpop.f32.mrb[5].mxu1  ;;  %v8918_v61 = vpop.f32.mrb[13].mxu0 }
 0x27d   : > { %11061 = vst [vmem:[#allocation10_spill] sm:$0xff] %v8918_v61 }
 0x27f   : > { %v8920_v62 = vpop.f32.mrb[6].mxu1  ;;  %v8922_v63 = vpop.f32.mrb[14].mxu0 }
 0x280   : > { %11062 = vst [vmem:[#allocation11_spill] sm:$0xff] %v8922_v63  ;;  %v8924_v0 = vpop.f32.mrb[7].mxu1  ;;  %v8926_v1 = vpop.f32.mrb[15].mxu0 }
 0x281   : > { %11063 = vst [vmem:[#allocation12_spill] sm:$0xff] %v8926_v1 }
 0x29b   : > { %v8928_v2 = vpop.f32.mrb[8].mxu1  ;;  %v8930_v3 = vpop.f32.mrb[16].mxu0 }
 0x29c   : > { %11064 = vst [vmem:[#allocation13_spill] sm:$0xff] %v8930_v3  ;;  %v8932_v4 = vpop.f32.mrb[9].mxu1  ;;  %v8934_v6 = vpop.f32.mrb[17].mxu0 }
 0x29d   : > { %11065 = vst [vmem:[#allocation14_spill] sm:$0xff] %v8934_v6 }
 0x29f   : > { %v8936_v7 = vpop.f32.mrb[10].mxu1  ;;  %v8938_v8 = vpop.f32.mrb[18].mxu0 }
 0x2a0   : > { %11066 = vst [vmem:[#allocation15_spill] sm:$0xff] %v8938_v8  ;;  %v8940_v25 = vpop.f32.mrb[11].mxu1  ;;  %v8942_v9 = vpop.f32.mrb[19].mxu0 }
 0x2a1   : > { %11067 = vst [vmem:[#allocation16_spill] sm:$0xff] %v8942_v9 }
 0x2a3   : > { %v8944_v10 = vpop.f32.mrb[20].mxu0 }
 0x2a4   : > { %11068 = vst [vmem:[#allocation17_spill] sm:$0xff] %v8944_v10  ;;  %v8946_v11 = vpop.f32.mrb[21].mxu0 }
 0x2a5   : > { %11069 = vst [vmem:[#allocation18_spill] sm:$0xff] %v8946_v11 }
 0x2a7   : > { %v8948_v12 = vpop.f32.mrb[22].mxu0 }
 0x2a8   : > { %11070 = vst [vmem:[#allocation19_spill] sm:$0xff] %v8948_v12  ;;  %v8954_v28 = vpack.c.bf16 %v8948_v12, %v8944_v10  ;;  %v8956_v14 = vpop.f32.mrb[23].mxu0 }
 0x2a9   : > { %11072 = vst [vmem:[#allocation21_spill] sm:$0xff] %v8956_v14  ;;  %v8962_v16 = vpack.c.bf16 %v8956_v14, %v8946_v11 }
 0x2aa   : > { %11071 = vst [vmem:[#allocation20_spill] sm:$0xff] %v8954_v28 }
 0x2ab   : > { %11073 = vst [vmem:[#allocation22_spill] sm:$0xff] %v8962_v16  ;;  %v8964_v17 = vpop.f32.mrb[24].mxu0 }
 0x2ac   : > { %11074 = vst [vmem:[#allocation23_spill] sm:$0xff] %v8964_v17  ;;  %v8966_v18 = vpop.f32.mrb[25].mxu0 }
 0x2ad   : > { %11075 = vst [vmem:[#allocation24_spill] sm:$0xff] %v8966_v18 }
 0x2af   : > { %v8968_v19 = vpop.f32.mrb[26].mxu0 }
 0x2b0   : > { %11076 = vst [vmem:[#allocation25_spill] sm:$0xff] %v8968_v19  ;;  %v8974_v22 = vpack.c.bf16 %v8968_v19, %v8964_v17  ;;  %v8976_v23 = vpop.f32.mrb[27].mxu0 }
 0x2b1   : > { %11078 = vst [vmem:[#allocation27_spill] sm:$0xff] %v8976_v23  ;;  %v8982_v26 = vpack.c.bf16 %v8976_v23, %v8966_v18 }
 0x2b2   : > { %11077 = vst [vmem:[#allocation26_spill] sm:$0xff] %v8974_v22 }
 0x2b3   : > { %11079 = vst [vmem:[#allocation28_spill] sm:$0xff] %v8982_v26  ;;  %v8984_v27 = vpop.f32.mrb[28].mxu0 }
 0x2b4   : > { %11080 = vst [vmem:[#allocation29_spill] sm:$0xff] %v8984_v27  ;;  %v8986_v29 = vpop.f32.mrb[29].mxu0 }
 0x2b5   : > { %11081 = vst [vmem:[#allocation30_spill] sm:$0xff] %v8986_v29 }
 0x2b7   : > { %v8988_v30 = vpop.f32.mrb[30].mxu0 }
 0x2b8   : > { %11082 = vst [vmem:[#allocation31_spill] sm:$0xff] %v8988_v30  ;;  %v8994_v33 = vpack.c.bf16 %v8988_v30, %v8984_v27  ;;  %v8996_v35 = vpop.f32.mrb[12].mxu1  ;;  %v8998_v36 = vpop.f32.mrb[31].mxu0 }
 0x2b9   : > { %11084 = vst [vmem:[#allocation33_spill] sm:$0xff] %v8998_v36  ;;  %v9004_v38 = vpack.c.bf16 %v8998_v36, %v8986_v29  ;;  %v9006_v39 = vpop.f32.mrb[13].mxu1 }
 0x2ba   : > { %11083 = vst [vmem:[#allocation32_spill] sm:$0xff] %v8994_v33 }
 0x2bb   : > { %11085 = vst [vmem:[#allocation34_spill] sm:$0xff] %v9004_v38  ;;  %v9008_v40 = vpop.f32.mrb[32].mxu0 }
 0x2bc   : > { %11086 = vst [vmem:[#allocation35_spill] sm:$0xff] %v9008_v40  ;;  %v9010_v41 = vpop.f32.mrb[14].mxu1  ;;  %v9012_v5 = vpop.f32.mrb[33].mxu0 }
 0x2bd   : > { %11087 = vst [vmem:[#allocation36_spill] sm:$0xff] %v9012_v5  ;;  %v9014_v31 = vpop.f32.mrb[15].mxu1 }
 0x2bf   : > { %v9016_v34 = vpop.f32.mrb[34].mxu0 }
 0x2c0   : > { %11088 = vst [vmem:[#allocation37_spill] sm:$0xff] %v9016_v34  ;;  %v9022_v43 = vpack.c.bf16 %v9016_v34, %v9008_v40  ;;  %v9024_v44 = vpop.f32.mrb[16].mxu1  ;;  %v9026_v46 = vpop.f32.mrb[35].mxu0 }
 0x2c1   : > { %11090 = vst [vmem:[#allocation39_spill] sm:$0xff] %v9024_v44  ;;  %11091 = vst [vmem:[#allocation40_spill] sm:$0xff] %v9026_v46  ;;  %v9032_v47 = vpack.c.bf16 %v9026_v46, %v9012_v5  ;;  %v9034_v48 = vpop.f32.mrb[17].mxu1 }
 0x2c2   : > { %11089 = vst [vmem:[#allocation38_spill] sm:$0xff] %v9022_v43  ;;  %11093 = vst [vmem:[#allocation42_spill] sm:$0xff] %v9034_v48 }
 0x2c3   : > { %11092 = vst [vmem:[#allocation41_spill] sm:$0xff] %v9032_v47  ;;  %v9036_v45 = vpop.f32.mrb[36].mxu0 }
 0x2c4   : > { %11094 = vst [vmem:[#allocation43_spill] sm:$0xff] %v9036_v45  ;;  %v9038_v24 = vpop.f32.mrb[18].mxu1  ;;  %v9040_v37 = vpop.f32.mrb[37].mxu0 }
 0x2c5   : > { %11095 = vst [vmem:[#allocation44_spill] sm:$0xff] %v9038_v24  ;;  %11096 = vst [vmem:[#allocation45_spill] sm:$0xff] %v9040_v37  ;;  %v9042_v15 = vpop.f32.mrb[19].mxu1 }
 0x2c6   : > { %11097 = vst [vmem:[#allocation46_spill] sm:$0xff] %v9042_v15 }
 0x2c7   : > { %v9044_v21 = vpop.f32.mrb[38].mxu0 }
 0x2c8   : > { %11098 = vst [vmem:[#allocation47_spill] sm:$0xff] %v9044_v21  ;;  %v9050_v20 = vpack.c.bf16 %v9044_v21, %v9036_v45  ;;  %v1298_v32 = vpop.f32.mrb[20].mxu1  ;;  %v9052_v13 = vpop.f32.mrb[39].mxu0 }
 0x2c9   : > { %11099 = vst [vmem:[#allocation48_spill] sm:$0xff] %v9052_v13  ;;  %v9058_v18 = vpack.c.bf16 %v9052_v13, %v9040_v37  ;;  %v9060_v23 = vpop.f32.mrb[21].mxu1 }
 0x2cb   : > { %11100 = vst [vmem:[#allocation49_spill] sm:$0xff] %v9058_v18  ;;  %v9062_v5 = vpop.f32.mrb[40].mxu0 }
 0x2cc   : > { %11101 = vst [vmem:[#allocation50_spill] sm:$0xff] %v9062_v5  ;;  %v1304_v46 = vpop.f32.mrb[22].mxu1  ;;  %v9064_v42 = vpop.f32.mrb[41].mxu0 }
 0x2cd   : > { %11102 = vst [vmem:[#allocation51_spill] sm:$0xff] %v9064_v42  ;;  %v7828_v36 = vpack.i.bf16 %v1304_v46, %v1298_v32  ;;  %v7406_v11 = vpack.c.bf16 %v1304_v46, %v1298_v32  ;;  %v9072_v60 = vpop.f32.mrb[23].mxu1 }
 0x2ce   : > { %v9078_v13 = vpack.c.bf16 %v9072_v60, %v9060_v23 }
 0x2cf   : > { %v9080_v14 = vpop.f32.mrb[42].mxu0  ;;  %7829 = vrot.lane.b32.xlu0 %v7828_v36, %s8355_s17  ;;  %7408 = vmatprep.subr.msk.bf16.mxu1 %vm9068_vm9, %v7406_v11 }
 0x2d0   : > { %11105 = vst [vmem:[#allocation52_spill] sm:$0xff] %v9080_v14  ;;  %v9089_v32 = vpack.c.bf16 %v9080_v14, %v9062_v5  ;;  %v1310_v46 = vpop.f32.mrb[24].mxu1  ;;  %v9091_v37 = vpop.f32.mrb[43].mxu0  ;;  %7411 = vmatpush3.bf16.xpose.msk.msra.mxu1 %vm9068_vm9, %v7406_v11 }
 0x2d1   : > { %11107 = vst [vmem:[#allocation54_spill] sm:$0xff] %v9091_v37  ;;  %v9099_v36 = vpack.c.bf16 %v9091_v37, %v9064_v42  ;;  %v9101_v9 = vpop.f32.mrb[25].mxu1 }
 0x2d2   : > { %11106 = vst [vmem:[#allocation53_spill] sm:$0xff] %v9089_v32 }
 0x2d3   : > { %11108 = vst [vmem:[#allocation55_spill] sm:$0xff] %v9099_v36  ;;  %v9103_v15 = vpop.f32.mrb[44].mxu0 }
 0x2d4   : > { %11109 = vst [vmem:[#allocation56_spill] sm:$0xff] %v9103_v15  ;;  %v1316_v6 = vpop.f32.mrb[26].mxu1  ;;  %v9105_v1 = vpop.f32.mrb[45].mxu0 }
 0x2d5   : > { %11110 = vst [vmem:[#allocation57_spill] sm:$0xff] %v9105_v1  ;;  %v7833_v61 = vpack.i.bf16 %v1316_v6, %v1310_v46  ;;  %v7412_v56 = vpack.c.bf16 %v1316_v6, %v1310_v46  ;;  %v9107_v52 = vpop.f32.mrb[27].mxu1 }
 0x2d6   : > { %v9113_v48 = vpack.c.bf16 %v9107_v52, %v9101_v9 }
 0x2d7   : > { %v9115_v42 = vpop.f32.mrb[46].mxu0  ;;  %7834 = vrot.lane.b32.xlu1 %v7833_v61, %s8355_s17  ;;  %7414 = vmatprep.subr.msk.bf16.mxu1 %vm9068_vm9, %v7412_v56 }
 0x2d8   : > { %11111 = vst [vmem:[#allocation58_spill] sm:$0xff] %v9115_v42  ;;  %v9124_v6 = vpack.c.bf16 %v9115_v42, %v9103_v15  ;;  %v1322_v46 = vpop.f32.mrb[28].mxu1  ;;  %v9126_v11 = vpop.f32.mrb[47].mxu0  ;;  %7417 = vmatpush3.bf16.xpose.msk.msra.mxu1 %vm9068_vm9, %v7412_v56 }
 0x2d9   : > { %11113 = vst [vmem:[#allocation60_spill] sm:$0xff] %v9126_v11  ;;  %v9134_v61 = vpack.c.bf16 %v9126_v11, %v9105_v1  ;;  %v9136_v38 = vpop.f32.mrb[29].mxu1 }
 0x2da   : > { %11112 = vst [vmem:[#allocation59_spill] sm:$0xff] %v9124_v6 }
 0x2db   : > { %11114 = vst [vmem:[#allocation61_spill] sm:$0xff] %v9134_v61  ;;  %v9138_v37 = vpop.f32.mrb[48].mxu0 }
 0x2dc   : > { %11115 = vst [vmem:[#allocation62_spill] sm:$0xff] %v9138_v37  ;;  %v1328_v26 = vpop.f32.mrb[30].mxu1  ;;  %v9140_v16 = vpop.f32.mrb[49].mxu0 }
 0x2dd   : > { %11116 = vst [vmem:[#allocation63_spill] sm:$0xff] %v9140_v16  ;;  %v7838_v5 = vpack.i.bf16 %v1328_v26, %v1322_v46  ;;  %v7418_v14 = vpack.c.bf16 %v1328_v26, %v1322_v46  ;;  %v9142_v15 = vpop.f32.mrb[31].mxu1 }
 0x2de   : > { %v9148_v47 = vpack.c.bf16 %v9142_v15, %v9136_v38 }
 0x2df   : > { %v9150_v1 = vpop.f32.mrb[50].mxu0  ;;  %7839 = vrot.lane.b32.xlu0 %v7838_v5, %s8355_s17  ;;  %7420 = vmatprep.subr.msk.bf16.mxu1 %vm9068_vm9, %v7418_v14 }
 0x2e0   : > { %11117 = vst [vmem:[#allocation64_spill] sm:$0xff] %v9150_v1  ;;  %v9159_v26 = vpack.c.bf16 %v9150_v1, %v9138_v37  ;;  %v1334_v46 = vpop.f32.mrb[32].mxu1  ;;  %v9161_v56 = vpop.f32.mrb[51].mxu0  ;;  %7423 = vmatpush3.bf16.xpose.msk.msra.mxu1 %vm9068_vm9, %v7418_v14 }
 0x2e1   : > { %11119 = vst [vmem:[#allocation66_spill] sm:$0xff] %v9161_v56  ;;  %v9169_v5 = vpack.c.bf16 %v9161_v56, %v9140_v16  ;;  %v9171_v45 = vpop.f32.mrb[33].mxu1 }
 0x2e2   : > { %11118 = vst [vmem:[#allocation65_spill] sm:$0xff] %v9159_v26 }
 0x2e3   : > { %11120 = vst [vmem:[#allocation67_spill] sm:$0xff] %v9169_v5  ;;  %2062 = vrot.lane.b32.xlu0 %v8894_v49, %s8355_s17 }
 0x2e4   : > { %v1340_v11 = vpop.f32.mrb[34].mxu1 }
 0x2e5   : > { %v7843_v37 = vpack.i.bf16 %v1340_v11, %v1334_v46  ;;  %v7424_v1 = vpack.c.bf16 %v1340_v11, %v1334_v46  ;;  %v9175_v21 = vpop.f32.mrb[35].mxu1 }
 0x2e6   : > { %v9181_v42 = vpack.c.bf16 %v9175_v21, %v9171_v45 }
 0x2e7   : > { %2066 = vrot.lane.b32.xlu0 %v8912_v57, %s8355_s17  ;;  %7844 = vrot.lane.b32.xlu1 %v7843_v37, %s8355_s17 }
 0x2e8   : > { %7426 = vmatprep.subr.msk.bf16.mxu1 %vm9068_vm9, %v7424_v1  ;;  %v1524_v49 = vpop.f32.mrb[36].mxu1 }
 0x2e9   : > { %7429 = vmatpush3.bf16.xpose.msk.msra.mxu1 %vm9068_vm9, %v7424_v1  ;;  %v9190_v11 = vpop.f32.mrb[37].mxu1 }
 0x2ea   : > { %11121 = vst [vmem:[#allocation68_spill] sm:$0xff] %v9190_v11 }
 0x2eb   : > { %2070 = vrot.lane.b32.xlu0 %v8928_v2, %s8355_s17  ;;  %2064 = vrot.lane.b32.xlu1 %v8904_v53, %s8355_s17 }
 0x2ec   : > { %v1530_v46 = vpop.f32.mrb[38].mxu1 }
 0x2ed   : > { %v7848_v14 = vpack.i.bf16 %v1530_v46, %v1524_v49  ;;  %v7430_v16 = vpack.c.bf16 %v1530_v46, %v1524_v49  ;;  %v9196_v56 = vpop.f32.mrb[39].mxu1 }
 0x2ee   : > { %11122 = vst [vmem:[#allocation69_spill] sm:$0xff] %v9196_v56  ;;  %v9202_v5 = vpack.c.bf16 %v9196_v56, %v9190_v11 }
 0x2ef   : > { %2074 = vrot.lane.b32.xlu0 %v8996_v35, %s8355_s17  ;;  %2068 = vrot.lane.b32.xlu1 %v8920_v62, %s8355_s17 }
 0x2f0   : > { %6929 = vmatmul.mubr.msk.f32.vlgmr.msra.gmra.mrb[52].mxu1 %vm782_vm7, %v8904_v53  ;;  %7431 = vmatprep.subr.bf16.mxu1 %v7430_v16  ;;  %v1536_v1 = vpop.f32.mrb[40].mxu1 }
 0x2f1   : > { %6931 = vmatprep.mubr.msk.f32.mxu1 %vm782_vm7, %v8912_v57  ;;  %7433 = vmatpush3.bf16.msra.mxu1 %v7430_v16  ;;  %v9212_v49 = vpop.f32.mrb[41].mxu1 }
 0x2f2   : > { %11123 = vst [vmem:[#allocation70_spill] sm:$0xff] %v9212_v49 }
 0x2f3   : > { %2072 = vrot.lane.b32.xlu1 %v8936_v7, %s8355_s17  ;;  %7849 = vrot.lane.b32.xlu0 %v7848_v14, %s8355_s17 }
 0x2f4   : > { %6932 = vmatmul.mubr.msk.f32.gmra.mrb[54].mxu1 %vm782_vm7, %v8920_v62  ;;  %v1542_v46 = vpop.f32.mrb[42].mxu1 }
 0x2f5   : > { %v7853_v37 = vpack.i.bf16 %v1542_v46, %v1536_v1  ;;  %v7434_v61 = vpack.c.bf16 %v1542_v46, %v1536_v1  ;;  %6934 = vmatprep.mubr.msk.f32.mxu1 %vm782_vm7, %v8928_v2  ;;  %v9221_v53 = vpop.f32.mrb[43].mxu1 }
 0x2f6   : > { %11124 = vst [vmem:[#allocation71_spill] sm:$0xff] %v9221_v53  ;;  %v9227_v16 = vpack.c.bf16 %v9221_v53, %v9212_v49 }
 0x2f7   : > { %2076 = vrot.lane.b32.xlu1 %v9010_v41, %s8355_s17  ;;  %7435 = vmatprep.subr.bf16.mxu1 %v7434_v61 }
 0x2f8   : > { %6935 = vmatmul.mubr.msk.f32.gmra.mrb[56].mxu1 %vm782_vm7, %v8936_v7  ;;  %v9233_v62 = vpop.f32.mrb[44].mxu1 }
 0x2f9   : > { %6937 = vmatprep.mubr.msk.f32.mxu1 %vm782_vm7, %v8996_v35  ;;  %7437 = vmatpush3.bf16.msra.mxu1 %v7434_v61  ;;  %v9237_v2 = vpop.f32.mrb[45].mxu1 }
 0x2fa   : > { %11125 = vst [vmem:[#allocation72_spill] sm:$0xff] %v9237_v2 }
 0x2fb   : > { %7854 = vrot.lane.b32.xlu1 %v7853_v37, %s8355_s17 }
 0x2fc   : > { %6938 = vmatmul.mubr.msk.f32.gmra.mrb[58].mxu1 %vm782_vm7, %v9010_v41  ;;  %v9242_v14 = vpop.f32.mrb[46].mxu1 }
 0x2fd   : > { %v7438_v7 = vpack.c.bf16 %v9242_v14, %v9233_v62  ;;  %v9248_v46 = vpop.f32.mrb[47].mxu1 }
 0x2fe   : > { %11126 = vst [vmem:[#allocation73_spill] sm:$0xff] %v9248_v46  ;;  %v9254_v61 = vpack.c.bf16 %v9248_v46, %v9237_v2 }
 0x2ff   : > { %7439 = vmatprep.subr.bf16.mxu1 %v7438_v7 }
 0x300   : > { %v9256_v37 = vpop.f32.mrb[48].mxu1  ;;  %7441 = vmatpush3.bf16.msra.mxu1 %v7438_v7 }
 0x301   : > { %v9258_v41 = vpop.f32.mrb[49].mxu1 }
 0x302   : > { %11127 = vst [vmem:[#allocation74_spill] sm:$0xff] %v9258_v41 }
 0x304   : > { %v9260_v57 = vpop.f32.mrb[50].mxu1 }
 0x305   : > { %v7442_v36 = vpack.c.bf16 %v9260_v57, %v9256_v37  ;;  %v9266_v18 = vpop.f32.mrb[51].mxu1 }
 0x306   : > { %11128 = vst [vmem:[#allocation75_spill] sm:$0xff] %v9266_v18  ;;  %v9272_v17 = vpack.c.bf16 %v9266_v18, %v9258_v41 }
 0x307   : > { %7443 = vmatprep.subr.bf16.mxu1 %v7442_v36 }
 0x308   : > { %7445 = vmatpush3.bf16.msra.mxu1 %v7442_v36 }
 0x341   : > { %v7830_v7 = vpop.permute.xlu0 %7829 }
 0x342   : > { %v7832_v19 = vunpack.i.h.bf16 %v7830_v7  ;;  %v7831_v40 = vunpack.i.l.bf16 %v7830_v7 }
 0x344   : > { %v7446_v34 = vpack.c.bf16 %v7832_v19, %v7831_v40 }
 0x346   : > { %7448 = vmatprep.subr.msk.bf16.mxu0 %vm9068_vm9, %v7446_v34 }
 0x347   : > { %7451 = vmatpush3.bf16.xpose.msk.msra.mxu0 %vm9068_vm9, %v7446_v34 }
 0x349   : > { %v7835_v1 = vpop.permute.xlu1 %7834 }
 0x34a   : > { %v7837_v27 = vunpack.i.h.bf16 %v7835_v1  ;;  %v7836_v30 = vunpack.i.l.bf16 %v7835_v1 }
 0x34c   : > { %v7452_v35 = vpack.c.bf16 %v7837_v27, %v7836_v30 }
 0x34e   : > { %7454 = vmatprep.subr.msk.bf16.mxu0 %vm9068_vm9, %v7452_v35 }
 0x34f   : > { %7457 = vmatpush3.bf16.xpose.msk.msra.mxu0 %vm9068_vm9, %v7452_v35 }
 0x351   : > { %v7840_v36 = vpop.permute.xlu0 %7839 }
 0x352   : > { %v7842_v10 = vunpack.i.h.bf16 %v7840_v36  ;;  %v7841_v7 = vunpack.i.l.bf16 %v7840_v36 }
 0x354   : > { %v7458_v19 = vpack.c.bf16 %v7842_v10, %v7841_v7 }
 0x355   : > { %v2063_v40 = vpop.permute.xlu0 %2062 }
 0x356   : > { %7460 = vmatprep.subr.msk.bf16.mxu0 %vm9068_vm9, %v7458_v19  ;;  %6984 = vmatprep.mubr.msk.f32.mxu0 %vm782_vm7, %v2063_v40 }
 0x357   : > { %7463 = vmatpush3.bf16.xpose.msk.msra.mxu0 %vm9068_vm9, %v7458_v19 }
 0x359   : > { %v2067_v27 = vpop.permute.xlu0 %2066  ;;  %v7845_v30 = vpop.permute.xlu1 %7844 }
 0x35a   : > { %v7847_v34 = vunpack.i.h.bf16 %v7845_v30  ;;  %v7846_v1 = vunpack.i.l.bf16 %v7845_v30 }
 0x35c   : > { %v7464_v12 = vpack.c.bf16 %v7847_v34, %v7846_v1 }
 0x35d   : > { %v2071_v24 = vpop.permute.xlu0 %2070  ;;  %v2065_v35 = vpop.permute.xlu1 %2064 }
 0x35e   : > { %7466 = vmatprep.subr.msk.bf16.mxu0 %vm9068_vm9, %v7464_v12 }
 0x35f   : > { %7469 = vmatpush3.bf16.xpose.msk.msra.mxu0 %vm9068_vm9, %v7464_v12 }
 0x360   : > { %7488 = vmatprep.subr.msk.bf16.mxu0 %vm9068_vm9, %v9078_v13 }
 0x361   : > { %v2075_v10 = vpop.permute.xlu0 %2074  ;;  %v2069_v36 = vpop.permute.xlu1 %2068 }
 0x365   : > { %v7850_v7 = vpop.permute.xlu0 %7849  ;;  %v2073_v30 = vpop.permute.xlu1 %2072 }
 0x366   : > { %v7852_v19 = vunpack.i.h.bf16 %v7850_v7  ;;  %v7851_v40 = vunpack.i.l.bf16 %v7850_v7  ;;  %6985 = vmatmul.mubr.msk.f32.vlgmr.msra.gmra.mrb[52].mxu0 %vm782_vm7, %v2065_v35 }
 0x367   : > { %6987 = vmatprep.mubr.msk.f32.mxu0 %vm782_vm7, %v2067_v27  ;;  %7491 = vmatpush3.bf16.xpose.msk.msra.mxu0 %vm9068_vm9, %v9078_v13 }
 0x368   : > { %7494 = vmatprep.subr.msk.bf16.mxu0 %vm9068_vm9, %v9113_v48  ;;  %v9302_v12 = vpack.c.bf16 %v7852_v19, %v7851_v40 }
 0x369   : > { %v2077_v13 = vpop.permute.xlu1 %2076 }
 0x36a   : > { %6988 = vmatmul.mubr.msk.f32.gmra.mrb[54].mxu0 %vm782_vm7, %v2069_v36  ;;  %7471 = vmatprep.subr.bf16.mxu1 %v9302_v12 }
 0x36b   : > { %6990 = vmatprep.mubr.msk.f32.mxu0 %vm782_vm7, %v2071_v24 }
 0x36e   : > { %6991 = vmatmul.mubr.msk.f32.gmra.mrb[56].mxu0 %vm782_vm7, %v2073_v30 }
 0x36f   : > { %6993 = vmatprep.mubr.msk.f32.mxu0 %vm782_vm7, %v2075_v10  ;;  %7497 = vmatpush3.bf16.xpose.msk.msra.mxu0 %vm9068_vm9, %v9113_v48 }
 0x370   : > { %7500 = vmatprep.subr.msk.bf16.mxu0 %vm9068_vm9, %v9148_v47 }
 0x372   : > { %6994 = vmatmul.mubr.msk.f32.gmra.mrb[58].mxu0 %vm782_vm7, %v2077_v13 }
 0x373   : > { %7040 = vmatprep.mubr.msk.f32.mxu0 %vm782_vm7, %v8898_v51 }
 0x377   : > { %7503 = vmatpush3.bf16.xpose.msk.msra.mxu0 %vm9068_vm9, %v9148_v47 }
 0x378   : > { %7506 = vmatprep.subr.msk.bf16.mxu0 %vm9068_vm9, %v9181_v42 }
 0x37f   : > { %7509 = vmatpush3.bf16.xpose.msk.msra.mxu0 %vm9068_vm9, %v9181_v42 }
 0x386   : > { %7041 = vmatmul.mubr.msk.f32.vlgmr.msra.gmra.mrb[60].mxu0 %vm782_vm7, %v8908_v55 }
 0x387   : > { %7043 = vmatprep.mubr.msk.f32.mxu0 %vm782_vm7, %v8916_v59 }
 0x38a   : > { %7044 = vmatmul.mubr.msk.f32.gmra.mrb[62].mxu0 %vm782_vm7, %v8924_v0 }
 0x38b   : > { %7046 = vmatprep.mubr.msk.f32.mxu0 %vm782_vm7, %v8932_v4 }
 0x38e   : > { %7047 = vmatmul.mubr.msk.f32.gmra.mrb[64].mxu0 %vm782_vm7, %v8940_v25 }
 0x38f   : > { %7049 = vmatprep.mubr.msk.f32.mxu0 %vm782_vm7, %v9006_v39 }
 0x392   : > { %7050 = vmatmul.mubr.msk.f32.gmra.mrb[66].mxu0 %vm782_vm7, %v9014_v31 }
 0x3c3   : > { %v6930_v24 = vpop.f32.mrb[52].mxu1 }
 0x3c4   : > { %v9341_v42 = vmul.f32 0.125, %v6930_v24  ;;  %v1798_v47 = vpop.f32.mrb[53].mxu1 }
 0x3c5   : > { %v9343_v48 = vmul.f32 0.125, %v1798_v47 }
 0x3c6   : > { %v1848_v27 = vsel %vm782_vm7, %v9341_v42, -inf }
 0x3c7   : > { %1849 = vmax.xlane.f32.xlu1 %v1848_v27  ;;  %v6933_v34 = vpop.f32.mrb[54].mxu1  ;;  %v1845_v1 = vsel %vm782_vm7, %v9343_v48, -inf }
 0x3c8   : > { %v9349_v35 = vmul.f32 0.125, %v6933_v34  ;;  %1846 = vmax.xlane.f32.xlu0 %v1845_v1  ;;  %v1808_v10 = vpop.f32.mrb[55].mxu1 }
 0x3c9   : > { %v9353_v7 = vmul.f32 0.125, %v1808_v10 }
 0x3ca   : > { %v1854_v36 = vsel %vm782_vm7, %v9349_v35, -inf }
 0x3cb   : > { %v6936_v19 = vpop.f32.mrb[56].mxu1  ;;  %v1851_v47 = vsel %vm782_vm7, %v9353_v7, -inf }
 0x3cc   : > { %1855 = vmax.xlane.f32.xlu0 %v1854_v36  ;;  %v1818_v40 = vpop.f32.mrb[57].mxu1  ;;  %v9357_v13 = vmul.f32 0.125, %v6936_v19 }
 0x3cd   : > { %v9355_v30 = vmul.f32 0.125, %v1818_v40 }
 0x3ce   : > { %v1860_v36 = vsel %vm782_vm7, %v9357_v13, -inf }
 0x3cf   : > { %v6939_v24 = vpop.f32.mrb[58].mxu1  ;;  %v1857_v27 = vsel %vm782_vm7, %v9355_v30, -inf }
 0x3d0   : > { %1852 = vmax.xlane.f32.xlu0 %v1851_v47  ;;  %1858 = vmax.xlane.f32.xlu1 %v1857_v27  ;;  %v1828_v34 = vpop.f32.mrb[59].mxu1  ;;  %v9365_v10 = vmul.f32 0.125, %v6939_v24 }
 0x3d1   : > { %v9363_v1 = vmul.f32 0.125, %v1828_v34 }
 0x3d2   : > { %v1866_v40 = vsel %vm782_vm7, %v9365_v10, -inf }
 0x3d3   : > { %v1863_v19 = vsel %vm782_vm7, %v9363_v1, -inf }
 0x3d4   : > { %1861 = vmax.xlane.f32.xlu0 %v1860_v36  ;;  %1864 = vmax.xlane.f32.xlu1 %v1863_v19 }
 0x3d8   : > { %1867 = vmax.xlane.f32.xlu0 %v1866_v40 }
 0x439   : > { %v6986_v44 = vpop.f32.mrb[52].mxu0 }
 0x43a   : > { %v9373_v47 = vmul.f32 0.125, %v6986_v44  ;;  %v2192_v27 = vpop.f32.mrb[53].mxu0 }
 0x43b   : > { %v9375_v34 = vmul.f32 0.125, %v2192_v27 }
 0x43c   : > { %v2242_v24 = vsel %vm782_vm7, %v9373_v47, -inf }
 0x43d   : > { %v6989_v8 = vpop.f32.mrb[54].mxu0  ;;  %2243 = vmax.xlane.f32.xlu0 %v2242_v24  ;;  %v2239_v3 = vsel %vm782_vm7, %v9375_v34, -inf }
 0x43e   : > { %v9381_v36 = vmul.f32 0.125, %v6989_v8  ;;  %v2202_v19 = vpop.f32.mrb[55].mxu0  ;;  %2240 = vmax.xlane.f32.xlu1 %v2239_v3 }
 0x43f   : > { %v9383_v63 = vmul.f32 0.125, %v2202_v19 }
 0x440   : > { %v2248_v44 = vsel %vm782_vm7, %v9381_v36, -inf }
 0x441   : > { %v6992_v40 = vpop.f32.mrb[56].mxu0  ;;  %2249 = vmax.xlane.f32.xlu0 %v2248_v44  ;;  %v2245_v27 = vsel %vm782_vm7, %v9383_v63, -inf }
 0x442   : > { %v9389_v58 = vmul.f32 0.125, %v6992_v40  ;;  %v2212_v24 = vpop.f32.mrb[57].mxu0  ;;  %2246 = vmax.xlane.f32.xlu1 %v2245_v27 }
 0x443   : > { %v9391_v54 = vmul.f32 0.125, %v2212_v24  ;;  %v9405_v24 = vpop.permute.xlu1 %7854 }
 0x444   : > { %v2254_v8 = vsel %vm782_vm7, %v9389_v58, -inf }
 0x445   : > { %v6995_v3 = vpop.f32.mrb[58].mxu0  ;;  %2255 = vmax.xlane.f32.xlu0 %v2254_v8  ;;  %v2251_v19 = vsel %vm782_vm7, %v9391_v54, -inf }
 0x446   : > { %v9397_v50 = vmul.f32 0.125, %v6995_v3  ;;  %v2222_v44 = vpop.f32.mrb[59].mxu0  ;;  %2252 = vmax.xlane.f32.xlu1 %v2251_v19 }
 0x447   : > { %v9399_v43 = vmul.f32 0.125, %v2222_v44 }
 0x448   : > { %v2260_v40 = vsel %vm782_vm7, %v9397_v50, -inf }
 0x449   : > { %2261 = vmax.xlane.f32.xlu0 %v2260_v40  ;;  %v2257_v27 = vsel %vm782_vm7, %v9399_v43, -inf }
 0x44a   : > { %2258 = vmax.xlane.f32.xlu1 %v2257_v27 }
 0x454   : > { %v1850_v8 = vpop.xlane.xlu1 %1849 }
 0x455   : > { %v1870_v33 = vsub.f32 %v9341_v42, %v1850_v8  ;;  %v1847_v22 = vpop.xlane.xlu0 %1846 }
 0x456   : > { %v1869_v3 = vsub.f32 %v9343_v48, %v1847_v22 }
 0x457   : > { %v1879_v28 = vmul.f32 1.442695, %v1870_v33 }
 0x458   : > { %v1877_v19 = vmul.f32 1.442695, %v1869_v3 }
 0x459   : > { %v7042_v44 = vpop.f32.mrb[60].mxu0  ;;  %8068 = vpow2.f32 %v1879_v28 }
 0x45a   : > { %v9409_v49 = vmul.f32 0.125, %v7042_v44  ;;  %v2602_v53 = vpop.f32.mrb[61].mxu0  ;;  %8070 = vpow2.f32 %v1877_v19 }
 0x45b   : > { %v9411_v41 = vmul.f32 0.125, %v2602_v53 }
 0x45c   : > { %v2652_v40 = vsel %vm782_vm7, %v9409_v49, -inf }
 0x45d   : > { %2653 = vmax.xlane.f32.xlu0 %v2652_v40  ;;  %v2649_v42 = vsel %vm782_vm7, %v9411_v41, -inf  ;;  %v7045_v27 = vpop.f32.mrb[62].mxu0 }
 0x45e   : > { %2650 = vmax.xlane.f32.xlu1 %v2649_v42  ;;  %v9417_v22 = vmul.f32 0.125, %v7045_v27  ;;  %v2612_v33 = vpop.f32.mrb[63].mxu0 }
 0x45f   : > { %v9419_v48 = vmul.f32 0.125, %v2612_v33 }
 0x460   : > { %v2658_v53 = vsel %vm782_vm7, %v9417_v22, -inf }
 0x461   : > { %v7048_v8 = vpop.f32.mrb[64].mxu0  ;;  %2659 = vmax.xlane.f32.xlu0 %v2658_v53  ;;  %v2655_v28 = vsel %vm782_vm7, %v9419_v48, -inf }
 0x462   : > { %v9425_v3 = vmul.f32 0.125, %v7048_v8  ;;  %v2622_v19 = vpop.f32.mrb[65].mxu0  ;;  %2656 = vmax.xlane.f32.xlu1 %v2655_v28 }
 0x463   : > { %v9427_v44 = vmul.f32 0.125, %v2622_v19  ;;  %v9431_v27 = vpop.eup %8068 }
 0x464   : > { %v2664_v42 = vsel %vm782_vm7, %v9425_v3, -inf  ;;  %v9435_v18 = vpop.eup %8070  ;;  %v1896_v28 = vsel %vm782_vm7, %v9431_v27, 0.0 }
 0x465   : > { %v7051_v40 = vpop.f32.mrb[66].mxu0  ;;  %2665 = vmax.xlane.f32.xlu0 %v2664_v42  ;;  %v2661_v53 = vsel %vm782_vm7, %v9427_v44, -inf  ;;  %v1893_v2 = vsel %vm782_vm7, %v9435_v18, 0.0 }
 0x466   : > { %v2632_v33 = vpop.f32.mrb[67].mxu0  ;;  %2662 = vmax.xlane.f32.xlu1 %v2661_v53  ;;  %v9437_v8 = vmul.f32 0.125, %v7051_v40  ;;  %v1856_v40 = vpop.xlane.xlu0 %1855  ;;  %v11129_v53 = vpack.i.bf16 %v9260_v57, %v9256_v37 }
 0x467   : > { %v9441_v19 = vmul.f32 0.125, %v2632_v33  ;;  %v11130_v33 = vpack.i.bf16 %v9242_v14, %v9233_v62  ;;  %v1872_v11 = vsub.f32 %v9349_v35, %v1856_v40 }
 0x468   : > { %v2670_v42 = vsel %vm782_vm7, %v9437_v8, -inf }
 0x469   : > { %1897 = vadd.xlane.f32.xlu0 %v1896_v28  ;;  %v2667_v46 = vsel %vm782_vm7, %v9441_v19, -inf  ;;  %v1883_v26 = vmul.f32 1.442695, %v1872_v11 }
 0x46a   : > { %1894 = vadd.xlane.f32.xlu1 %v1893_v2  ;;  %v1853_v2 = vpop.xlane.xlu0 %1852 }
 0x46b   : > { %v1871_v56 = vsub.f32 %v9353_v7, %v1853_v2  ;;  %8072 = vpow2.f32 %v1883_v26 }
 0x46d   : > { %2671 = vmax.xlane.f32.xlu0 %v2670_v42  ;;  %v1859_v42 = vpop.xlane.xlu1 %1858  ;;  %v1881_v6 = vmul.f32 1.442695, %v1871_v56 }
 0x46e   : > { %2668 = vmax.xlane.f32.xlu1 %v2667_v46  ;;  %v1862_v28 = vpop.xlane.xlu0 %1861  ;;  %v1873_v32 = vsub.f32 %v9355_v30, %v1859_v42 }
 0x46f   : > { %v1874_v46 = vsub.f32 %v9357_v13, %v1862_v28  ;;  %8074 = vpow2.f32 %v1881_v6 }
 0x470   : > { %v1885_v14 = vmul.f32 1.442695, %v1873_v32 }
 0x471   : > { %v1865_v37 = vpop.xlane.xlu1 %1864 }
 0x472   : > { %v1868_v57 = vpop.xlane.xlu0 %1867 }
 0x473   : > { %v1876_v62 = vsub.f32 %v9365_v10, %v1868_v57 }
 0x475   : > { %v1891_v35 = vmul.f32 1.442695, %v1876_v62  ;;  %v9463_v11 = vpop.eup %8072 }
 0x476   : > { %v1902_v26 = vsel %vm782_vm7, %v9463_v11, 0.0 }
 0x479   : > { %v9465_v56 = vpop.eup %8074 }
 0x47a   : > { %v1899_v32 = vsel %vm782_vm7, %v9465_v56, 0.0 }
 0x47f   : > { %7864 = vrot.lane.b32.xlu1 %v11129_v53, %s8355_s17  ;;  %v1887_v53 = vmul.f32 1.442695, %v1874_v46 }
 0x481   : > { %8076 = vpow2.f32 %v1887_v53 }
 0x482   : > { %8078 = vpow2.f32 %v1885_v14 }
 0x483   : > { %7859 = vrot.lane.b32.xlu0 %v11130_v33, %s8355_s17  ;;  %v1875_v33 = vsub.f32 %v9363_v1, %v1865_v37  ;;  %8080 = vpow2.f32 %v1891_v35 }
 0x485   : > { %v1889_v7 = vmul.f32 1.442695, %v1875_v33 }
 0x487   : > { %8082 = vpow2.f32 %v1889_v7 }
 0x48b   : > { %v9469_v30 = vpop.eup %8076 }
 0x48c   : > { %v9473_v6 = vpop.eup %8078  ;;  %v1908_v13 = vsel %vm782_vm7, %v9469_v30, 0.0 }
 0x48d   : > { %v9477_v1 = vpop.eup %8080  ;;  %v1905_v10 = vsel %vm782_vm7, %v9473_v6, 0.0 }
 0x48e   : > { %v1914_v2 = vsel %vm782_vm7, %v9477_v1, 0.0 }
 0x491   : > { %v9481_v40 = vpop.eup %8082 }
 0x492   : > { %v1911_v28 = vsel %vm782_vm7, %v9481_v40, 0.0 }
 0x4a2   : > { %1903 = vadd.xlane.f32.xlu0 %v1902_v26 }
 0x4a3   : > { %1900 = vadd.xlane.f32.xlu1 %v1899_v32 }
 0x4a6   : > { %1909 = vadd.xlane.f32.xlu0 %v1908_v13 }
 0x4a7   : > { %1906 = vadd.xlane.f32.xlu1 %v1905_v10 }
 0x4aa   : > { %1915 = vadd.xlane.f32.xlu0 %v1914_v2 }
 0x4ab   : > { %1912 = vadd.xlane.f32.xlu1 %v1911_v28 }
 0x4ca   : > { %v2244_v42 = vpop.xlane.xlu0 %2243 }
 0x4cb   : > { %v2264_v46 = vsub.f32 %v9373_v47, %v2244_v42  ;;  %v2241_v57 = vpop.xlane.xlu1 %2240 }
 0x4cc   : > { %v2263_v37 = vsub.f32 %v9375_v34, %v2241_v57 }
 0x4cd   : > { %v2273_v53 = vmul.f32 1.442695, %v2264_v46 }
 0x4ce   : > { %v2271_v62 = vmul.f32 1.442695, %v2263_v37  ;;  %v2250_v14 = vpop.xlane.xlu0 %2249 }
 0x4cf   : > { %8084 = vpow2.f32 %v2273_v53  ;;  %v2266_v33 = vsub.f32 %v9381_v36, %v2250_v14  ;;  %v2247_v35 = vpop.xlane.xlu1 %2246 }
 0x4d0   : > { %8086 = vpow2.f32 %v2271_v62  ;;  %v2265_v7 = vsub.f32 %v9383_v63, %v2247_v35 }
 0x4d1   : > { %v2277_v26 = vmul.f32 1.442695, %v2266_v33 }
 0x4d2   : > { %v2275_v32 = vmul.f32 1.442695, %v2265_v7  ;;  %v2256_v13 = vpop.xlane.xlu0 %2255 }
 0x4d3   : > { %8088 = vpow2.f32 %v2277_v26  ;;  %v2268_v10 = vsub.f32 %v9389_v58, %v2256_v13  ;;  %v2253_v47 = vpop.xlane.xlu1 %2252 }
 0x4d4   : > { %v2267_v2 = vsub.f32 %v9391_v54, %v2253_v47  ;;  %8090 = vpow2.f32 %v2275_v32 }
 0x4d5   : > { %v2281_v34 = vmul.f32 1.442695, %v2268_v10 }
 0x4d6   : > { %v2279_v28 = vmul.f32 1.442695, %v2267_v2  ;;  %v2262_v42 = vpop.xlane.xlu0 %2261 }
 0x4d7   : > { %8092 = vpow2.f32 %v2281_v34  ;;  %v2270_v36 = vsub.f32 %v9397_v50, %v2262_v42  ;;  %v2259_v46 = vpop.xlane.xlu1 %2258 }
 0x4d8   : > { %8094 = vpow2.f32 %v2279_v28  ;;  %v2269_v53 = vsub.f32 %v9399_v43, %v2259_v46 }
 0x4d9   : > { %v9494_v57 = vpop.eup %8084  ;;  %v2285_v37 = vmul.f32 1.442695, %v2270_v36 }
 0x4da   : > { %v9496_v63 = vpop.eup %8086  ;;  %v2290_v58 = vsel %vm782_vm7, %v9494_v57, 0.0  ;;  %v2283_v50 = vmul.f32 1.442695, %v2269_v53 }
 0x4db   : > { %2291 = vadd.xlane.f32.xlu0 %v2290_v58  ;;  %v2287_v54 = vsel %vm782_vm7, %v9496_v63, 0.0  ;;  %8096 = vpow2.f32 %v2285_v37 }
 0x4dc   : > { %2288 = vadd.xlane.f32.xlu1 %v2287_v54  ;;  %8098 = vpow2.f32 %v2283_v50 }
 0x4dd   : > { %v9503_v62 = vpop.eup %8088 }
 0x4de   : > { %v2296_v14 = vsel %vm782_vm7, %v9503_v62, 0.0  ;;  %v9507_v33 = vpop.eup %8090 }
 0x4df   : > { %v2293_v7 = vsel %vm782_vm7, %v9507_v33, 0.0 }
 0x4e0   : > { %2297 = vadd.xlane.f32.xlu1 %v2296_v14 }
 0x4e1   : > { %v9509_v35 = vpop.eup %8092 }
 0x4e2   : > { %v2302_v43 = vsel %vm782_vm7, %v9509_v35, 0.0  ;;  %v9515_v26 = vpop.eup %8094 }
 0x4e3   : > { %2303 = vadd.xlane.f32.xlu0 %v2302_v43  ;;  %v2299_v32 = vsel %vm782_vm7, %v9515_v26, 0.0 }
 0x4e4   : > { %2294 = vadd.xlane.f32.xlu1 %v2293_v7 }
 0x4e5   : > { %v9519_v13 = vpop.eup %8096 }
 0x4e6   : > { %v2308_v34 = vsel %vm782_vm7, %v9519_v13, 0.0  ;;  %v9524_v28 = vpop.eup %8098 }
 0x4e7   : > { %v2305_v53 = vsel %vm782_vm7, %v9524_v28, 0.0 }
 0x4e8   : > { %2300 = vadd.xlane.f32.xlu1 %v2299_v32 }
 0x4ea   : > { %v2654_v10 = vpop.xlane.xlu0 %2653 }
 0x4eb   : > { %v2674_v47 = vsub.f32 %v9409_v49, %v2654_v10  ;;  %v2651_v2 = vpop.xlane.xlu1 %2650 }
 0x4ec   : > { %v2673_v42 = vsub.f32 %v9411_v41, %v2651_v2  ;;  %2309 = vadd.xlane.f32.xlu1 %v2308_v34 }
 0x4ed   : > { %v2683_v36 = vmul.f32 1.442695, %v2674_v47 }
 0x4ee   : > { %v2681_v46 = vmul.f32 1.442695, %v2673_v42  ;;  %v2660_v37 = vpop.xlane.xlu0 %2659 }
 0x4ef   : > { %8100 = vpow2.f32 %v2683_v36  ;;  %v2676_v58 = vsub.f32 %v9417_v22, %v2660_v37  ;;  %v2657_v49 = vpop.xlane.xlu1 %2656 }
 0x4f0   : > { %8102 = vpow2.f32 %v2681_v46  ;;  %2306 = vadd.xlane.f32.xlu1 %v2305_v53  ;;  %v2675_v54 = vsub.f32 %v9419_v48, %v2657_v49 }
 0x4f1   : > { %v2687_v50 = vmul.f32 1.442695, %v2676_v58 }
 0x4f2   : > { %v2685_v14 = vmul.f32 1.442695, %v2675_v54  ;;  %v2666_v43 = vpop.xlane.xlu0 %2665 }
 0x4f3   : > { %8104 = vpow2.f32 %v2687_v50  ;;  %v2678_v41 = vsub.f32 %v9425_v3, %v2666_v43  ;;  %v2663_v7 = vpop.xlane.xlu1 %2662 }
 0x4f4   : > { %8106 = vpow2.f32 %v2685_v14  ;;  %v2677_v10 = vsub.f32 %v9427_v44, %v2663_v7  ;;  %v7857_v7 = vunpack.i.h.bf16 %v9405_v24 }
 0x4f5   : > { %v2691_v32 = vmul.f32 1.442695, %v2678_v41 }
 0x4f6   : > { %v1898_v47 = vpop.xlane.xlu0 %1897  ;;  %v2689_v42 = vmul.f32 1.442695, %v2677_v10 }
 0x4f7   : > { %v1895_v2 = vpop.xlane.xlu1 %1894  ;;  %8108 = vpow2.f32 %v2691_v32 }
 0x4f8   : > { %8110 = vrcp.f32 %v1898_v47 }
 0x4f9   : > { %v9533_v34 = vpop.eup %8100  ;;  %8112 = vrcp.f32 %v1895_v2 }
 0x4fa   : > { %v9535_v22 = vpop.eup %8102  ;;  %v2700_v48 = vsel %vm782_vm7, %v9533_v34, 0.0  ;;  %v2672_v36 = vpop.xlane.xlu0 %2671  ;;  %8114 = vpow2.f32 %v2689_v42 }
 0x4fb   : > { %2701 = vadd.xlane.f32.xlu1 %v2700_v48  ;;  %v2697_v3 = vsel %vm782_vm7, %v9535_v22, 0.0  ;;  %v2680_v44 = vsub.f32 %v9437_v8, %v2672_v36  ;;  %v2669_v46 = vpop.xlane.xlu1 %2668 }
 0x4fc   : > { %2698 = vadd.xlane.f32.xlu0 %v2697_v3  ;;  %v2679_v58 = vsub.f32 %v9441_v19, %v2669_v46  ;;  %v7856_v19 = vunpack.i.l.bf16 %v9405_v24 }
 0x4fd   : > { %v9542_v37 = vpop.eup %8104  ;;  %v2695_v53 = vmul.f32 1.442695, %v2680_v44  ;;  %v11131_v44 = vpack.i.bf16 %v9072_v60, %v9060_v23  ;;  %v11133_v23 = vpack.i.bf16 %v9175_v21, %v9171_v45  ;;  %v11134_v45 = vpack.i.bf16 %v9107_v52, %v9101_v9 }
 0x4fe   : > { %v2706_v49 = vsel %vm782_vm7, %v9542_v37, 0.0  ;;  %v9547_v54 = vpop.eup %8106  ;;  %v2693_v50 = vmul.f32 1.442695, %v2679_v58  ;;  %v7860_v32 = vpop.permute.xlu0 %7859  ;;  %v7474_v3 = vpack.c.bf16 %v7857_v7, %v7856_v19 }
 0x4ff   : > { %8116 = vpow2.f32 %v2695_v53  ;;  %v2703_v8 = vsel %vm782_vm7, %v9547_v54, 0.0  ;;  %v7862_v48 = vunpack.i.h.bf16 %v7860_v32  ;;  %v7861_v36 = vunpack.i.l.bf16 %v7860_v32  ;;  %v7865_v24 = vpop.permute.xlu1 %7864 }
 0x500   : > { %2707 = vadd.xlane.f32.xlu0 %v2706_v49  ;;  %8118 = vpow2.f32 %v2693_v50  ;;  %v7867_v46 = vunpack.i.h.bf16 %v7865_v24  ;;  %v7866_v53 = vunpack.i.l.bf16 %v7865_v24  ;;  %v11132_v50 = vpack.i.bf16 %v9142_v15, %v9136_v38 }
 0x501   : > { %v9549_v14 = vpop.eup %8108  ;;  %v7478_v58 = vpack.c.bf16 %v7862_v48, %v7861_v36 }
 0x502   : > { %v8111_v43 = vpop.eup %8110  ;;  %v2712_v2 = vsel %vm782_vm7, %v9549_v14, 0.0 }
 0x503   : > { %v8113_v41 = vpop.eup %8112  ;;  %v1926_v47 = vmul.f32 %v8111_v43, %v9431_v27 }
 0x504   : > { %2704 = vadd.xlane.f32.xlu0 %v2703_v8  ;;  %v1925_v10 = vmul.f32 %v8113_v41, %v9435_v18  ;;  %v9559_v42 = vpop.eup %8114  ;;  %v7482_v8 = vpack.c.bf16 %v7867_v46, %v7866_v53 }
 0x505   : > { %v2709_v18 = vsel %vm782_vm7, %v9559_v42, 0.0 }
 0x506   : > { %6956 = vmatprep.mubr.msk.f32.mxu1 %vm782_vm7, %v1925_v10 }
 0x507   : > { %6957 = vmatmul.mubr.msk.f32.vlgmr.msra.gmra.mrb[60].mxu1 %vm782_vm7, %v1926_v47 }
 0x508   : > { %2713 = vadd.xlane.f32.xlu0 %v2712_v2  ;;  %7473 = vmatpush3.bf16.msra.mxu1 %v9302_v12 }
 0x509   : > { %7475 = vmatprep.subr.bf16.mxu1 %v7474_v3  ;;  %v9566_v27 = vpop.eup %8116 }
 0x50a   : > { %v2718_v12 = vsel %vm782_vm7, %v9566_v27, 0.0  ;;  %v9574_v49 = vpop.eup %8118 }
 0x50b   : > { %v2715_v60 = vsel %vm782_vm7, %v9574_v49, 0.0 }
 0x50c   : > { %7869 = vrot.lane.b32.xlu1 %v11131_v44, %s8355_s17  ;;  %2710 = vadd.xlane.f32.xlu0 %v2709_v18 }
 0x50d   : > { %7477 = vmatpush3.bf16.msra.mxu1 %v7474_v3 }
 0x50e   : > { %7479 = vmatprep.subr.bf16.mxu1 %v7478_v58 }
 0x510   : > { %7879 = vrot.lane.b32.xlu1 %v11132_v50, %s8355_s17  ;;  %2719 = vadd.xlane.f32.xlu0 %v2718_v12 }
 0x511   : > { %7481 = vmatpush3.bf16.msra.mxu1 %v7478_v58 }
 0x512   : > { %7483 = vmatprep.subr.bf16.mxu1 %v7482_v8 }
 0x514   : > { %7884 = vrot.lane.b32.xlu1 %v11133_v23, %s8355_s17  ;;  %2716 = vadd.xlane.f32.xlu0 %v2715_v60 }
 0x515   : > { %7485 = vmatpush3.bf16.msra.mxu1 %v7482_v8 }
 0x516   : > { %7511 = vmatprep.subr.bf16.mxu1 %v9202_v5 }
 0x518   : > { %2866 = vrot.lane.b32.xlu1 %v8898_v51, %s8355_s17 }
 0x51c   : > { %2868 = vrot.lane.b32.xlu1 %v8908_v55, %s8355_s17 }
 0x520   : > { %2872 = vrot.lane.b32.xlu1 %v8924_v0, %s8355_s17 }
 0x524   : > { %2876 = vrot.lane.b32.xlu1 %v8940_v25, %s8355_s17 }
 0x528   : > { %2880 = vrot.lane.b32.xlu1 %v9014_v31, %s8355_s17 }
 0x52a   : > { %7874 = vrot.lane.b32.xlu0 %v11134_v45, %s8355_s17 }
 0x52e   : > { %2870 = vrot.lane.b32.xlu0 %v8916_v59, %s8355_s17 }
 0x52f   : > { %v1904_v51 = vpop.xlane.xlu0 %1903 }
 0x530   : > { %8120 = vrcp.f32 %v1904_v51  ;;  %v1901_v55 = vpop.xlane.xlu1 %1900 }
 0x531   : > { %8122 = vrcp.f32 %v1901_v55 }
 0x532   : > { %2874 = vrot.lane.b32.xlu0 %v8932_v4, %s8355_s17 }
 0x533   : > { %v1910_v0 = vpop.xlane.xlu0 %1909 }
 0x534   : > { %8124 = vrcp.f32 %v1910_v0  ;;  %v1907_v25 = vpop.xlane.xlu1 %1906 }
 0x535   : > { %8126 = vrcp.f32 %v1907_v25 }
 0x536   : > { %2878 = vrot.lane.b32.xlu0 %v9006_v39, %s8355_s17 }
 0x537   : > { %v1916_v15 = vpop.xlane.xlu0 %1915 }
 0x538   : > { %8128 = vrcp.f32 %v1916_v15  ;;  %v1913_v52 = vpop.xlane.xlu1 %1912 }
 0x539   : > { %8130 = vrcp.f32 %v1913_v52 }
 0x53a   : > { %v8121_v9 = vpop.eup %8120 }
 0x53b   : > { %v8123_v59 = vpop.eup %8122  ;;  %v1928_v38 = vmul.f32 %v8121_v9, %v9463_v11 }
 0x53c   : > { %v1927_v21 = vmul.f32 %v8123_v59, %v9465_v56 }
 0x53e   : > { %v8125_v31 = vpop.eup %8124  ;;  %6959 = vmatprep.mubr.msk.f32.mxu1 %vm782_vm7, %v1927_v21 }
 0x53f   : > { %v8127_v4 = vpop.eup %8126  ;;  %6960 = vmatmul.mubr.msk.f32.gmra.mrb[62].mxu1 %vm782_vm7, %v1928_v38  ;;  %v1930_v39 = vmul.f32 %v8125_v31, %v9469_v30 }
 0x540   : > { %v1929_v43 = vmul.f32 %v8127_v4, %v9473_v6 }
 0x542   : > { %v8129_v41 = vpop.eup %8128  ;;  %6962 = vmatprep.mubr.msk.f32.mxu1 %vm782_vm7, %v1929_v43 }
 0x543   : > { %v8131_v7 = vpop.eup %8130  ;;  %6963 = vmatmul.mubr.msk.f32.gmra.mrb[64].mxu1 %vm782_vm7, %v1930_v39  ;;  %v1932_v11 = vmul.f32 %v8129_v41, %v9477_v1 }
 0x544   : > { %v1931_v56 = vmul.f32 %v8131_v7, %v9481_v40 }
 0x546   : > { %6965 = vmatprep.mubr.msk.f32.mxu1 %vm782_vm7, %v1931_v56 }
 0x547   : > { %6966 = vmatmul.mubr.msk.f32.gmra.mrb[66].mxu1 %vm782_vm7, %v1932_v11 }
 0x568   : > { %v2292_v19 = vpop.xlane.xlu0 %2291 }
 0x569   : > { %8132 = vrcp.f32 %v2292_v19  ;;  %v2289_v32 = vpop.xlane.xlu1 %2288 }
 0x56a   : > { %8134 = vrcp.f32 %v2289_v32 }
 0x56d   : > { %v2298_v6 = vpop.xlane.xlu1 %2297 }
 0x56e   : > { %8136 = vrcp.f32 %v2298_v6 }
 0x570   : > { %v2304_v10 = vpop.xlane.xlu0 %2303 }
 0x571   : > { %v2295_v30 = vpop.xlane.xlu1 %2294 }
 0x572   : > { %8138 = vrcp.f32 %v2295_v30 }
 0x573   : > { %v8133_v47 = vpop.eup %8132  ;;  %8140 = vrcp.f32 %v2304_v10 }
 0x574   : > { %v8135_v2 = vpop.eup %8134  ;;  %v2320_v1 = vmul.f32 %v8133_v47, %v9494_v57 }
 0x575   : > { %v2301_v48 = vpop.xlane.xlu1 %2300  ;;  %v2319_v40 = vmul.f32 %v8135_v2, %v9496_v63 }
 0x576   : > { %8142 = vrcp.f32 %v2301_v48  ;;  %v11135_v48 = vld [vmem:[#allocation53_spill] sm:$0xff] }
 0x577   : > { %7012 = vmatprep.mubr.msk.f32.mxu1 %vm782_vm7, %v2319_v40 }
 0x578   : > { %7013 = vmatmul.mubr.msk.f32.vlgmr.msra.gmra.mrb[68].mxu1 %vm782_vm7, %v2320_v1  ;;  %v8137_v3 = vpop.eup %8136  ;;  %v11136_v1 = vld [vmem:[#allocation59_spill] sm:$0xff] }
 0x579   : > { %7513 = vmatpush3.bf16.msra.mxu1 %v9202_v5  ;;  %v2310_v36 = vpop.xlane.xlu1 %2309  ;;  %v2322_v57 = vmul.f32 %v8137_v3, %v9503_v62 }
 0x57a   : > { %7515 = vmatprep.subr.bf16.mxu1 %v9227_v16  ;;  %8144 = vrcp.f32 %v2310_v36 }
 0x57c   : > { %v8139_v24 = vpop.eup %8138 }
 0x57d   : > { %7517 = vmatpush3.bf16.msra.mxu1 %v9227_v16  ;;  %v2307_v18 = vpop.xlane.xlu1 %2306  ;;  %v2321_v63 = vmul.f32 %v8139_v24, %v9507_v33  ;;  %v8141_v44 = vpop.eup %8140 }
 0x57e   : > { %8146 = vrcp.f32 %v2307_v18  ;;  %7519 = vmatprep.subr.bf16.mxu1 %v9254_v61  ;;  %v2324_v16 = vmul.f32 %v8141_v44, %v9509_v35 }
 0x57f   : > { %7015 = vmatprep.mubr.msk.f32.mxu1 %vm782_vm7, %v2321_v63 }
 0x580   : > { %v8143_v5 = vpop.eup %8142  ;;  %7016 = vmatmul.mubr.msk.f32.gmra.mrb[70].mxu1 %vm782_vm7, %v2322_v57 }
 0x581   : > { %7521 = vmatpush3.bf16.msra.mxu1 %v9254_v61  ;;  %v2323_v46 = vmul.f32 %v8143_v5, %v9515_v26 }
 0x582   : > { %7523 = vmatprep.subr.bf16.mxu1 %v9272_v17 }
 0x583   : > { %7018 = vmatprep.mubr.msk.f32.mxu1 %vm782_vm7, %v2323_v46 }
 0x584   : > { %7019 = vmatmul.mubr.msk.f32.gmra.mrb[72].mxu1 %vm782_vm7, %v2324_v16  ;;  %v8145_v62 = vpop.eup %8144 }
 0x585   : > { %7525 = vmatpush3.bf16.msra.mxu1 %v9272_v17  ;;  %v2326_v61 = vmul.f32 %v8145_v62, %v9519_v13 }
 0x588   : > { %v8147_v33 = vpop.eup %8146  ;;  %v2702_v53 = vpop.xlane.xlu1 %2701 }
 0x589   : > { %8148 = vrcp.f32 %v2702_v53  ;;  %v2699_v58 = vpop.xlane.xlu0 %2698  ;;  %v2325_v12 = vmul.f32 %v8147_v33, %v9524_v28 }
 0x58a   : > { %8150 = vrcp.f32 %v2699_v58 }
 0x58b   : > { %7021 = vmatprep.mubr.msk.f32.mxu1 %vm782_vm7, %v2325_v12 }
 0x58c   : > { %v7870_v26 = vpop.permute.xlu1 %7869  ;;  %7022 = vmatmul.mubr.msk.f32.gmra.mrb[74].mxu1 %vm782_vm7, %v2326_v61 }
 0x58d   : > { %v7872_v35 = vunpack.i.h.bf16 %v7870_v26  ;;  %v7871_v50 = vunpack.i.l.bf16 %v7870_v26  ;;  %v2708_v8 = vpop.xlane.xlu0 %2707 }
 0x58e   : > { %8152 = vrcp.f32 %v2708_v8 }
 0x58f   : > { %v7526_v60 = vpack.c.bf16 %v7872_v35, %v7871_v50 }
 0x591   : > { %v2705_v17 = vpop.xlane.xlu0 %2704  ;;  %7528 = vmatprep.subr.msk.bf16.mxu1 %vm9068_vm9, %v7526_v60 }
 0x592   : > { %8154 = vrcp.f32 %v2705_v17 }
 0x593   : > { %v8149_v23 = vpop.eup %8148 }
 0x594   : > { %v8151_v28 = vpop.eup %8150  ;;  %v2730_v51 = vmul.f32 %v8149_v23, %v9533_v34 }
 0x595   : > { %v2714_v45 = vpop.xlane.xlu0 %2713  ;;  %v2729_v13 = vmul.f32 %v8151_v28, %v9535_v22  ;;  %v7880_v22 = vpop.permute.xlu1 %7879 }
 0x596   : > { %8156 = vrcp.f32 %v2714_v45  ;;  %v7882_v38 = vunpack.i.h.bf16 %v7880_v22  ;;  %v7881_v43 = vunpack.i.l.bf16 %v7880_v22 }
 0x597   : > { %7068 = vmatprep.mubr.msk.f32.mxu1 %vm782_vm7, %v2729_v13 }
 0x598   : > { %7069 = vmatmul.mubr.msk.f32.vlgmr.msra.gmra.mrb[76].mxu1 %vm782_vm7, %v2730_v51  ;;  %v8153_v0 = vpop.eup %8152  ;;  %v7538_v7 = vpack.c.bf16 %v7882_v38, %v7881_v43 }
 0x599   : > { %7531 = vmatpush3.bf16.xpose.msk.msra.mxu1 %vm9068_vm9, %v7526_v60  ;;  %v2711_v55 = vpop.xlane.xlu0 %2710  ;;  %v2732_v9 = vmul.f32 %v8153_v0, %v9542_v37  ;;  %v7885_v56 = vpop.permute.xlu1 %7884 }
 0x59a   : > { %8158 = vrcp.f32 %v2711_v55  ;;  %v7887_v19 = vunpack.i.h.bf16 %v7885_v56  ;;  %v7886_v32 = vunpack.i.l.bf16 %v7885_v56 }
 0x59c   : > { %v8155_v25 = vpop.eup %8154  ;;  %v7544_v10 = vpack.c.bf16 %v7887_v19, %v7886_v32 }
 0x59d   : > { %v2720_v15 = vpop.xlane.xlu0 %2719  ;;  %v2731_v52 = vmul.f32 %v8155_v25, %v9547_v54  ;;  %v2867_v30 = vpop.permute.xlu1 %2866 }
 0x59e   : > { %8160 = vrcp.f32 %v2720_v15 }
 0x59f   : > { %7071 = vmatprep.mubr.msk.f32.mxu1 %vm782_vm7, %v2731_v52 }
 0x5a0   : > { %7072 = vmatmul.mubr.msk.f32.gmra.mrb[78].mxu1 %vm782_vm7, %v2732_v9  ;;  %v8157_v59 = vpop.eup %8156 }
 0x5a1   : > { %v2717_v34 = vpop.xlane.xlu0 %2716  ;;  %v2734_v54 = vmul.f32 %v8157_v59, %v9549_v14  ;;  %v2869_v47 = vpop.permute.xlu1 %2868 }
 0x5a2   : > { %8162 = vrcp.f32 %v2717_v34 }
 0x5a4   : > { %v8159_v21 = vpop.eup %8158 }
 0x5a5   : > { %v7875_v31 = vpop.permute.xlu0 %7874  ;;  %v2733_v4 = vmul.f32 %v8159_v21, %v9559_v42 }
 0x5a6   : > { %v7877_v39 = vunpack.i.h.bf16 %v7875_v31  ;;  %v7876_v41 = vunpack.i.l.bf16 %v7875_v31 }
 0x5a7   : > { %7074 = vmatprep.mubr.msk.f32.mxu1 %vm782_vm7, %v2733_v4 }
 0x5a8   : > { %v7532_v37 = vpack.c.bf16 %v7877_v39, %v7876_v41  ;;  %7075 = vmatmul.mubr.msk.f32.gmra.mrb[80].mxu1 %vm782_vm7, %v2734_v54  ;;  %v8161_v11 = vpop.eup %8160 }
 0x5a9   : > { %v2736_v6 = vmul.f32 %v8161_v11, %v9566_v27  ;;  %v2871_v27 = vpop.permute.xlu0 %2870 }
 0x5aa   : > { %7534 = vmatprep.subr.msk.bf16.mxu1 %vm9068_vm9, %v7532_v37 }
 0x5ab   : > { %7537 = vmatpush3.bf16.xpose.msk.msra.mxu1 %vm9068_vm9, %v7532_v37 }
 0x5ac   : > { %v8163_v42 = vpop.eup %8162  ;;  %7540 = vmatprep.subr.msk.bf16.mxu1 %vm9068_vm9, %v7538_v7 }
 0x5ad   : > { %v2735_v14 = vmul.f32 %v8163_v42, %v9574_v49  ;;  %v2873_v49 = vpop.permute.xlu1 %2872  ;;  %v2875_v2 = vpop.permute.xlu0 %2874  ;;  %v11150_v42 = vld [vmem:[#allocation69_spill] sm:$0xff] }
 0x5af   : > { %7077 = vmatprep.mubr.msk.f32.mxu1 %vm782_vm7, %v2735_v14  ;;  %v11151_v14 = vld [vmem:[#allocation68_spill] sm:$0xff] }
 0x5b0   : > { %7078 = vmatmul.mubr.msk.f32.gmra.mrb[82].mxu1 %vm782_vm7, %v2736_v6  ;;  %v11152_v19 = vpack.i.bf16 %v11150_v42, %v11151_v14 }
 0x5b1   : > { %7096 = vmatprep.mubr.msk.f32.mxu1 %vm782_vm7, %v2867_v30  ;;  %v2877_v40 = vpop.permute.xlu1 %2876  ;;  %v2879_v36 = vpop.permute.xlu0 %2878  ;;  %v11153_v30 = vld [vmem:[#allocation73_spill] sm:$0xff] }
 0x5b3   : > { %7543 = vmatpush3.bf16.xpose.msk.msra.mxu1 %vm9068_vm9, %v7538_v7 }
 0x5b4   : > { %7546 = vmatprep.subr.msk.bf16.mxu1 %vm9068_vm9, %v7544_v10 }
 0x5b5   : > { %v2881_v3 = vpop.permute.xlu1 %2880 }
 0x5bb   : > { %7549 = vmatpush3.bf16.xpose.msk.msra.mxu1 %vm9068_vm9, %v7544_v10  ;;  %v11154_v10 = vld [vmem:[#allocation72_spill] sm:$0xff] }
 0x5bc   : > { %7591 = vmatprep.subr.bf16.mxu1 %v9050_v20 }
 0x5c2   : > { %7097 = vmatmul.mubr.msk.f32.vlgmr.msra.gmra.mrb[84].mxu1 %vm782_vm7, %v2869_v47  ;;  %v11155_v47 = vpack.i.bf16 %v11153_v30, %v11154_v10 }
 0x5c3   : > { %7099 = vmatprep.mubr.msk.f32.mxu1 %vm782_vm7, %v2871_v27  ;;  %7593 = vmatpush3.bf16.msra.mxu1 %v9050_v20  ;;  %v11137_v20 = vld [vmem:[#allocation65_spill] sm:$0xff] }
 0x5c4   : > { %7595 = vmatprep.subr.bf16.mxu1 %v11135_v48 }
 0x5c6   : > { %7100 = vmatmul.mubr.msk.f32.gmra.mrb[86].mxu1 %vm782_vm7, %v2873_v49 }
 0x5c7   : > { %7102 = vmatprep.mubr.msk.f32.mxu1 %vm782_vm7, %v2875_v2  ;;  %7597 = vmatpush3.bf16.msra.mxu1 %v11135_v48 }
 0x5c8   : > { %7599 = vmatprep.subr.bf16.mxu1 %v11136_v1 }
 0x5ca   : > { %7103 = vmatmul.mubr.msk.f32.gmra.mrb[88].mxu1 %vm782_vm7, %v2877_v40 }
 0x5cb   : > { %7105 = vmatprep.mubr.msk.f32.mxu1 %vm782_vm7, %v2879_v36  ;;  %7601 = vmatpush3.bf16.msra.mxu1 %v11136_v1 }
 0x5cc   : > { %7603 = vmatprep.subr.bf16.mxu1 %v11137_v20 }
 0x5ce   : > { %7106 = vmatmul.mubr.msk.f32.gmra.mrb[90].mxu1 %vm782_vm7, %v2881_v3 }
 0x5cf   : > { %7605 = vmatpush3.bf16.msra.mxu1 %v11137_v20 }
 0x5da   : > { %v9690_v24 = vpop.f32.mrb[60].mxu1 }
 0x5db   : > { %v9692_v18 = vpop.f32.mrb[61].mxu1 }
 0x612   : > { %v9694_v63 = vpop.f32.mrb[62].mxu1 }
 0x613   : > { %11138 = vst [vmem:[#allocation53_spill] sm:$0xff] %v9694_v63  ;;  %v9696_v57 = vpop.f32.mrb[63].mxu1 }
 0x614   : > { %11139 = vst [vmem:[#allocation59_spill] sm:$0xff] %v9696_v57 }
 0x616   : > { %v9698_v44 = vpop.f32.mrb[64].mxu1 }
 0x617   : > { %11140 = vst [vmem:[#allocation65_spill] sm:$0xff] %v9698_v44  ;;  %v9700_v5 = vpop.f32.mrb[65].mxu1 }
 0x618   : > { %11141 = vst [vmem:[#allocation76_spill] sm:$0xff] %v9700_v5 }
 0x61a   : > { %v9702_v46 = vpop.f32.mrb[66].mxu1 }
 0x61b   : > { %11142 = vst [vmem:[#allocation77_spill] sm:$0xff] %v9702_v46  ;;  %v9704_v16 = vpop.f32.mrb[67].mxu1 }
 0x61c   : > { %11143 = vst [vmem:[#allocation78_spill] sm:$0xff] %v9704_v16 }
 0x64b   : > { %v9706_v62 = vpop.f32.mrb[68].mxu1 }
 0x64c   : > { %v9708_v33 = vpop.f32.mrb[69].mxu1 }
 0x653   : > { %v9710_v53 = vpop.f32.mrb[70].mxu1 }
 0x654   : > { %v9712_v58 = vpop.f32.mrb[71].mxu1 }
 0x657   : > { %v9714_v12 = vpop.f32.mrb[72].mxu1 }
 0x658   : > { %v9716_v61 = vpop.f32.mrb[73].mxu1 }
 0x65f   : > { %v9718_v26 = vpop.f32.mrb[74].mxu1 }
 0x660   : > { %v9720_v35 = vpop.f32.mrb[75].mxu1 }
 0x66b   : > { %v9722_v50 = vpop.f32.mrb[76].mxu1 }
 0x66c   : > { %v9724_v8 = vpop.f32.mrb[77].mxu1 }
 0x673   : > { %v9726_v60 = vpop.f32.mrb[78].mxu1 }
 0x674   : > { %11144 = vst [vmem:[#allocation79_spill] sm:$0xff] %v9726_v60  ;;  %v9728_v17 = vpop.f32.mrb[79].mxu1 }
 0x675   : > { %11145 = vst [vmem:[#allocation80_spill] sm:$0xff] %v9728_v17 }
 0x67b   : > { %v9730_v23 = vpop.f32.mrb[80].mxu1 }
 0x67c   : > { %11146 = vst [vmem:[#allocation81_spill] sm:$0xff] %v9730_v23  ;;  %v9732_v28 = vpop.f32.mrb[81].mxu1 }
 0x67d   : > { %11147 = vst [vmem:[#allocation82_spill] sm:$0xff] %v9732_v28 }
 0x683   : > { %v9734_v45 = vpop.f32.mrb[82].mxu1 }
 0x684   : > { %11148 = vst [vmem:[#allocation83_spill] sm:$0xff] %v9734_v45  ;;  %v9736_v13 = vpop.f32.mrb[83].mxu1 }
 0x685   : > { %11149 = vst [vmem:[#allocation84_spill] sm:$0xff] %v9736_v13 }
 0x695   : > { %v7098_v51 = vpop.f32.mrb[84].mxu1 }
 0x696   : > { %v3036_v55 = vmul.f32 0.125, %v7098_v51  ;;  %v2996_v0 = vpop.f32.mrb[85].mxu1 }
 0x697   : > { %v3035_v25 = vmul.f32 0.125, %v2996_v0 }
 0x698   : > { %v3046_v15 = vsel %vm782_vm7, %v3036_v55, -inf }
 0x699   : > { %3047 = vmax.xlane.f32.xlu1 %v3046_v15  ;;  %v7101_v52 = vpop.f32.mrb[86].mxu1  ;;  %v3043_v9 = vsel %vm782_vm7, %v3035_v25, -inf }
 0x69a   : > { %3044 = vmax.xlane.f32.xlu0 %v3043_v9  ;;  %v3006_v34 = vpop.f32.mrb[87].mxu1  ;;  %v3038_v59 = vmul.f32 0.125, %v7101_v52 }
 0x69b   : > { %v3037_v22 = vmul.f32 0.125, %v3006_v34  ;;  %v11157_v34 = vld [vmem:[#allocation74_spill] sm:$0xff] }
 0x69c   : > { %v3052_v41 = vsel %vm782_vm7, %v3038_v59, -inf }
 0x69d   : > { %v7104_v21 = vpop.f32.mrb[88].mxu1  ;;  %v3049_v38 = vsel %vm782_vm7, %v3037_v22, -inf }
 0x69e   : > { %3050 = vmax.xlane.f32.xlu0 %v3049_v38  ;;  %v3016_v31 = vpop.f32.mrb[89].mxu1  ;;  %v3040_v43 = vmul.f32 0.125, %v7104_v21 }
 0x69f   : > { %v3039_v4 = vmul.f32 0.125, %v3016_v31  ;;  %v11159_v31 = vld [vmem:[#allocation71_spill] sm:$0xff] }
 0x6a0   : > { %v3058_v56 = vsel %vm782_vm7, %v3040_v43, -inf }
 0x6a1   : > { %v7107_v39 = vpop.f32.mrb[90].mxu1  ;;  %v3055_v54 = vsel %vm782_vm7, %v3039_v4, -inf }
 0x6a2   : > { %3053 = vmax.xlane.f32.xlu0 %v3052_v41  ;;  %3056 = vmax.xlane.f32.xlu1 %v3055_v54  ;;  %v3026_v37 = vpop.f32.mrb[91].mxu1  ;;  %v3042_v7 = vmul.f32 0.125, %v7107_v39  ;;  %v11160_v39 = vld [vmem:[#allocation70_spill] sm:$0xff] }
 0x6a3   : > { %v3041_v32 = vmul.f32 0.125, %v3026_v37  ;;  %v11161_v41 = vpack.i.bf16 %v11159_v31, %v11160_v39 }
 0x6a4   : > { %v3064_v11 = vsel %vm782_vm7, %v3042_v7, -inf }
 0x6a5   : > { %v3061_v6 = vsel %vm782_vm7, %v3041_v32, -inf }
 0x6a6   : > { %3059 = vmax.xlane.f32.xlu0 %v3058_v56 }
 0x6aa   : > { %3065 = vmax.xlane.f32.xlu0 %v3064_v11 }
 0x6b3   : > { %7889 = vrot.lane.b32.xlu1 %v11152_v19, %s8355_s17 }
 0x6d7   : > { %3062 = vmax.xlane.f32.xlu1 %v3061_v6 }
 0x6e8   : > { %7899 = vrot.lane.b32.xlu1 %v11155_v47, %s8355_s17 }
 0x726   : > { %v3048_v27 = vpop.xlane.xlu1 %3047 }
 0x727   : > { %v3068_v49 = vsub.f32 %v3036_v55, %v3048_v27  ;;  %v3045_v2 = vpop.xlane.xlu0 %3044 }
 0x728   : > { %v3067_v48 = vsub.f32 %v3035_v25, %v3045_v2  ;;  %v11156_v25 = vld [vmem:[#allocation75_spill] sm:$0xff] }
 0x729   : > { %v3077_v40 = vmul.f32 1.442695, %v3068_v49  ;;  %v11158_v21 = vpack.i.bf16 %v11156_v25, %v11157_v34 }
 0x72a   : > { %v3075_v1 = vmul.f32 1.442695, %v3067_v48 }
 0x72b   : > { %8164 = vpow2.f32 %v3077_v40  ;;  %v3051_v38 = vpop.xlane.xlu0 %3050 }
 0x72c   : > { %8166 = vpow2.f32 %v3075_v1  ;;  %v3069_v37 = vsub.f32 %v3037_v22, %v3051_v38 }
 0x72e   : > { %v3079_v42 = vmul.f32 1.442695, %v3069_v37 }
 0x72f   : > { %v3057_v36 = vpop.xlane.xlu1 %3056  ;;  %v3054_v54 = vpop.xlane.xlu0 %3053 }
 0x730   : > { %v3070_v56 = vsub.f32 %v3038_v59, %v3054_v54  ;;  %v3071_v14 = vsub.f32 %v3039_v4, %v3057_v36  ;;  %8168 = vpow2.f32 %v3079_v42 }
 0x732   : > { %v3081_v19 = vmul.f32 1.442695, %v3070_v56  ;;  %v3083_v6 = vmul.f32 1.442695, %v3071_v14 }
 0x733   : > { %v7890_v20 = vpop.permute.xlu1 %7889  ;;  %v3060_v11 = vpop.xlane.xlu0 %3059 }
 0x734   : > { %v7892_v3 = vunpack.i.h.bf16 %v7890_v20  ;;  %v7891_v51 = vunpack.i.l.bf16 %v7890_v20  ;;  %v3072_v30 = vsub.f32 %v3040_v43, %v3060_v11  ;;  %8170 = vpow2.f32 %v3081_v19 }
 0x735   : > { %v9754_v0 = vpop.eup %8164  ;;  %8172 = vpow2.f32 %v3083_v6 }
 0x736   : > { %v9756_v15 = vpop.eup %8166  ;;  %v3094_v52 = vsel %vm782_vm7, %v9754_v0, 0.0  ;;  %v7550_v9 = vpack.c.bf16 %v7892_v3, %v7891_v51  ;;  %v3085_v47 = vmul.f32 1.442695, %v3072_v30 }
 0x737   : > { %3095 = vadd.xlane.f32.xlu0 %v3094_v52  ;;  %v3091_v55 = vsel %vm782_vm7, %v9756_v15, 0.0  ;;  %v3066_v10 = vpop.xlane.xlu0 %3065 }
 0x738   : > { %7551 = vmatprep.subr.bf16.mxu0 %v7550_v9  ;;  %3092 = vadd.xlane.f32.xlu1 %v3091_v55  ;;  %v3074_v27 = vsub.f32 %v3042_v7, %v3066_v10  ;;  %8174 = vpow2.f32 %v3085_v47  ;;  %v11162_v10 = vld [vmem:[#allocation20_spill] sm:$0xff]  ;;  %v11163_v47 = vld [vmem:[#allocation26_spill] sm:$0xff] }
 0x739   : > { %7553 = vmatpush3.bf16.msra.mxu0 %v7550_v9 }
 0x73a   : > { %v3089_v48 = vmul.f32 1.442695, %v3074_v27  ;;  %v9770_v1 = vpop.eup %8168 }
 0x73b   : > { %v3097_v59 = vsel %vm782_vm7, %v9770_v1, 0.0 }
 0x73e   : > { %v9772_v22 = vpop.eup %8170 }
 0x73f   : > { %v9776_v4 = vpop.eup %8172  ;;  %v3100_v43 = vsel %vm782_vm7, %v9772_v22, 0.0 }
 0x740   : > { %v3103_v7 = vsel %vm782_vm7, %v9776_v4, 0.0 }
 0x749   : > { %7904 = vrot.lane.b32.xlu1 %v11158_v21, %s8355_s17 }
 0x74d   : > { %7894 = vrot.lane.b32.xlu0 %v11161_v41, %s8355_s17 }
 0x764   : > { %v3063_v49 = vpop.xlane.xlu1 %3062 }
 0x765   : > { %v3073_v2 = vsub.f32 %v3041_v32, %v3063_v49  ;;  %v9782_v32 = vpop.eup %8174 }
 0x766   : > { %v3106_v20 = vsel %vm782_vm7, %v9782_v32, 0.0 }
 0x767   : > { %v3087_v40 = vmul.f32 1.442695, %v3073_v2 }
 0x768   : > { %v7900_v9 = vpop.permute.xlu1 %7899 }
 0x769   : > { %8176 = vpow2.f32 %v3087_v40  ;;  %v7902_v21 = vunpack.i.h.bf16 %v7900_v9  ;;  %v7901_v38 = vunpack.i.l.bf16 %v7900_v9 }
 0x76a   : > { %8178 = vpow2.f32 %v3089_v48 }
 0x76b   : > { %v7558_v11 = vpack.c.bf16 %v7902_v21, %v7901_v38  ;;  %v11166_v38 = vld [vmem:[#allocation5_spill] sm:$0xff] }
 0x76c   : > { %3098 = vadd.xlane.f32.xlu0 %v3097_v59 }
 0x76d   : > { %3101 = vadd.xlane.f32.xlu1 %v3100_v43 }
 0x770   : > { %3104 = vadd.xlane.f32.xlu0 %v3103_v7 }
 0x773   : > { %v9784_v36 = vpop.eup %8176 }
 0x774   : > { %v9788_v3 = vpop.eup %8178  ;;  %3107 = vadd.xlane.f32.xlu0 %v3106_v20  ;;  %v3109_v51 = vsel %vm782_vm7, %v9784_v36, 0.0 }
 0x775   : > { %3110 = vadd.xlane.f32.xlu1 %v3109_v51  ;;  %v3112_v52 = vsel %vm782_vm7, %v9788_v3, 0.0 }
 0x778   : > { %3113 = vadd.xlane.f32.xlu0 %v3112_v52 }
 0x7c4   : > { %v3096_v55 = vpop.xlane.xlu0 %3095 }
 0x7c5   : > { %v3093_v25 = vpop.xlane.xlu1 %3092 }
 0x7c6   : > { %8180 = vrcp.f32 %v3093_v25 }
 0x7c7   : > { %8182 = vrcp.f32 %v3096_v55 }
 0x7c8   : > { %v7895_v34 = vpop.permute.xlu0 %7894 }
 0x7c9   : > { %v7897_v31 = vunpack.i.h.bf16 %v7895_v34  ;;  %v7896_v39 = vunpack.i.l.bf16 %v7895_v34  ;;  %v7905_v41 = vpop.permute.xlu1 %7904 }
 0x7ca   : > { %v7907_v37 = vunpack.i.h.bf16 %v7905_v41  ;;  %v7906_v56 = vunpack.i.l.bf16 %v7905_v41  ;;  %v11173_v41 = vld [vmem:[#allocation44_spill] sm:$0xff] }
 0x7cb   : > { %v7554_v54 = vpack.c.bf16 %v7897_v31, %v7896_v39  ;;  %v11168_v31 = vld [vmem:[#allocation9_spill] sm:$0xff]  ;;  %v11171_v39 = vld [vmem:[#allocation15_spill] sm:$0xff] }
 0x7cc   : > { %v7562_v14 = vpack.c.bf16 %v7907_v37, %v7906_v56 }
 0x7cd   : > { %7555 = vmatprep.subr.bf16.mxu0 %v7554_v54 }
 0x7ce   : > { %7557 = vmatpush3.bf16.msra.mxu0 %v7554_v54 }
 0x7cf   : > { %7559 = vmatprep.subr.bf16.mxu0 %v7558_v11 }
 0x7d0   : > { %v8181_v42 = vpop.eup %8180 }
 0x7d1   : > { %v3123_v19 = vmul.f32 %v8181_v42, %v9756_v15  ;;  %v8183_v6 = vpop.eup %8182  ;;  %v11164_v15 = vld [vmem:[#allocation32_spill] sm:$0xff] }
 0x7d2   : > { %7561 = vmatpush3.bf16.msra.mxu0 %v7558_v11  ;;  %v3124_v30 = vmul.f32 %v8183_v6, %v9754_v0  ;;  %v11165_v0 = vld [vmem:[#allocation38_spill] sm:$0xff] }
 0x7d3   : > { %7563 = vmatprep.subr.bf16.mxu0 %v7562_v14  ;;  %7124 = vmatprep.mubr.msk.f32.mxu0 %vm782_vm7, %v3123_v19 }
 0x7d6   : > { %7565 = vmatpush3.bf16.msra.mxu0 %v7562_v14 }
 0x7d7   : > { %7568 = vmatprep.subr.msk.bf16.mxu0 %vm9068_vm9, %v11162_v10 }
 0x7d9   : > { %7125 = vmatmul.mubr.msk.f32.vlgmr.msra.gmra.mrb[68].mxu0 %vm782_vm7, %v3124_v30 }
 0x7df   : > { %7571 = vmatpush3.bf16.xpose.msk.msra.mxu0 %vm9068_vm9, %v11162_v10 }
 0x7e0   : > { %7574 = vmatprep.subr.msk.bf16.mxu0 %vm9068_vm9, %v11163_v47 }
 0x7e7   : > { %7577 = vmatpush3.bf16.xpose.msk.msra.mxu0 %vm9068_vm9, %v11163_v47 }
 0x7e8   : > { %7580 = vmatprep.subr.msk.bf16.mxu0 %vm9068_vm9, %v11164_v15 }
 0x7ef   : > { %7583 = vmatpush3.bf16.xpose.msk.msra.mxu0 %vm9068_vm9, %v11164_v15 }
 0x7f0   : > { %7586 = vmatprep.subr.msk.bf16.mxu0 %vm9068_vm9, %v11165_v0 }
 0x7f7   : > { %7589 = vmatpush3.bf16.xpose.msk.msra.mxu0 %vm9068_vm9, %v11165_v0 }
 0x7f9   : > { %v3099_v27 = vpop.xlane.xlu0 %3098 }
 0x7fa   : > { %8184 = vrcp.f32 %v3099_v27  ;;  %v3102_v49 = vpop.xlane.xlu1 %3101 }
 0x7fb   : > { %8186 = vrcp.f32 %v3102_v49 }
 0x7fd   : > { %v3105_v2 = vpop.xlane.xlu0 %3104 }
 0x7fe   : > { %8188 = vrcp.f32 %v3105_v2 }
 0x801   : > { %v3108_v48 = vpop.xlane.xlu0 %3107 }
 0x802   : > { %8190 = vrcp.f32 %v3108_v48  ;;  %v3111_v40 = vpop.xlane.xlu1 %3110 }
 0x803   : > { %8192 = vrcp.f32 %v3111_v40 }
 0x804   : > { %v8185_v59 = vpop.eup %8184 }
 0x805   : > { %v8187_v43 = vpop.eup %8186  ;;  %v3114_v7 = vpop.xlane.xlu0 %3113  ;;  %v3125_v20 = vmul.f32 %v8185_v59, %v9770_v1 }
 0x806   : > { %8194 = vrcp.f32 %v3114_v7  ;;  %v3126_v51 = vmul.f32 %v8187_v43, %v9772_v22 }
 0x807   : > { %7127 = vmatprep.mubr.msk.f32.mxu0 %vm782_vm7, %v3125_v20 }
 0x808   : > { %v8189_v52 = vpop.eup %8188  ;;  %7128 = vmatmul.mubr.msk.f32.gmra.mrb[70].mxu0 %vm782_vm7, %v3126_v51 }
 0x809   : > { %v3127_v9 = vmul.f32 %v8189_v52, %v9776_v4  ;;  %v11167_v4 = vld [vmem:[#allocation7_spill] sm:$0xff] }
 0x80b   : > { %7130 = vmatprep.mubr.msk.f32.mxu0 %vm782_vm7, %v3127_v9 }
 0x80c   : > { %v8191_v55 = vpop.eup %8190 }
 0x80d   : > { %v8193_v25 = vpop.eup %8192  ;;  %v3128_v34 = vmul.f32 %v8191_v55, %v9782_v32  ;;  %v11169_v32 = vld [vmem:[#allocation11_spill] sm:$0xff] }
 0x80e   : > { %v3129_v21 = vmul.f32 %v8193_v25, %v9784_v36  ;;  %v11170_v36 = vld [vmem:[#allocation13_spill] sm:$0xff] }
 0x80f   : > { %7131 = vmatmul.mubr.msk.f32.gmra.mrb[72].mxu0 %vm782_vm7, %v3128_v34 }
 0x810   : > { %v8195_v1 = vpop.eup %8194  ;;  %7133 = vmatprep.mubr.msk.f32.mxu0 %vm782_vm7, %v3129_v21 }
 0x811   : > { %v3130_v22 = vmul.f32 %v8195_v1, %v9788_v3  ;;  %v11172_v3 = vld [vmem:[#allocation39_spill] sm:$0xff] }
 0x813   : > { %7134 = vmatmul.mubr.msk.f32.gmra.mrb[74].mxu0 %vm782_vm7, %v3130_v22 }
 0x814   : > { %7152 = vmatprep.mubr.msk.f32.mxu0 %vm782_vm7, %v11166_v38 }
 0x817   : > { %7153 = vmatmul.mubr.msk.f32.vlgmr.msra.gmra.mrb[76].mxu0 %vm782_vm7, %v11167_v4 }
 0x818   : > { %7155 = vmatprep.mubr.msk.f32.mxu0 %vm782_vm7, %v11168_v31 }
 0x81b   : > { %7156 = vmatmul.mubr.msk.f32.gmra.mrb[78].mxu0 %vm782_vm7, %v11169_v32 }
 0x81c   : > { %7158 = vmatprep.mubr.msk.f32.mxu0 %vm782_vm7, %v11170_v36 }
 0x81f   : > { %7159 = vmatmul.mubr.msk.f32.gmra.mrb[80].mxu0 %vm782_vm7, %v11171_v39 }
 0x820   : > { %7161 = vmatprep.mubr.msk.f32.mxu0 %vm782_vm7, %v11172_v3 }
 0x823   : > { %7162 = vmatmul.mubr.msk.f32.gmra.mrb[82].mxu0 %vm782_vm7, %v11173_v41 }
 0x8ac   : > { %v9850_v54 = vpop.f32.mrb[68].mxu0 }
 0x8ad   : > { %v9854_v56 = vpop.f32.mrb[69].mxu0 }
 0x8db   : > { %v9858_v42 = vpop.f32.mrb[70].mxu0 }
 0x8dc   : > { %v9862_v19 = vpop.f32.mrb[71].mxu0 }
 0x8e2   : > { %v9866_v30 = vpop.f32.mrb[72].mxu0 }
 0x8e3   : > { %v9870_v47 = vpop.f32.mrb[73].mxu0 }
 0x8e6   : > { %v9874_v0 = vpop.f32.mrb[74].mxu0 }
 0x8e7   : > { %v9878_v49 = vpop.f32.mrb[75].mxu0 }
 0x8ea   : > { %v7154_v48 = vpop.f32.mrb[76].mxu0 }
 0x8eb   : > { %v3446_v40 = vmul.f32 0.125, %v7154_v48  ;;  %v3406_v59 = vpop.f32.mrb[77].mxu0 }
 0x8ec   : > { %v3445_v43 = vmul.f32 0.125, %v3406_v59 }
 0x8ed   : > { %v3456_v7 = vsel %vm782_vm7, %v3446_v40, -inf }
 0x8ee   : > { %3457 = vmax.xlane.f32.xlu0 %v3456_v7  ;;  %v7157_v20 = vpop.f32.mrb[78].mxu0  ;;  %v3453_v51 = vsel %vm782_vm7, %v3445_v43, -inf }
 0x8ef   : > { %v3448_v52 = vmul.f32 0.125, %v7157_v20  ;;  %3454 = vmax.xlane.f32.xlu1 %v3453_v51  ;;  %v3416_v9 = vpop.f32.mrb[79].mxu0 }
 0x8f0   : > { %v3447_v55 = vmul.f32 0.125, %v3416_v9 }
 0x8f1   : > { %v3462_v25 = vsel %vm782_vm7, %v3448_v52, -inf }
 0x8f2   : > { %3463 = vmax.xlane.f32.xlu0 %v3462_v25  ;;  %v7160_v34 = vpop.f32.mrb[80].mxu0  ;;  %v3459_v21 = vsel %vm782_vm7, %v3447_v55, -inf }
 0x8f3   : > { %v3450_v1 = vmul.f32 0.125, %v7160_v34  ;;  %3460 = vmax.xlane.f32.xlu1 %v3459_v21  ;;  %v3426_v22 = vpop.f32.mrb[81].mxu0  ;;  %v11174_v34 = vld [vmem:[#allocation19_spill] sm:$0xff]  ;;  %v11175_v21 = vld [vmem:[#allocation17_spill] sm:$0xff] }
 0x8f4   : > { %v3449_v48 = vmul.f32 0.125, %v3426_v22  ;;  %v11176_v22 = vpack.i.bf16 %v11174_v34, %v11175_v21 }
 0x8f5   : > { %v3468_v59 = vsel %vm782_vm7, %v3450_v1, -inf }
 0x8f6   : > { %3469 = vmax.xlane.f32.xlu0 %v3468_v59  ;;  %v7163_v7 = vpop.f32.mrb[82].mxu0  ;;  %v3465_v27 = vsel %vm782_vm7, %v3449_v48, -inf }
 0x8f7   : > { %v3452_v20 = vmul.f32 0.125, %v7163_v7  ;;  %3466 = vmax.xlane.f32.xlu1 %v3465_v27  ;;  %v3436_v51 = vpop.f32.mrb[83].mxu0 }
 0x8f8   : > { %v3451_v9 = vmul.f32 0.125, %v3436_v51 }
 0x8f9   : > { %v3474_v2 = vsel %vm782_vm7, %v3452_v20, -inf }
 0x8fa   : > { %3475 = vmax.xlane.f32.xlu0 %v3474_v2  ;;  %v3471_v25 = vsel %vm782_vm7, %v3451_v9, -inf }
 0x8fb   : > { %3472 = vmax.xlane.f32.xlu1 %v3471_v25 }
 0x90c   : > { %7909 = vrot.lane.b32.xlu1 %v11176_v22, %s8355_s17 }
 0x97b   : > { %v3458_v10 = vpop.xlane.xlu0 %3457 }
 0x97c   : > { %v3478_v59 = vsub.f32 %v3446_v40, %v3458_v10  ;;  %v3455_v15 = vpop.xlane.xlu1 %3454 }
 0x97d   : > { %v3477_v14 = vsub.f32 %v3445_v43, %v3455_v15 }
 0x97e   : > { %v3487_v6 = vmul.f32 1.442695, %v3478_v59 }
 0x97f   : > { %v3485_v7 = vmul.f32 1.442695, %v3477_v14  ;;  %v3464_v27 = vpop.xlane.xlu0 %3463 }
 0x980   : > { %8196 = vpow2.f32 %v3487_v6  ;;  %v3480_v51 = vsub.f32 %v3448_v52, %v3464_v27  ;;  %v3461_v37 = vpop.xlane.xlu1 %3460 }
 0x981   : > { %8198 = vpow2.f32 %v3485_v7  ;;  %v3479_v2 = vsub.f32 %v3447_v55, %v3461_v37 }
 0x982   : > { %v3491_v11 = vmul.f32 1.442695, %v3480_v51 }
 0x983   : > { %v3489_v46 = vmul.f32 1.442695, %v3479_v2  ;;  %v3470_v25 = vpop.xlane.xlu0 %3469 }
 0x984   : > { %8200 = vpow2.f32 %v3491_v11  ;;  %v3482_v45 = vsub.f32 %v3450_v1, %v3470_v25  ;;  %v3467_v16 = vpop.xlane.xlu1 %3466 }
 0x985   : > { %8202 = vpow2.f32 %v3489_v46  ;;  %v3481_v34 = vsub.f32 %v3449_v48, %v3467_v16 }
 0x986   : > { %v3495_v21 = vmul.f32 1.442695, %v3482_v45 }
 0x987   : > { %v3493_v10 = vmul.f32 1.442695, %v3481_v34  ;;  %v3476_v40 = vpop.xlane.xlu0 %3475 }
 0x988   : > { %8204 = vpow2.f32 %v3495_v21  ;;  %v3484_v15 = vsub.f32 %v3452_v20, %v3476_v40  ;;  %v3473_v14 = vpop.xlane.xlu1 %3472  ;;  %v11177_v40 = vld [vmem:[#allocation31_spill] sm:$0xff] }
 0x989   : > { %8206 = vpow2.f32 %v3493_v10  ;;  %v3483_v6 = vsub.f32 %v3451_v9, %v3473_v14 }
 0x98a   : > { %v8197_v43 = vpop.eup %8196  ;;  %v3499_v52 = vmul.f32 1.442695, %v3484_v15  ;;  %v11178_v15 = vld [vmem:[#allocation29_spill] sm:$0xff] }
 0x98b   : > { %v8199_v22 = vpop.eup %8198  ;;  %v3497_v37 = vmul.f32 1.442695, %v3483_v6  ;;  %v3504_v55 = vsel %vm782_vm7, %v8197_v43, 0.0  ;;  %v11179_v14 = vpack.i.bf16 %v11177_v40, %v11178_v15  ;;  %v11180_v6 = vld [vmem:[#allocation37_spill] sm:$0xff] }
 0x98c   : > { %8208 = vpow2.f32 %v3499_v52  ;;  %3505 = vadd.xlane.f32.xlu0 %v3504_v55  ;;  %v7910_v11 = vpop.permute.xlu1 %7909  ;;  %v3501_v46 = vsel %vm782_vm7, %v8199_v22, 0.0  ;;  %v11181_v52 = vld [vmem:[#allocation35_spill] sm:$0xff]  ;;  %v11183_v55 = vld [vmem:[#allocation25_spill] sm:$0xff] }
 0x98d   : > { %v7912_v16 = vunpack.i.h.bf16 %v7910_v11  ;;  %v7911_v45 = vunpack.i.l.bf16 %v7910_v11  ;;  %3502 = vadd.xlane.f32.xlu1 %v3501_v46  ;;  %8210 = vpow2.f32 %v3497_v37  ;;  %v11182_v37 = vpack.i.bf16 %v11180_v6, %v11181_v52  ;;  %v11184_v11 = vld [vmem:[#allocation23_spill] sm:$0xff] }
 0x98e   : > { %v8201_v1 = vpop.eup %8200  ;;  %v11185_v46 = vpack.i.bf16 %v11183_v55, %v11184_v11 }
 0x98f   : > { %v8203_v48 = vpop.eup %8202  ;;  %v7606_v20 = vpack.c.bf16 %v7912_v16, %v7911_v45  ;;  %v3510_v9 = vsel %vm782_vm7, %v8201_v1, 0.0 }
 0x990   : > { %3511 = vadd.xlane.f32.xlu0 %v3510_v9  ;;  %v3507_v59 = vsel %vm782_vm7, %v8203_v48, 0.0 }
 0x991   : > { %3508 = vadd.xlane.f32.xlu1 %v3507_v59  ;;  %7608 = vmatprep.subr.msk.bf16.mxu1 %vm9068_vm9, %v7606_v20 }
 0x992   : > { %v8205_v7 = vpop.eup %8204 }
 0x993   : > { %v8207_v27 = vpop.eup %8206  ;;  %v3516_v51 = vsel %vm782_vm7, %v8205_v7, 0.0 }
 0x994   : > { %3517 = vadd.xlane.f32.xlu0 %v3516_v51  ;;  %v3513_v2 = vsel %vm782_vm7, %v8207_v27, 0.0 }
 0x995   : > { %3514 = vadd.xlane.f32.xlu1 %v3513_v2 }
 0x996   : > { %v9902_v25 = vpop.eup %8208 }
 0x997   : > { %v3522_v34 = vsel %vm782_vm7, %v9902_v25, 0.0  ;;  %v9906_v21 = vpop.eup %8210 }
 0x998   : > { %3523 = vadd.xlane.f32.xlu0 %v3522_v34  ;;  %v3519_v10 = vsel %vm782_vm7, %v9906_v21, 0.0 }
 0x99c   : > { %3520 = vadd.xlane.f32.xlu0 %v3519_v10 }
 0x9a6   : > { %7919 = vrot.lane.b32.xlu1 %v11179_v14, %s8355_s17 }
 0x9aa   : > { %7924 = vrot.lane.b32.xlu1 %v11182_v37, %s8355_s17 }
 0x9ae   : > { %3670 = vrot.lane.b32.xlu1 %v11166_v38, %s8355_s17 }
 0x9b2   : > { %3672 = vrot.lane.b32.xlu1 %v11167_v4, %s8355_s17  ;;  %7914 = vrot.lane.b32.xlu0 %v11185_v46, %s8355_s17 }
 0x9b6   : > { %3676 = vrot.lane.b32.xlu1 %v11169_v32, %s8355_s17  ;;  %3674 = vrot.lane.b32.xlu0 %v11168_v31, %s8355_s17 }
 0x9ba   : > { %3680 = vrot.lane.b32.xlu1 %v11171_v39, %s8355_s17  ;;  %3678 = vrot.lane.b32.xlu0 %v11170_v36, %s8355_s17 }
 0x9be   : > { %3684 = vrot.lane.b32.xlu1 %v11173_v41, %s8355_s17  ;;  %3682 = vrot.lane.b32.xlu0 %v11172_v3, %s8355_s17 }
 0xa19   : > { %v3506_v38 = vpop.xlane.xlu0 %3505 }
 0xa1a   : > { %8212 = vrcp.f32 %v3506_v38  ;;  %v3503_v4 = vpop.xlane.xlu1 %3502 }
 0xa1b   : > { %8214 = vrcp.f32 %v3503_v4 }
 0xa1d   : > { %v3512_v32 = vpop.xlane.xlu0 %3511 }
 0xa1e   : > { %8216 = vrcp.f32 %v3512_v32  ;;  %v3509_v16 = vpop.xlane.xlu1 %3508 }
 0xa1f   : > { %8218 = vrcp.f32 %v3509_v16 }
 0xa21   : > { %v3518_v31 = vpop.xlane.xlu0 %3517 }
 0xa22   : > { %8220 = vrcp.f32 %v3518_v31  ;;  %v3515_v39 = vpop.xlane.xlu1 %3514 }
 0xa23   : > { %8222 = vrcp.f32 %v3515_v39 }
 0xa24   : > { %v8213_v45 = vpop.eup %8212 }
 0xa25   : > { %v8215_v36 = vpop.eup %8214  ;;  %v3524_v9 = vpop.xlane.xlu0 %3523  ;;  %v3534_v41 = vmul.f32 %v8213_v45, %v8197_v43 }
 0xa26   : > { %v3533_v59 = vmul.f32 %v8215_v36, %v8199_v22  ;;  %8224 = vrcp.f32 %v3524_v9  ;;  %v7920_v34 = vpop.permute.xlu1 %7919  ;;  %v11187_v9 = vld [vmem:[#allocation55_spill] sm:$0xff] }
 0xa27   : > { %v7922_v43 = vunpack.i.h.bf16 %v7920_v34  ;;  %v7921_v6 = vunpack.i.l.bf16 %v7920_v34 }
 0xa28   : > { %v8217_v51 = vpop.eup %8216  ;;  %7180 = vmatprep.mubr.msk.f32.mxu1 %vm782_vm7, %v3533_v59 }
 0xa29   : > { %v8219_v3 = vpop.eup %8218  ;;  %v3521_v2 = vpop.xlane.xlu0 %3520  ;;  %7181 = vmatmul.mubr.msk.f32.vlgmr.msra.gmra.mrb[92].mxu1 %vm782_vm7, %v3534_v41  ;;  %v3536_v40 = vmul.f32 %v8217_v51, %v8201_v1  ;;  %v11188_v41 = vld [vmem:[#allocation61_spill] sm:$0xff] }
 0xa2a   : > { %8226 = vrcp.f32 %v3521_v2  ;;  %7611 = vmatpush3.bf16.xpose.msk.msra.mxu1 %vm9068_vm9, %v7606_v20  ;;  %v3535_v10 = vmul.f32 %v8219_v3, %v8203_v48  ;;  %v7618_v48 = vpack.c.bf16 %v7922_v43, %v7921_v6  ;;  %v7925_v1 = vpop.permute.xlu1 %7924  ;;  %v11189_v3 = vld [vmem:[#allocation67_spill] sm:$0xff] }
 0xa2b   : > { %v7926_v4 = vunpack.i.l.bf16 %v7925_v1 }
 0xa2c   : > { %v8221_v15 = vpop.eup %8220  ;;  %7183 = vmatprep.mubr.msk.f32.mxu1 %vm782_vm7, %v3535_v10 }
 0xa2d   : > { %v8223_v22 = vpop.eup %8222  ;;  %v7915_v14 = vpop.permute.xlu0 %7914  ;;  %7184 = vmatmul.mubr.msk.f32.gmra.mrb[94].mxu1 %vm782_vm7, %v3536_v40  ;;  %v3538_v11 = vmul.f32 %v8221_v15, %v8205_v7 }
 0xa2e   : > { %v7917_v52 = vunpack.i.h.bf16 %v7915_v14  ;;  %v7916_v37 = vunpack.i.l.bf16 %v7915_v14  ;;  %v3537_v55 = vmul.f32 %v8223_v22, %v8207_v27  ;;  %v7927_v27 = vunpack.i.h.bf16 %v7925_v1  ;;  %v3671_v16 = vpop.permute.xlu1 %3670 }
 0xa30   : > { %v7612_v46 = vpack.c.bf16 %v7917_v52, %v7916_v37  ;;  %7186 = vmatprep.mubr.msk.f32.mxu1 %vm782_vm7, %v3537_v55  ;;  %v8225_v20 = vpop.eup %8224  ;;  %v7624_v31 = vpack.c.bf16 %v7927_v27, %v7926_v4 }
 0xa31   : > { %7187 = vmatmul.mubr.msk.f32.gmra.mrb[96].mxu1 %vm782_vm7, %v3538_v11  ;;  %v3540_v32 = vmul.f32 %v8225_v20, %v9902_v25  ;;  %v3675_v25 = vpop.permute.xlu0 %3674 }
 0xa32   : > { %7614 = vmatprep.subr.msk.bf16.mxu1 %vm9068_vm9, %v7612_v46  ;;  %v3673_v39 = vpop.permute.xlu1 %3672 }
 0xa33   : > { %7617 = vmatpush3.bf16.xpose.msk.msra.mxu1 %vm9068_vm9, %v7612_v46 }
 0xa34   : > { %v8227_v38 = vpop.eup %8226  ;;  %7620 = vmatprep.subr.msk.bf16.mxu1 %vm9068_vm9, %v7618_v48 }
 0xa35   : > { %v3539_v7 = vmul.f32 %v8227_v38, %v9906_v21  ;;  %v11186_v21 = vld [vmem:[#allocation49_spill] sm:$0xff]  ;;  %v3679_v36 = vpop.permute.xlu0 %3678 }
 0xa36   : > { %v3677_v45 = vpop.permute.xlu1 %3676 }
 0xa37   : > { %7189 = vmatprep.mubr.msk.f32.mxu1 %vm782_vm7, %v3539_v7 }
 0xa38   : > { %7190 = vmatmul.mubr.msk.f32.gmra.mrb[98].mxu1 %vm782_vm7, %v3540_v32 }
 0xa39   : > { %7208 = vmatprep.mubr.msk.f32.mxu1 %vm782_vm7, %v3671_v16  ;;  %v3683_v51 = vpop.permute.xlu0 %3682 }
 0xa3a   : > { %v3681_v59 = vpop.permute.xlu1 %3680 }
 0xa3b   : > { %7623 = vmatpush3.bf16.xpose.msk.msra.mxu1 %vm9068_vm9, %v7618_v48 }
 0xa3c   : > { %7626 = vmatprep.subr.msk.bf16.mxu1 %vm9068_vm9, %v7624_v31 }
 0xa3e   : > { %v3685_v2 = vpop.permute.xlu1 %3684 }
 0xa43   : > { %7629 = vmatpush3.bf16.xpose.msk.msra.mxu1 %vm9068_vm9, %v7624_v31 }
 0xa44   : > { %7671 = vmatprep.subr.bf16.mxu1 %v11186_v21 }
 0xa4a   : > { %7209 = vmatmul.mubr.msk.f32.vlgmr.msra.gmra.mrb[100].mxu1 %vm782_vm7, %v3673_v39 }
 0xa4b   : > { %7211 = vmatprep.mubr.msk.f32.mxu1 %vm782_vm7, %v3675_v25  ;;  %7673 = vmatpush3.bf16.msra.mxu1 %v11186_v21 }
 0xa4c   : > { %7675 = vmatprep.subr.bf16.mxu1 %v11187_v9 }
 0xa4e   : > { %7212 = vmatmul.mubr.msk.f32.gmra.mrb[102].mxu1 %vm782_vm7, %v3677_v45 }
 0xa4f   : > { %7214 = vmatprep.mubr.msk.f32.mxu1 %vm782_vm7, %v3679_v36  ;;  %7677 = vmatpush3.bf16.msra.mxu1 %v11187_v9 }
 0xa50   : > { %7679 = vmatprep.subr.bf16.mxu1 %v11188_v41 }
 0xa52   : > { %7215 = vmatmul.mubr.msk.f32.gmra.mrb[104].mxu1 %vm782_vm7, %v3681_v59 }
 0xa53   : > { %7217 = vmatprep.mubr.msk.f32.mxu1 %vm782_vm7, %v3683_v51  ;;  %7681 = vmatpush3.bf16.msra.mxu1 %v11188_v41  ;;  %v11197_v41 = vld [vmem:[#allocation47_spill] sm:$0xff] }
 0xa54   : > { %7683 = vmatprep.subr.bf16.mxu1 %v11189_v3  ;;  %v11198_v51 = vld [vmem:[#allocation43_spill] sm:$0xff] }
 0xa56   : > { %7218 = vmatmul.mubr.msk.f32.gmra.mrb[106].mxu1 %vm782_vm7, %v3685_v2 }
 0xa57   : > { %7685 = vmatpush3.bf16.msra.mxu1 %v11189_v3  ;;  %v11199_v3 = vpack.i.bf16 %v11197_v41, %v11198_v51 }
 0xafc   : > { %v9978_v34 = vpop.f32.mrb[92].mxu1 }
 0xafd   : > { %11190 = vst [vmem:[#allocation69_spill] sm:$0xff] %v9978_v34  ;;  %v9980_v10 = vpop.f32.mrb[93].mxu1 }
 0xb00   : > { %v9982_v40 = vpop.f32.mrb[94].mxu1 }
 0xb01   : > { %11191 = vst [vmem:[#allocation68_spill] sm:$0xff] %v9982_v40  ;;  %v9984_v15 = vpop.f32.mrb[95].mxu1 }
 0xb02   : > { %11192 = vst [vmem:[#allocation73_spill] sm:$0xff] %v9984_v15 }
 0xb04   : > { %v9986_v22 = vpop.f32.mrb[96].mxu1 }
 0xb05   : > { %11193 = vst [vmem:[#allocation72_spill] sm:$0xff] %v9986_v22  ;;  %v9988_v43 = vpop.f32.mrb[97].mxu1 }
 0xb06   : > { %11194 = vst [vmem:[#allocation75_spill] sm:$0xff] %v9988_v43 }
 0xb0b   : > { %v9990_v14 = vpop.f32.mrb[98].mxu1 }
 0xb0c   : > { %11195 = vst [vmem:[#allocation74_spill] sm:$0xff] %v9990_v14  ;;  %v9992_v6 = vpop.f32.mrb[99].mxu1 }
 0xb0d   : > { %11196 = vst [vmem:[#allocation71_spill] sm:$0xff] %v9992_v6 }
 0xb1d   : > { %v7210_v52 = vpop.f32.mrb[100].mxu1 }
 0xb1e   : > { %v3840_v37 = vmul.f32 0.125, %v7210_v52  ;;  %v3800_v55 = vpop.f32.mrb[101].mxu1 }
 0xb1f   : > { %v3839_v11 = vmul.f32 0.125, %v3800_v55  ;;  %v11200_v55 = vld [vmem:[#allocation58_spill] sm:$0xff] }
 0xb20   : > { %v3850_v46 = vsel %vm782_vm7, %v3840_v37, -inf }
 0xb21   : > { %3851 = vmax.xlane.f32.xlu1 %v3850_v46  ;;  %v7213_v48 = vpop.f32.mrb[102].mxu1  ;;  %v3847_v1 = vsel %vm782_vm7, %v3839_v11, -inf  ;;  %v11201_v46 = vld [vmem:[#allocation56_spill] sm:$0xff] }
 0xb22   : > { %3848 = vmax.xlane.f32.xlu0 %v3847_v1  ;;  %v3810_v20 = vpop.f32.mrb[103].mxu1  ;;  %v3842_v7 = vmul.f32 0.125, %v7213_v48  ;;  %v11202_v48 = vpack.i.bf16 %v11200_v55, %v11201_v46 }
 0xb23   : > { %v3841_v38 = vmul.f32 0.125, %v3810_v20 }
 0xb24   : > { %v3856_v21 = vsel %vm782_vm7, %v3842_v7, -inf }
 0xb25   : > { %v7216_v27 = vpop.f32.mrb[104].mxu1  ;;  %v3853_v4 = vsel %vm782_vm7, %v3841_v38, -inf }
 0xb26   : > { %3854 = vmax.xlane.f32.xlu0 %v3853_v4  ;;  %v3820_v32 = vpop.f32.mrb[105].mxu1  ;;  %v3844_v31 = vmul.f32 0.125, %v7216_v27 }
 0xb27   : > { %v3843_v16 = vmul.f32 0.125, %v3820_v32 }
 0xb28   : > { %v3862_v9 = vsel %vm782_vm7, %v3844_v31, -inf }
 0xb29   : > { %v7219_v39 = vpop.f32.mrb[106].mxu1  ;;  %v3859_v25 = vsel %vm782_vm7, %v3843_v16, -inf }
 0xb2a   : > { %3857 = vmax.xlane.f32.xlu0 %v3856_v21  ;;  %3860 = vmax.xlane.f32.xlu1 %v3859_v25  ;;  %v3830_v45 = vpop.f32.mrb[107].mxu1  ;;  %v3846_v36 = vmul.f32 0.125, %v7219_v39 }
 0xb2b   : > { %v3845_v2 = vmul.f32 0.125, %v3830_v45 }
 0xb2c   : > { %v3868_v59 = vsel %vm782_vm7, %v3846_v36, -inf }
 0xb2d   : > { %v3865_v52 = vsel %vm782_vm7, %v3845_v2, -inf }
 0xb2e   : > { %3863 = vmax.xlane.f32.xlu0 %v3862_v9 }
 0xb32   : > { %3869 = vmax.xlane.f32.xlu0 %v3868_v59 }
 0xb3b   : > { %7929 = vrot.lane.b32.xlu1 %v11199_v3, %s8355_s17 }
 0xb5f   : > { %3866 = vmax.xlane.f32.xlu1 %v3865_v52  ;;  %v11204_v52 = vld [vmem:[#allocation62_spill] sm:$0xff] }
 0xb70   : > { %7939 = vrot.lane.b32.xlu1 %v11202_v48, %s8355_s17  ;;  %v11206_v48 = vld [vmem:[#allocation52_spill] sm:$0xff] }
 0xbae   : > { %v3852_v1 = vpop.xlane.xlu1 %3851 }
 0xbaf   : > { %v3872_v20 = vsub.f32 %v3840_v37, %v3852_v1  ;;  %v3849_v27 = vpop.xlane.xlu0 %3848  ;;  %v11207_v1 = vld [vmem:[#allocation50_spill] sm:$0xff] }
 0xbb0   : > { %v3871_v4 = vsub.f32 %v3839_v11, %v3849_v27  ;;  %v11203_v11 = vld [vmem:[#allocation64_spill] sm:$0xff] }
 0xbb1   : > { %v3881_v32 = vmul.f32 1.442695, %v3872_v20  ;;  %v11205_v55 = vpack.i.bf16 %v11203_v11, %v11204_v52  ;;  %v11208_v20 = vpack.i.bf16 %v11206_v48, %v11207_v1 }
 0xbb2   : > { %v3879_v39 = vmul.f32 1.442695, %v3871_v4 }
 0xbb3   : > { %8228 = vpow2.f32 %v3881_v32  ;;  %v3855_v46 = vpop.xlane.xlu0 %3854 }
 0xbb4   : > { %8230 = vpow2.f32 %v3879_v39  ;;  %v3873_v4 = vsub.f32 %v3841_v38, %v3855_v46 }
 0xbb7   : > { %v3861_v21 = vpop.xlane.xlu1 %3860  ;;  %v3858_v27 = vpop.xlane.xlu0 %3857 }
 0xbb8   : > { %v3874_v32 = vsub.f32 %v3842_v7, %v3858_v27 }
 0xbbb   : > { %v7930_v25 = vpop.permute.xlu1 %7929  ;;  %v3864_v39 = vpop.xlane.xlu0 %3863 }
 0xbbc   : > { %v7932_v9 = vunpack.i.h.bf16 %v7930_v25  ;;  %v7931_v45 = vunpack.i.l.bf16 %v7930_v25  ;;  %v3883_v25 = vmul.f32 1.442695, %v3873_v4 }
 0xbbd   : > { %v10010_v59 = vpop.eup %8228 }
 0xbbe   : > { %v10012_v41 = vpop.eup %8230  ;;  %v3898_v51 = vsel %vm782_vm7, %v10010_v59, 0.0  ;;  %v7630_v3 = vpack.c.bf16 %v7932_v9, %v7931_v45  ;;  %v3875_v9 = vsub.f32 %v3843_v16, %v3861_v21  ;;  %v3885_v45 = vmul.f32 1.442695, %v3874_v32 }
 0xbbf   : > { %3899 = vadd.xlane.f32.xlu0 %v3898_v51  ;;  %v3895_v37 = vsel %vm782_vm7, %v10012_v41, 0.0  ;;  %8232 = vpow2.f32 %v3883_v25 }
 0xbc0   : > { %7631 = vmatprep.subr.bf16.mxu0 %v7630_v3  ;;  %3896 = vadd.xlane.f32.xlu1 %v3895_v37  ;;  %v3887_v51 = vmul.f32 1.442695, %v3875_v9  ;;  %8234 = vpow2.f32 %v3885_v45  ;;  %v3870_v37 = vpop.xlane.xlu0 %3869 }
 0xbc1   : > { %7633 = vmatpush3.bf16.msra.mxu0 %v7630_v3  ;;  %v3876_v3 = vsub.f32 %v3844_v31, %v3864_v39  ;;  %v3878_v52 = vsub.f32 %v3846_v36, %v3870_v37 }
 0xbc2   : > { %8236 = vpow2.f32 %v3887_v51 }
 0xbc3   : > { %v3889_v11 = vmul.f32 1.442695, %v3876_v3  ;;  %v3893_v48 = vmul.f32 1.442695, %v3878_v52 }
 0xbc5   : > { %8238 = vpow2.f32 %v3889_v11 }
 0xbd1   : > { %7944 = vrot.lane.b32.xlu1 %v11205_v55, %s8355_s17 }
 0xbd5   : > { %7934 = vrot.lane.b32.xlu0 %v11208_v20, %s8355_s17  ;;  %v10026_v20 = vpop.eup %8232 }
 0xbd6   : > { %v10028_v38 = vpop.eup %8234  ;;  %v3901_v7 = vsel %vm782_vm7, %v10026_v20, 0.0 }
 0xbd7   : > { %v10032_v16 = vpop.eup %8236  ;;  %v3904_v31 = vsel %vm782_vm7, %v10028_v38, 0.0 }
 0xbd8   : > { %v3907_v36 = vsel %vm782_vm7, %v10032_v16, 0.0 }
 0xbec   : > { %v3867_v55 = vpop.xlane.xlu1 %3866 }
 0xbed   : > { %v3877_v14 = vsub.f32 %v3845_v2, %v3867_v55 }
 0xbef   : > { %v3891_v1 = vmul.f32 1.442695, %v3877_v14  ;;  %v10038_v14 = vpop.eup %8238 }
 0xbf0   : > { %v3910_v21 = vsel %vm782_vm7, %v10038_v14, 0.0  ;;  %v7940_v32 = vpop.permute.xlu1 %7939 }
 0xbf1   : > { %8240 = vpow2.f32 %v3891_v1  ;;  %v7942_v45 = vunpack.i.h.bf16 %v7940_v32  ;;  %v7941_v51 = vunpack.i.l.bf16 %v7940_v32  ;;  %v11210_v32 = vld [vmem:[#allocation28_spill] sm:$0xff] }
 0xbf2   : > { %8242 = vpow2.f32 %v3893_v48 }
 0xbf3   : > { %v7638_v1 = vpack.c.bf16 %v7942_v45, %v7941_v51 }
 0xbf4   : > { %3902 = vadd.xlane.f32.xlu0 %v3901_v7 }
 0xbf5   : > { %3905 = vadd.xlane.f32.xlu1 %v3904_v31 }
 0xbf8   : > { %3908 = vadd.xlane.f32.xlu0 %v3907_v36 }
 0xbfb   : > { %v10040_v2 = vpop.eup %8240 }
 0xbfc   : > { %v10044_v46 = vpop.eup %8242  ;;  %3911 = vadd.xlane.f32.xlu0 %v3910_v21  ;;  %v3913_v27 = vsel %vm782_vm7, %v10040_v2, 0.0 }
 0xbfd   : > { %3914 = vadd.xlane.f32.xlu1 %v3913_v27  ;;  %v3916_v4 = vsel %vm782_vm7, %v10044_v46, 0.0 }
 0xc00   : > { %3917 = vadd.xlane.f32.xlu0 %v3916_v4  ;;  %v11209_v4 = vld [vmem:[#allocation22_spill] sm:$0xff] }
 0xc4c   : > { %v3900_v39 = vpop.xlane.xlu0 %3899 }
 0xc4d   : > { %v3897_v25 = vpop.xlane.xlu1 %3896 }
 0xc4e   : > { %8244 = vrcp.f32 %v3897_v25 }
 0xc4f   : > { %8246 = vrcp.f32 %v3900_v39 }
 0xc50   : > { %v7935_v9 = vpop.permute.xlu0 %7934 }
 0xc51   : > { %v7937_v3 = vunpack.i.h.bf16 %v7935_v9  ;;  %v7936_v37 = vunpack.i.l.bf16 %v7935_v9  ;;  %v7945_v11 = vpop.permute.xlu1 %7944 }
 0xc52   : > { %v7947_v55 = vunpack.i.h.bf16 %v7945_v11  ;;  %v7946_v48 = vunpack.i.l.bf16 %v7945_v11 }
 0xc53   : > { %v7634_v52 = vpack.c.bf16 %v7937_v3, %v7936_v37 }
 0xc54   : > { %v7642_v31 = vpack.c.bf16 %v7947_v55, %v7946_v48 }
 0xc55   : > { %7635 = vmatprep.subr.bf16.mxu0 %v7634_v52 }
 0xc56   : > { %7637 = vmatpush3.bf16.msra.mxu0 %v7634_v52 }
 0xc57   : > { %7639 = vmatprep.subr.bf16.mxu0 %v7638_v1 }
 0xc58   : > { %v8245_v7 = vpop.eup %8244 }
 0xc59   : > { %v3927_v36 = vmul.f32 %v8245_v7, %v10012_v41  ;;  %v8247_v21 = vpop.eup %8246  ;;  %v11211_v41 = vld [vmem:[#allocation34_spill] sm:$0xff] }
 0xc5a   : > { %7641 = vmatpush3.bf16.msra.mxu0 %v7638_v1  ;;  %v3928_v27 = vmul.f32 %v8247_v21, %v10010_v59  ;;  %v11212_v59 = vld [vmem:[#allocation41_spill] sm:$0xff] }
 0xc5b   : > { %7643 = vmatprep.subr.bf16.mxu0 %v7642_v31  ;;  %7236 = vmatprep.mubr.msk.f32.mxu0 %vm782_vm7, %v3927_v36 }
 0xc5e   : > { %7645 = vmatpush3.bf16.msra.mxu0 %v7642_v31 }
 0xc5f   : > { %7648 = vmatprep.subr.msk.bf16.mxu0 %vm9068_vm9, %v11209_v4 }
 0xc61   : > { %7237 = vmatmul.mubr.msk.f32.vlgmr.msra.gmra.mrb[84].mxu0 %vm782_vm7, %v3928_v27  ;;  %v11213_v27 = vld [vmem:[#allocation6_spill] sm:$0xff] }
 0xc67   : > { %7651 = vmatpush3.bf16.xpose.msk.msra.mxu0 %vm9068_vm9, %v11209_v4  ;;  %v11215_v4 = vld [vmem:[#allocation10_spill] sm:$0xff] }
 0xc68   : > { %7654 = vmatprep.subr.msk.bf16.mxu0 %vm9068_vm9, %v11210_v32 }
 0xc6f   : > { %7657 = vmatpush3.bf16.xpose.msk.msra.mxu0 %vm9068_vm9, %v11210_v32  ;;  %v11218_v32 = vld [vmem:[#allocation16_spill] sm:$0xff] }
 0xc70   : > { %7660 = vmatprep.subr.msk.bf16.mxu0 %vm9068_vm9, %v11211_v41 }
 0xc77   : > { %7663 = vmatpush3.bf16.xpose.msk.msra.mxu0 %vm9068_vm9, %v11211_v41  ;;  %v11220_v41 = vld [vmem:[#allocation46_spill] sm:$0xff] }
 0xc78   : > { %7666 = vmatprep.subr.msk.bf16.mxu0 %vm9068_vm9, %v11212_v59 }
 0xc7f   : > { %7669 = vmatpush3.bf16.xpose.msk.msra.mxu0 %vm9068_vm9, %v11212_v59 }
 0xc81   : > { %v3903_v39 = vpop.xlane.xlu0 %3902 }
 0xc82   : > { %8248 = vrcp.f32 %v3903_v39  ;;  %v3906_v25 = vpop.xlane.xlu1 %3905 }
 0xc83   : > { %8250 = vrcp.f32 %v3906_v25 }
 0xc85   : > { %v3909_v9 = vpop.xlane.xlu0 %3908 }
 0xc86   : > { %8252 = vrcp.f32 %v3909_v9 }
 0xc89   : > { %v3912_v45 = vpop.xlane.xlu0 %3911 }
 0xc8a   : > { %8254 = vrcp.f32 %v3912_v45  ;;  %v3915_v51 = vpop.xlane.xlu1 %3914 }
 0xc8b   : > { %8256 = vrcp.f32 %v3915_v51 }
 0xc8c   : > { %v8249_v3 = vpop.eup %8248 }
 0xc8d   : > { %v8251_v37 = vpop.eup %8250  ;;  %v3918_v11 = vpop.xlane.xlu0 %3917  ;;  %v3929_v52 = vmul.f32 %v8249_v3, %v10026_v20 }
 0xc8e   : > { %8258 = vrcp.f32 %v3918_v11  ;;  %v3930_v55 = vmul.f32 %v8251_v37, %v10028_v38 }
 0xc8f   : > { %7239 = vmatprep.mubr.msk.f32.mxu0 %vm782_vm7, %v3929_v52 }
 0xc90   : > { %v8253_v48 = vpop.eup %8252  ;;  %7240 = vmatmul.mubr.msk.f32.gmra.mrb[86].mxu0 %vm782_vm7, %v3930_v55 }
 0xc91   : > { %v3931_v1 = vmul.f32 %v8253_v48, %v10032_v16  ;;  %v11214_v16 = vld [vmem:[#allocation8_spill] sm:$0xff] }
 0xc93   : > { %7242 = vmatprep.mubr.msk.f32.mxu0 %vm782_vm7, %v3931_v1 }
 0xc94   : > { %v8255_v7 = vpop.eup %8254 }
 0xc95   : > { %v8257_v31 = vpop.eup %8256  ;;  %v3932_v36 = vmul.f32 %v8255_v7, %v10038_v14  ;;  %v11216_v14 = vld [vmem:[#allocation12_spill] sm:$0xff] }
 0xc96   : > { %v3933_v21 = vmul.f32 %v8257_v31, %v10040_v2  ;;  %v11217_v2 = vld [vmem:[#allocation14_spill] sm:$0xff] }
 0xc97   : > { %7243 = vmatmul.mubr.msk.f32.gmra.mrb[88].mxu0 %vm782_vm7, %v3932_v36 }
 0xc98   : > { %v8259_v20 = vpop.eup %8258  ;;  %7245 = vmatprep.mubr.msk.f32.mxu0 %vm782_vm7, %v3933_v21 }
 0xc99   : > { %v3934_v38 = vmul.f32 %v8259_v20, %v10044_v46  ;;  %v11219_v46 = vld [vmem:[#allocation42_spill] sm:$0xff] }
 0xc9b   : > { %7246 = vmatmul.mubr.msk.f32.gmra.mrb[90].mxu0 %vm782_vm7, %v3934_v38 }
 0xc9c   : > { %7264 = vmatprep.mubr.msk.f32.mxu0 %vm782_vm7, %v11213_v27 }
 0xc9f   : > { %7265 = vmatmul.mubr.msk.f32.vlgmr.msra.gmra.mrb[92].mxu0 %vm782_vm7, %v11214_v16 }
 0xca0   : > { %7267 = vmatprep.mubr.msk.f32.mxu0 %vm782_vm7, %v11215_v4 }
 0xca3   : > { %7268 = vmatmul.mubr.msk.f32.gmra.mrb[94].mxu0 %vm782_vm7, %v11216_v14 }
 0xca4   : > { %7270 = vmatprep.mubr.msk.f32.mxu0 %vm782_vm7, %v11217_v2 }
 0xca7   : > { %7271 = vmatmul.mubr.msk.f32.gmra.mrb[96].mxu0 %vm782_vm7, %v11218_v32 }
 0xca8   : > { %7273 = vmatprep.mubr.msk.f32.mxu0 %vm782_vm7, %v11219_v46 }
 0xcab   : > { %7274 = vmatmul.mubr.msk.f32.gmra.mrb[98].mxu0 %vm782_vm7, %v11220_v41 }
 0xd34   : > { %v10106_v59 = vpop.f32.mrb[84].mxu0 }
 0xd35   : > { %v10108_v39 = vpop.f32.mrb[85].mxu0 }
 0xd63   : > { %v10110_v25 = vpop.f32.mrb[86].mxu0 }
 0xd64   : > { %v10112_v9 = vpop.f32.mrb[87].mxu0 }
 0xd6a   : > { %v10114_v45 = vpop.f32.mrb[88].mxu0 }
 0xd6b   : > { %v10116_v51 = vpop.f32.mrb[89].mxu0 }
 0xd6e   : > { %v10118_v3 = vpop.f32.mrb[90].mxu0 }
 0xd6f   : > { %v10120_v37 = vpop.f32.mrb[91].mxu0 }
 0xd72   : > { %v7266_v11 = vpop.f32.mrb[92].mxu0 }
 0xd73   : > { %v4250_v52 = vmul.f32 0.125, %v7266_v11  ;;  %v4210_v55 = vpop.f32.mrb[93].mxu0 }
 0xd74   : > { %v4249_v48 = vmul.f32 0.125, %v4210_v55 }
 0xd75   : > { %v4260_v1 = vsel %vm782_vm7, %v4250_v52, -inf }
 0xd76   : > { %4261 = vmax.xlane.f32.xlu0 %v4260_v1  ;;  %v7269_v7 = vpop.f32.mrb[94].mxu0  ;;  %v4257_v31 = vsel %vm782_vm7, %v4249_v48, -inf }
 0xd77   : > { %v4252_v36 = vmul.f32 0.125, %v7269_v7  ;;  %4258 = vmax.xlane.f32.xlu1 %v4257_v31  ;;  %v4220_v21 = vpop.f32.mrb[95].mxu0 }
 0xd78   : > { %v4251_v20 = vmul.f32 0.125, %v4220_v21 }
 0xd79   : > { %v4266_v38 = vsel %vm782_vm7, %v4252_v36, -inf }
 0xd7a   : > { %4267 = vmax.xlane.f32.xlu0 %v4266_v38  ;;  %v7272_v6 = vpop.f32.mrb[96].mxu0  ;;  %v4263_v22 = vsel %vm782_vm7, %v4251_v20, -inf }
 0xd7b   : > { %v4254_v13 = vmul.f32 0.125, %v7272_v6  ;;  %4264 = vmax.xlane.f32.xlu1 %v4263_v22  ;;  %v4230_v11 = vpop.f32.mrb[97].mxu0  ;;  %v11221_v22 = vld [vmem:[#allocation21_spill] sm:$0xff]  ;;  %v11222_v6 = vld [vmem:[#allocation18_spill] sm:$0xff] }
 0xd7c   : > { %v4253_v55 = vmul.f32 0.125, %v4230_v11  ;;  %v11223_v11 = vpack.i.bf16 %v11221_v22, %v11222_v6 }
 0xd7d   : > { %v4272_v43 = vsel %vm782_vm7, %v4254_v13, -inf }
 0xd7e   : > { %4273 = vmax.xlane.f32.xlu0 %v4272_v43  ;;  %v7275_v1 = vpop.f32.mrb[98].mxu0  ;;  %v4269_v44 = vsel %vm782_vm7, %v4253_v55, -inf }
 0xd7f   : > { %v4256_v7 = vmul.f32 0.125, %v7275_v1  ;;  %4270 = vmax.xlane.f32.xlu1 %v4269_v44  ;;  %v4240_v31 = vpop.f32.mrb[99].mxu0 }
 0xd80   : > { %v4255_v21 = vmul.f32 0.125, %v4240_v31 }
 0xd81   : > { %v4278_v23 = vsel %vm782_vm7, %v4256_v7, -inf }
 0xd82   : > { %4279 = vmax.xlane.f32.xlu0 %v4278_v23  ;;  %v4275_v38 = vsel %vm782_vm7, %v4255_v21, -inf }
 0xd83   : > { %4276 = vmax.xlane.f32.xlu1 %v4275_v38 }
 0xd94   : > { %7949 = vrot.lane.b32.xlu1 %v11223_v11, %s8355_s17 }
 0xe03   : > { %v4262_v40 = vpop.xlane.xlu0 %4261 }
 0xe04   : > { %v4282_v43 = vsub.f32 %v4250_v52, %v4262_v40  ;;  %v4259_v5 = vpop.xlane.xlu1 %4258 }
 0xe05   : > { %v4281_v28 = vsub.f32 %v4249_v48, %v4259_v5 }
 0xe06   : > { %v4291_v15 = vmul.f32 1.442695, %v4282_v43 }
 0xe07   : > { %v4289_v1 = vmul.f32 1.442695, %v4281_v28  ;;  %v4268_v44 = vpop.xlane.xlu0 %4267 }
 0xe08   : > { %8260 = vpow2.f32 %v4291_v15  ;;  %v4284_v31 = vsub.f32 %v4252_v36, %v4268_v44  ;;  %v4265_v63 = vpop.xlane.xlu1 %4264 }
 0xe09   : > { %8262 = vpow2.f32 %v4289_v1  ;;  %v4283_v23 = vsub.f32 %v4251_v20, %v4265_v63 }
 0xe0a   : > { %v4295_v60 = vmul.f32 1.442695, %v4284_v31 }
 0xe0b   : > { %v4293_v34 = vmul.f32 1.442695, %v4283_v23  ;;  %v4274_v38 = vpop.xlane.xlu0 %4273 }
 0xe0c   : > { %8264 = vpow2.f32 %v4295_v60  ;;  %v4286_v57 = vsub.f32 %v4254_v13, %v4274_v38  ;;  %v4271_v17 = vpop.xlane.xlu1 %4270 }
 0xe0d   : > { %8266 = vpow2.f32 %v4293_v34  ;;  %v4285_v22 = vsub.f32 %v4253_v55, %v4271_v17 }
 0xe0e   : > { %v4299_v6 = vmul.f32 1.442695, %v4286_v57 }
 0xe0f   : > { %v4297_v40 = vmul.f32 1.442695, %v4285_v22  ;;  %v4280_v52 = vpop.xlane.xlu0 %4279 }
 0xe10   : > { %8268 = vpow2.f32 %v4299_v6  ;;  %v4288_v5 = vsub.f32 %v4256_v7, %v4280_v52  ;;  %v4277_v28 = vpop.xlane.xlu1 %4276  ;;  %v11224_v52 = vld [vmem:[#allocation33_spill] sm:$0xff] }
 0xe11   : > { %8270 = vpow2.f32 %v4297_v40  ;;  %v4287_v15 = vsub.f32 %v4255_v21, %v4277_v28 }
 0xe12   : > { %v8261_v48 = vpop.eup %8260  ;;  %v4303_v36 = vmul.f32 1.442695, %v4288_v5  ;;  %v11225_v5 = vld [vmem:[#allocation30_spill] sm:$0xff] }
 0xe13   : > { %v8263_v11 = vpop.eup %8262  ;;  %v4301_v63 = vmul.f32 1.442695, %v4287_v15  ;;  %v4308_v20 = vsel %vm782_vm7, %v8261_v48, 0.0  ;;  %v11226_v28 = vpack.i.bf16 %v11224_v52, %v11225_v5  ;;  %v11227_v15 = vld [vmem:[#allocation40_spill] sm:$0xff] }
 0xe14   : > { %8272 = vpow2.f32 %v4303_v36  ;;  %4309 = vadd.xlane.f32.xlu0 %v4308_v20  ;;  %v7950_v60 = vpop.permute.xlu1 %7949  ;;  %v4305_v13 = vsel %vm782_vm7, %v8263_v11, 0.0  ;;  %v11228_v36 = vld [vmem:[#allocation36_spill] sm:$0xff]  ;;  %v11230_v20 = vld [vmem:[#allocation27_spill] sm:$0xff] }
 0xe15   : > { %v7952_v17 = vunpack.i.h.bf16 %v7950_v60  ;;  %v7951_v57 = vunpack.i.l.bf16 %v7950_v60  ;;  %4306 = vadd.xlane.f32.xlu1 %v4305_v13  ;;  %8274 = vpow2.f32 %v4301_v63  ;;  %v11229_v63 = vpack.i.bf16 %v11227_v15, %v11228_v36  ;;  %v11231_v60 = vld [vmem:[#allocation24_spill] sm:$0xff] }
 0xe16   : > { %v8265_v34 = vpop.eup %8264  ;;  %v11232_v13 = vpack.i.bf16 %v11230_v20, %v11231_v60 }
 0xe17   : > { %v8267_v55 = vpop.eup %8266  ;;  %v7686_v7 = vpack.c.bf16 %v7952_v17, %v7951_v57  ;;  %v4314_v21 = vsel %vm782_vm7, %v8265_v34, 0.0 }
 0xe18   : > { %4315 = vadd.xlane.f32.xlu0 %v4314_v21  ;;  %v4311_v43 = vsel %vm782_vm7, %v8267_v55, 0.0 }
 0xe19   : > { %4312 = vadd.xlane.f32.xlu1 %v4311_v43  ;;  %7688 = vmatprep.subr.msk.bf16.mxu1 %vm9068_vm9, %v7686_v7 }
 0xe1a   : > { %v8269_v1 = vpop.eup %8268 }
 0xe1b   : > { %v8271_v44 = vpop.eup %8270  ;;  %v4320_v31 = vsel %vm782_vm7, %v8269_v1, 0.0 }
 0xe1c   : > { %4321 = vadd.xlane.f32.xlu0 %v4320_v31  ;;  %v4317_v23 = vsel %vm782_vm7, %v8271_v44, 0.0 }
 0xe1d   : > { %4318 = vadd.xlane.f32.xlu1 %v4317_v23 }
 0xe1e   : > { %v10142_v38 = vpop.eup %8272 }
 0xe1f   : > { %v4326_v22 = vsel %vm782_vm7, %v10142_v38, 0.0  ;;  %v10146_v6 = vpop.eup %8274 }
 0xe20   : > { %4327 = vadd.xlane.f32.xlu0 %v4326_v22  ;;  %v4323_v40 = vsel %vm782_vm7, %v10146_v6, 0.0 }
 0xe24   : > { %4324 = vadd.xlane.f32.xlu0 %v4323_v40 }
 0xe2e   : > { %7959 = vrot.lane.b32.xlu1 %v11226_v28, %s8355_s17 }
 0xe32   : > { %7964 = vrot.lane.b32.xlu1 %v11229_v63, %s8355_s17 }
 0xe36   : > { %4474 = vrot.lane.b32.xlu1 %v11213_v27, %s8355_s17 }
 0xe3a   : > { %4476 = vrot.lane.b32.xlu1 %v11214_v16, %s8355_s17  ;;  %7954 = vrot.lane.b32.xlu0 %v11232_v13, %s8355_s17 }
 0xe3e   : > { %4480 = vrot.lane.b32.xlu1 %v11216_v14, %s8355_s17  ;;  %4478 = vrot.lane.b32.xlu0 %v11215_v4, %s8355_s17 }
 0xe42   : > { %4484 = vrot.lane.b32.xlu1 %v11218_v32, %s8355_s17  ;;  %4482 = vrot.lane.b32.xlu0 %v11217_v2, %s8355_s17 }
 0xe46   : > { %4488 = vrot.lane.b32.xlu1 %v11220_v41, %s8355_s17  ;;  %4486 = vrot.lane.b32.xlu0 %v11219_v46, %s8355_s17 }
 0xea1   : > { %v4310_v27 = vpop.xlane.xlu0 %4309 }
 0xea2   : > { %8276 = vrcp.f32 %v4310_v27  ;;  %v4307_v16 = vpop.xlane.xlu1 %4306 }
 0xea3   : > { %8278 = vrcp.f32 %v4307_v16 }
 0xea5   : > { %v4316_v14 = vpop.xlane.xlu0 %4315 }
 0xea6   : > { %8280 = vrcp.f32 %v4316_v14  ;;  %v4313_v17 = vpop.xlane.xlu1 %4312 }
 0xea7   : > { %8282 = vrcp.f32 %v4313_v17 }
 0xea9   : > { %v4322_v4 = vpop.xlane.xlu0 %4321 }
 0xeaa   : > { %8284 = vrcp.f32 %v4322_v4  ;;  %v4319_v32 = vpop.xlane.xlu1 %4318 }
 0xeab   : > { %8286 = vrcp.f32 %v4319_v32 }
 0xeac   : > { %v8277_v57 = vpop.eup %8276 }
 0xead   : > { %v8279_v2 = vpop.eup %8278  ;;  %v4328_v21 = vpop.xlane.xlu0 %4327  ;;  %v4338_v41 = vmul.f32 %v8277_v57, %v8261_v48 }
 0xeae   : > { %v4337_v43 = vmul.f32 %v8279_v2, %v8263_v11  ;;  %8288 = vrcp.f32 %v4328_v21  ;;  %v7960_v22 = vpop.permute.xlu1 %7959 }
 0xeaf   : > { %v7962_v48 = vunpack.i.h.bf16 %v7960_v22  ;;  %v7961_v15 = vunpack.i.l.bf16 %v7960_v22 }
 0xeb0   : > { %v8281_v31 = vpop.eup %8280  ;;  %7292 = vmatprep.mubr.msk.f32.mxu1 %vm782_vm7, %v4337_v43 }
 0xeb1   : > { %v8283_v46 = vpop.eup %8282  ;;  %v4325_v23 = vpop.xlane.xlu0 %4324  ;;  %7293 = vmatmul.mubr.msk.f32.vlgmr.msra.gmra.mrb[108].mxu1 %vm782_vm7, %v4338_v41  ;;  %v4340_v52 = vmul.f32 %v8281_v31, %v8265_v34 }
 0xeb2   : > { %8290 = vrcp.f32 %v4325_v23  ;;  %7691 = vmatpush3.bf16.xpose.msk.msra.mxu1 %vm9068_vm9, %v7686_v7  ;;  %v4339_v40 = vmul.f32 %v8283_v46, %v8267_v55  ;;  %v7698_v55 = vpack.c.bf16 %v7962_v48, %v7961_v15  ;;  %v7965_v34 = vpop.permute.xlu1 %7964 }
 0xeb3   : > { %v7966_v16 = vunpack.i.l.bf16 %v7965_v34 }
 0xeb4   : > { %v8285_v5 = vpop.eup %8284  ;;  %7295 = vmatprep.mubr.msk.f32.mxu1 %vm782_vm7, %v4339_v40 }
 0xeb5   : > { %v8287_v11 = vpop.eup %8286  ;;  %v7955_v28 = vpop.permute.xlu0 %7954  ;;  %7296 = vmatmul.mubr.msk.f32.gmra.mrb[110].mxu1 %vm782_vm7, %v4340_v52  ;;  %v4342_v60 = vmul.f32 %v8285_v5, %v8269_v1 }
 0xeb6   : > { %v7957_v36 = vunpack.i.h.bf16 %v7955_v28  ;;  %v7956_v63 = vunpack.i.l.bf16 %v7955_v28  ;;  %v4341_v20 = vmul.f32 %v8287_v11, %v8271_v44  ;;  %v7967_v44 = vunpack.i.h.bf16 %v7965_v34  ;;  %v4475_v17 = vpop.permute.xlu1 %4474 }
 0xeb8   : > { %v7692_v13 = vpack.c.bf16 %v7957_v36, %v7956_v63  ;;  %7298 = vmatprep.mubr.msk.f32.mxu1 %vm782_vm7, %v4341_v20  ;;  %v8289_v7 = vpop.eup %8288  ;;  %v7704_v4 = vpack.c.bf16 %v7967_v44, %v7966_v16 }
 0xeb9   : > { %7299 = vmatmul.mubr.msk.f32.gmra.mrb[112].mxu1 %vm782_vm7, %v4342_v60  ;;  %v4344_v14 = vmul.f32 %v8289_v7, %v10142_v38 }
 0xeba   : > { %7694 = vmatprep.subr.msk.bf16.mxu1 %vm9068_vm9, %v7692_v13  ;;  %v4477_v32 = vpop.permute.xlu1 %4476 }
 0xebb   : > { %7697 = vmatpush3.bf16.xpose.msk.msra.mxu1 %vm9068_vm9, %v7692_v13 }
 0xebc   : > { %v8291_v27 = vpop.eup %8290  ;;  %7700 = vmatprep.subr.msk.bf16.mxu1 %vm9068_vm9, %v7698_v55 }
 0xebd   : > { %v4343_v1 = vmul.f32 %v8291_v27, %v10146_v6  ;;  %v4479_v6 = vpop.permute.xlu0 %4478 }
 0xebe   : > { %v4481_v38 = vpop.permute.xlu1 %4480 }
 0xebf   : > { %7301 = vmatprep.mubr.msk.f32.mxu1 %vm782_vm7, %v4343_v1 }
 0xec0   : > { %7302 = vmatmul.mubr.msk.f32.gmra.mrb[114].mxu1 %vm782_vm7, %v4344_v14 }
 0xec1   : > { %7320 = vmatprep.mubr.msk.f32.mxu1 %vm782_vm7, %v4475_v17  ;;  %v4483_v57 = vpop.permute.xlu0 %4482 }
 0xec2   : > { %v4485_v2 = vpop.permute.xlu1 %4484 }
 0xec3   : > { %7703 = vmatpush3.bf16.xpose.msk.msra.mxu1 %vm9068_vm9, %v7698_v55 }
 0xec4   : > { %7706 = vmatprep.subr.msk.bf16.mxu1 %vm9068_vm9, %v7704_v4 }
 0xec5   : > { %v4487_v21 = vpop.permute.xlu0 %4486 }
 0xec6   : > { %v4489_v43 = vpop.permute.xlu1 %4488 }
 0xecb   : > { %7709 = vmatpush3.bf16.xpose.msk.msra.mxu1 %vm9068_vm9, %v7704_v4 }
 0xed2   : > { %7321 = vmatmul.mubr.msk.f32.vlgmr.msra.gmra.mrb[116].mxu1 %vm782_vm7, %v4477_v32 }
 0xed3   : > { %7323 = vmatprep.mubr.msk.f32.mxu1 %vm782_vm7, %v4479_v6 }
 0xed6   : > { %7324 = vmatmul.mubr.msk.f32.gmra.mrb[118].mxu1 %vm782_vm7, %v4481_v38 }
 0xed7   : > { %7326 = vmatprep.mubr.msk.f32.mxu1 %vm782_vm7, %v4483_v57 }
 0xeda   : > { %7327 = vmatmul.mubr.msk.f32.gmra.mrb[120].mxu1 %vm782_vm7, %v4485_v2  ;;  %v11233_v2 = vld [vmem:[#allocation48_spill] sm:$0xff] }
 0xedb   : > { %7329 = vmatprep.mubr.msk.f32.mxu1 %vm782_vm7, %v4487_v21  ;;  %v11234_v21 = vld [vmem:[#allocation45_spill] sm:$0xff] }
 0xede   : > { %7330 = vmatmul.mubr.msk.f32.gmra.mrb[122].mxu1 %vm782_vm7, %v4489_v43  ;;  %v11235_v43 = vpack.i.bf16 %v11233_v2, %v11234_v21 }
 0xf84   : > { %v10210_v29 = vpop.f32.mrb[108].mxu1 }
 0xf85   : > { %v10212_v41 = vpop.f32.mrb[109].mxu1 }
 0xf88   : > { %v10214_v31 = vpop.f32.mrb[110].mxu1 }
 0xf89   : > { %v10216_v46 = vpop.f32.mrb[111].mxu1 }
 0xf8c   : > { %v10218_v23 = vpop.f32.mrb[112].mxu1 }
 0xf8d   : > { %v10220_v22 = vpop.f32.mrb[113].mxu1 }
 0xf93   : > { %v10222_v40 = vpop.f32.mrb[114].mxu1 }
 0xf94   : > { %v10224_v52 = vpop.f32.mrb[115].mxu1 }
 0xfa5   : > { %v7322_v5 = vpop.f32.mrb[116].mxu1 }
 0xfa6   : > { %v4644_v11 = vmul.f32 0.125, %v7322_v5  ;;  %v4604_v48 = vpop.f32.mrb[117].mxu1  ;;  %v11236_v5 = vld [vmem:[#allocation54_spill] sm:$0xff] }
 0xfa7   : > { %v4643_v28 = vmul.f32 0.125, %v4604_v48  ;;  %v11237_v48 = vld [vmem:[#allocation51_spill] sm:$0xff] }
 0xfa8   : > { %v4654_v15 = vsel %vm782_vm7, %v4644_v11, -inf }
 0xfa9   : > { %4655 = vmax.xlane.f32.xlu1 %v4654_v15  ;;  %v7325_v36 = vpop.f32.mrb[118].mxu1  ;;  %v4651_v63 = vsel %vm782_vm7, %v4643_v28, -inf  ;;  %v11238_v15 = vpack.i.bf16 %v11236_v5, %v11237_v48 }
 0xfaa   : > { %v4646_v20 = vmul.f32 0.125, %v7325_v36  ;;  %4652 = vmax.xlane.f32.xlu0 %v4651_v63  ;;  %v4614_v60 = vpop.f32.mrb[119].mxu1 }
 0xfab   : > { %v4645_v55 = vmul.f32 0.125, %v4614_v60 }
 0xfac   : > { %v4660_v13 = vsel %vm782_vm7, %v4646_v20, -inf }
 0xfad   : > { %v7328_v34 = vpop.f32.mrb[120].mxu1  ;;  %v4657_v16 = vsel %vm782_vm7, %v4645_v55, -inf }
 0xfae   : > { %4661 = vmax.xlane.f32.xlu0 %v4660_v13  ;;  %v4624_v7 = vpop.f32.mrb[121].mxu1  ;;  %v4648_v1 = vmul.f32 0.125, %v7328_v34 }
 0xfaf   : > { %v4647_v27 = vmul.f32 0.125, %v4624_v7 }
 0xfb0   : > { %v4666_v6 = vsel %vm782_vm7, %v4648_v1, -inf }
 0xfb1   : > { %v7331_v44 = vpop.f32.mrb[122].mxu1  ;;  %v4663_v14 = vsel %vm782_vm7, %v4647_v27, -inf }
 0xfb2   : > { %4658 = vmax.xlane.f32.xlu0 %v4657_v16  ;;  %4664 = vmax.xlane.f32.xlu1 %v4663_v14  ;;  %v4634_v17 = vpop.f32.mrb[123].mxu1  ;;  %v10233_v32 = vmul.f32 0.125, %v7331_v44 }
 0xfb3   : > { %v10231_v4 = vmul.f32 0.125, %v4634_v17 }
 0xfb4   : > { %v4672_v57 = vsel %vm782_vm7, %v10233_v32, -inf }
 0xfb5   : > { %v4669_v38 = vsel %vm782_vm7, %v10231_v4, -inf }
 0xfb6   : > { %4667 = vmax.xlane.f32.xlu0 %v4666_v6  ;;  %4670 = vmax.xlane.f32.xlu1 %v4669_v38 }
 0xfba   : > { %4673 = vmax.xlane.f32.xlu0 %v4672_v57 }
 0xfc7   : > { %7969 = vrot.lane.b32.xlu1 %v11235_v43, %s8355_s17 }
 0xfd0   : > { %7974 = vrot.lane.b32.xlu0 %v11238_v15, %s8355_s17 }
0x1036   : > { %v4656_v36 = vpop.xlane.xlu1 %4655 }
0x1037   : > { %v4676_v63 = vsub.f32 %v4644_v11, %v4656_v36  ;;  %v4653_v60 = vpop.xlane.xlu0 %4652 }
0x1038   : > { %v4675_v13 = vsub.f32 %v4643_v28, %v4653_v60 }
0x1039   : > { %v4685_v34 = vmul.f32 1.442695, %v4676_v63 }
0x103a   : > { %v4683_v7 = vmul.f32 1.442695, %v4675_v13 }
0x103b   : > { %8292 = vpow2.f32 %v4685_v34  ;;  %v4662_v44 = vpop.xlane.xlu0 %4661 }
0x103c   : > { %8294 = vpow2.f32 %v4683_v7  ;;  %v4678_v16 = vsub.f32 %v4646_v20, %v4662_v44 }
0x103e   : > { %v4689_v14 = vmul.f32 1.442695, %v4678_v16 }
0x103f   : > { %v4659_v17 = vpop.xlane.xlu0 %4658  ;;  %v4665_v6 = vpop.xlane.xlu1 %4664 }
0x1040   : > { %8296 = vpow2.f32 %v4689_v14  ;;  %v4677_v38 = vsub.f32 %v4645_v55, %v4659_v17  ;;  %v4679_v57 = vsub.f32 %v4647_v27, %v4665_v6 }
0x1042   : > { %v4687_v2 = vmul.f32 1.442695, %v4677_v38  ;;  %v4691_v21 = vmul.f32 1.442695, %v4679_v57 }
0x1043   : > { %v4668_v43 = vpop.xlane.xlu0 %4667  ;;  %v4671_v5 = vpop.xlane.xlu1 %4670 }
0x1044   : > { %8298 = vpow2.f32 %v4687_v2  ;;  %v4680_v11 = vsub.f32 %v4648_v1, %v4668_v43  ;;  %v11239_v43 = vld [vmem:[#allocation60_spill] sm:$0xff] }
0x1045   : > { %v10248_v48 = vpop.eup %8292  ;;  %8300 = vpow2.f32 %v4691_v21 }
0x1046   : > { %v8295_v28 = vpop.eup %8294  ;;  %v4693_v15 = vmul.f32 1.442695, %v4680_v11  ;;  %v4702_v20 = vsel %vm782_vm7, %v10248_v48, 0.0  ;;  %v11240_v11 = vld [vmem:[#allocation57_spill] sm:$0xff] }
0x1047   : > { %4703 = vadd.xlane.f32.xlu0 %v4702_v20  ;;  %v4674_v36 = vpop.xlane.xlu0 %4673  ;;  %v7970_v63 = vpop.permute.xlu1 %7969  ;;  %v4699_v55 = vsel %vm782_vm7, %v8295_v28, 0.0  ;;  %v11242_v20 = vld [vmem:[#allocation66_spill] sm:$0xff] }
0x1048   : > { %8302 = vpow2.f32 %v4693_v15  ;;  %v7972_v27 = vunpack.i.h.bf16 %v7970_v63  ;;  %v7971_v60 = vunpack.i.l.bf16 %v7970_v63  ;;  %4700 = vadd.xlane.f32.xlu1 %v4699_v55  ;;  %v11241_v15 = vpack.i.bf16 %v11239_v43, %v11240_v11  ;;  %v11243_v63 = vld [vmem:[#allocation63_spill] sm:$0xff] }
0x1049   : > { %v11244_v55 = vpack.i.bf16 %v11242_v20, %v11243_v63 }
0x104a   : > { %v10253_v13 = vpop.eup %8296  ;;  %v7710_v1 = vpack.c.bf16 %v7972_v27, %v7971_v60  ;;  %v4681_v27 = vsub.f32 %v10231_v4, %v4671_v5  ;;  %v4682_v60 = vsub.f32 %v10233_v32, %v4674_v36  ;;  %v11245_v4 = vpack.i.bf16 %v9708_v33, %v9854_v56 }
0x104b   : > { %v7975_v34 = vpop.permute.xlu0 %7974  ;;  %v4708_v7 = vsel %vm782_vm7, %v10253_v13, 0.0  ;;  %v11246_v32 = vpack.i.bf16 %v9706_v62, %v9850_v54 }
0x104c   : > { %v7977_v44 = vunpack.i.h.bf16 %v7975_v34  ;;  %v7976_v16 = vunpack.i.l.bf16 %v7975_v34  ;;  %4709 = vadd.xlane.f32.xlu0 %v4708_v7  ;;  %7711 = vmatprep.subr.bf16.mxu0 %v7710_v1  ;;  %v4697_v34 = vmul.f32 1.442695, %v4682_v60 }
0x104d   : > { %7713 = vmatpush3.bf16.msra.mxu0 %v7710_v1  ;;  %v4695_v1 = vmul.f32 1.442695, %v4681_v27  ;;  %v5076_v27 = vld [vmem:[%s10971_s5 + $0x80] sm:$0xff] }
0x104e   : > { %v10257_v14 = vpop.eup %8298  ;;  %v7714_v17 = vpack.c.bf16 %v7977_v44, %v7976_v16 }
0x104f   : > { %v4705_v6 = vsel %vm782_vm7, %v10257_v14, 0.0  ;;  %v10261_v38 = vpop.eup %8300  ;;  %8304 = vpow2.f32 %v4695_v1 }
0x1050   : > { %4706 = vadd.xlane.f32.xlu1 %v4705_v6  ;;  %7715 = vmatprep.subr.bf16.mxu0 %v7714_v17  ;;  %v4711_v21 = vsel %vm782_vm7, %v10261_v38, 0.0  ;;  %8306 = vpow2.f32 %v4697_v34  ;;  %v5060_v34 = vld [vmem:[%s10971_s5] sm:$0xff] }
0x1051   : > { %7717 = vmatpush3.bf16.msra.mxu0 %v7714_v17 }
0x1052   : > { %v10263_v57 = vpop.eup %8302 }
0x1053   : > { %v4714_v2 = vsel %vm782_vm7, %v10263_v57, 0.0 }
0x1054   : > { %4715 = vadd.xlane.f32.xlu0 %v4714_v2  ;;  %4712 = vadd.xlane.f32.xlu1 %v4711_v21 }
0x1059   : > { %v10279_v7 = vpop.eup %8304 }
0x105a   : > { %v10281_v44 = vpop.eup %8306  ;;  %v4717_v17 = vsel %vm782_vm7, %v10279_v7, 0.0 }
0x105b   : > { %v4720_v16 = vsel %vm782_vm7, %v10281_v44, 0.0 }
0x1065   : > { %7979 = vrot.lane.b32.xlu1 %v11241_v15, %s8355_s17 }
0x106a   : > { %7984 = vrot.lane.b32.xlu0 %v11244_v55, %s8355_s17 }
0x1089   : > { %4721 = vadd.xlane.f32.xlu0 %v4720_v16  ;;  %4718 = vadd.xlane.f32.xlu1 %v4717_v17  ;;  %v5061_v16 = vld [vmem:[%s10971_s5 + $0x8] sm:$0xff] }
0x109a   : > { %7989 = vrot.lane.b32.xlu1 %v11245_v4, %s8355_s17  ;;  %v5078_v4 = vld [vmem:[%s10971_s5 + $0x90] sm:$0xff] }
0x109e   : > { %7999 = vrot.lane.b32.xlu1 %v11246_v32, %s8355_s17  ;;  %v5079_v32 = vld [vmem:[%s10971_s5 + $0x98] sm:$0xff] }
0x10d4   : > { %v4704_v36 = vpop.xlane.xlu0 %4703 }
0x10d5   : > { %v4701_v5 = vpop.xlane.xlu1 %4700 }
0x10d6   : > { %8308 = vrcp.f32 %v4701_v5 }
0x10d7   : > { %8310 = vrcp.f32 %v4704_v36  ;;  %v7728_v36 = vpack.c.bf16 %v5061_v16, %v5060_v34  ;;  %v5067_v16 = vld [vmem:[%s10971_s5 + $0x38] sm:$0xff] }
0x10d9   : > { %v4710_v6 = vpop.xlane.xlu0 %4709 }
0x10dd   : > { %v4707_v2 = vpop.xlane.xlu1 %4706 }
0x10de   : > { %8312 = vrcp.f32 %v4707_v2  ;;  %v7730_v2 = vpack.c.bf16 %v5079_v32, %v5078_v4  ;;  %v5085_v4 = vld [vmem:[%s10971_s5 + $0xc8] sm:$0xff] }
0x10df   : > { %8314 = vrcp.f32 %v4710_v6 }
0x10e0   : > { %v8309_v21 = vpop.eup %8308 }
0x10e1   : > { %v4716_v43 = vpop.xlane.xlu0 %4715  ;;  %v4713_v11 = vpop.xlane.xlu1 %4712  ;;  %v4731_v15 = vmul.f32 %v8309_v21, %v8295_v28  ;;  %v5077_v28 = vld [vmem:[%s10971_s5 + $0x88] sm:$0xff]  ;;  %v5062_v21 = vld [vmem:[%s10971_s5 + $0x10] sm:$0xff] }
0x10e2   : > { %8316 = vrcp.f32 %v4713_v11  ;;  %v7726_v1 = vpack.c.bf16 %v5077_v28, %v5076_v27  ;;  %v8311_v17 = vpop.eup %8310  ;;  %v5082_v28 = vld [vmem:[%s10971_s5 + $0xb0] sm:$0xff] }
0x10e3   : > { %7348 = vmatprep.mubr.msk.f32.mxu0 %vm782_vm7, %v4731_v15  ;;  %8318 = vrcp.f32 %v4716_v43  ;;  %v4732_v6 = vmul.f32 %v8311_v17, %v10248_v48  ;;  %v5063_v43 = vld [vmem:[%s10971_s5 + $0x18] sm:$0xff]  ;;  %v5081_v48 = vld [vmem:[%s10971_s5 + $0xa8] sm:$0xff]  ;;  %v5084_v17 = vld [vmem:[%s10971_s5 + $0xc0] sm:$0xff] }
0x10e4   : > { %v7742_v32 = vpack.c.bf16 %v5085_v4, %v5084_v17 }
0x10e5   : > { %v7985_v33 = vpop.permute.xlu0 %7984  ;;  %v7980_v56 = vpop.permute.xlu1 %7979 }
0x10e6   : > { %v7987_v20 = vunpack.i.h.bf16 %v7985_v33  ;;  %v7986_v63 = vunpack.i.l.bf16 %v7985_v33  ;;  %v7982_v55 = vunpack.i.h.bf16 %v7980_v56  ;;  %v7981_v62 = vunpack.i.l.bf16 %v7980_v56  ;;  %v5080_v33 = vld [vmem:[%s10971_s5 + $0xa0] sm:$0xff] }
0x10e8   : > { %v7718_v54 = vpack.c.bf16 %v7982_v55, %v7981_v62  ;;  %v7722_v60 = vpack.c.bf16 %v7987_v20, %v7986_v63  ;;  %v8313_v5 = vpop.eup %8312  ;;  %v7732_v20 = vpack.c.bf16 %v5063_v43, %v5062_v21  ;;  %v7734_v55 = vpack.c.bf16 %v5081_v48, %v5080_v33  ;;  %v5065_v62 = vld [vmem:[%s10971_s5 + $0x28] sm:$0xff]  ;;  %v5088_v33 = vld [vmem:[%s10971_s5 + $0xe0] sm:$0xff] }
0x10e9   : > { %v8315_v11 = vpop.eup %8314  ;;  %v4733_v15 = vmul.f32 %v8313_v5, %v10257_v14  ;;  %v5064_v14 = vld [vmem:[%s10971_s5 + $0x20] sm:$0xff]  ;;  %v5089_v48 = vld [vmem:[%s10971_s5 + $0xe8] sm:$0xff] }
0x10ea   : > { %7719 = vmatprep.subr.bf16.mxu0 %v7718_v54  ;;  %v4734_v63 = vmul.f32 %v8315_v11, %v10253_v13  ;;  %v5083_v13 = vld [vmem:[%s10971_s5 + $0xb8] sm:$0xff]  ;;  %v5068_v5 = vld [vmem:[%s10971_s5 + $0x40] sm:$0xff]  ;;  %v5070_v11 = vld [vmem:[%s10971_s5 + $0x50] sm:$0xff] }
0x10eb   : > { %7721 = vmatpush3.bf16.msra.mxu0 %v7718_v54  ;;  %v7738_v34 = vpack.c.bf16 %v5083_v13, %v5082_v28  ;;  %v5074_v28 = vld [vmem:[%s10971_s5 + $0x70] sm:$0xff]  ;;  %v5075_v13 = vld [vmem:[%s10971_s5 + $0x78] sm:$0xff] }
0x10ec   : > { %7723 = vmatprep.subr.bf16.mxu0 %v7722_v60  ;;  %v8317_v56 = vpop.eup %8316 }
0x10ed   : > { %v8319_v54 = vpop.eup %8318  ;;  %v4735_v27 = vmul.f32 %v8317_v56, %v10261_v38  ;;  %v5066_v38 = vld [vmem:[%s10971_s5 + $0x30] sm:$0xff] }
0x10ef   : > { %7725 = vmatpush3.bf16.msra.mxu0 %v7722_v60  ;;  %v7736_v60 = vpack.c.bf16 %v5065_v62, %v5064_v14  ;;  %v5090_v14 = vld [vmem:[%s10971_s5 + $0xf0] sm:$0xff]  ;;  %v5091_v62 = vld [vmem:[%s10971_s5 + $0xf8] sm:$0xff] }
0x10f0   : > { %7727 = vmatprep.subr.bf16.mxu0 %v7726_v1  ;;  %v4736_v1 = vmul.f32 %v8319_v54, %v10263_v57  ;;  %v7740_v57 = vpack.c.bf16 %v5067_v16, %v5066_v38 }
0x10f2   : > { %7349 = vmatmul.mubr.msk.f32.vlgmr.msra.gmra.mrb[100].mxu0 %vm782_vm7, %v4732_v6  ;;  %v5086_v6 = vld [vmem:[%s10971_s5 + $0xd0] sm:$0xff] }
0x10f3   : > { %7351 = vmatprep.mubr.msk.f32.mxu0 %vm782_vm7, %v4733_v15  ;;  %7729 = vmatpush3.bf16.msra.mxu0 %v7728_v36  ;;  %v5069_v36 = vld [vmem:[%s10971_s5 + $0x48] sm:$0xff]  ;;  %v5071_v15 = vld [vmem:[%s10971_s5 + $0x58] sm:$0xff] }
0x10f4   : > { %7731 = vmatprep.subr.bf16.mxu0 %v7730_v2  ;;  %v5087_v2 = vld [vmem:[%s10971_s5 + $0xd8] sm:$0xff]  ;;  %v7744_v21 = vpack.c.bf16 %v5069_v36, %v5068_v5  ;;  %v7748_v56 = vpack.c.bf16 %v5071_v15, %v5070_v11  ;;  %v5108_v11 = vld [vmem:[%s10971_s5 + $0x180] sm:$0xff] }
0x10f5   : > { %v7746_v43 = vpack.c.bf16 %v5087_v2, %v5086_v6 }
0x10f6   : > { %7352 = vmatmul.mubr.msk.f32.gmra.mrb[102].mxu0 %vm782_vm7, %v4734_v63  ;;  %v5072_v63 = vld [vmem:[%s10971_s5 + $0x60] sm:$0xff] }
0x10f7   : > { %7354 = vmatprep.mubr.msk.f32.mxu0 %vm782_vm7, %v4735_v27  ;;  %7733 = vmatpush3.bf16.msra.mxu0 %v7732_v20  ;;  %v7750_v20 = vpack.c.bf16 %v5089_v48, %v5088_v33  ;;  %v7754_v27 = vpack.c.bf16 %v5091_v62, %v5090_v14  ;;  %v5111_v33 = vld [vmem:[%s10971_s5 + $0x198] sm:$0xff]  ;;  %v5113_v14 = vld [vmem:[%s10971_s5 + $0x1a8] sm:$0xff] }
0x10f8   : > { %7735 = vmatprep.subr.bf16.mxu0 %v7734_v55  ;;  %v5073_v55 = vld [vmem:[%s10971_s5 + $0x68] sm:$0xff] }
0x10f9   : > { %v7752_v54 = vpack.c.bf16 %v5073_v55, %v5072_v63  ;;  %v5095_v63 = vld [vmem:[%s10971_s5 + $0x118] sm:$0xff]  ;;  %v5112_v55 = vld [vmem:[%s10971_s5 + $0x1a0] sm:$0xff] }
0x10fa   : > { %7355 = vmatmul.mubr.msk.f32.gmra.mrb[104].mxu0 %vm782_vm7, %v4736_v1 }
0x10fb   : > { %7737 = vmatpush3.bf16.msra.mxu0 %v7736_v60  ;;  %v7756_v60 = vpack.c.bf16 %v5075_v13, %v5074_v28  ;;  %v5097_v28 = vld [vmem:[%s10971_s5 + $0x128] sm:$0xff]  ;;  %v5114_v13 = vld [vmem:[%s10971_s5 + $0x1b0] sm:$0xff] }
0x10fc   : > { %7739 = vmatprep.subr.bf16.mxu0 %v7738_v34 }
0x10ff   : > { %7741 = vmatpush3.bf16.msra.mxu0 %v7740_v57 }
0x1100   : > { %7743 = vmatprep.subr.bf16.mxu0 %v7742_v32 }
0x1103   : > { %7745 = vmatpush3.bf16.msra.mxu0 %v7744_v21 }
0x1104   : > { %7747 = vmatprep.subr.bf16.mxu0 %v7746_v43 }
0x1107   : > { %7749 = vmatpush3.bf16.msra.mxu0 %v7748_v56 }
0x1108   : > { %7751 = vmatprep.subr.bf16.mxu0 %v7750_v20  ;;  %v5094_v20 = vld [vmem:[%s10971_s5 + $0x110] sm:$0xff] }
0x1109   : > { %v7764_v62 = vpack.c.bf16 %v5095_v63, %v5094_v20  ;;  %v5106_v20 = vld [vmem:[%s10971_s5 + $0x170] sm:$0xff] }
0x110b   : > { %7753 = vmatpush3.bf16.msra.mxu0 %v7752_v54  ;;  %v7766_v54 = vpack.c.bf16 %v5113_v14, %v5112_v55  ;;  %v5107_v55 = vld [vmem:[%s10971_s5 + $0x178] sm:$0xff] }
0x110c   : > { %7755 = vmatprep.subr.bf16.mxu0 %v7754_v27  ;;  %v5096_v27 = vld [vmem:[%s10971_s5 + $0x120] sm:$0xff]  ;;  %v7788_v14 = vpack.c.bf16 %v5107_v55, %v5106_v20 }
0x110f   : > { %7757 = vmatpush3.bf16.msra.mxu0 %v7756_v60  ;;  %v5115_v60 = vld [vmem:[%s10971_s5 + $0x1b8] sm:$0xff] }
0x1116   : > { %v4722_v1 = vpop.xlane.xlu0 %4721  ;;  %v4719_v34 = vpop.xlane.xlu1 %4718 }
0x1117   : > { %8320 = vrcp.f32 %v4722_v1  ;;  %v7768_v1 = vpack.c.bf16 %v5097_v28, %v5096_v27 }
0x1118   : > { %8322 = vrcp.f32 %v4719_v34  ;;  %v7770_v34 = vpack.c.bf16 %v5115_v60, %v5114_v13 }
0x111a   : > { %v7990_v38 = vpop.permute.xlu1 %7989 }
0x111b   : > { %v7991_v4 = vunpack.i.l.bf16 %v7990_v38  ;;  %v7992_v36 = vunpack.i.h.bf16 %v7990_v38  ;;  %v5098_v38 = vld [vmem:[%s10971_s5 + $0x130] sm:$0xff] }
0x111d   : > { %v5036_v2 = vsel %vm782_vm7, %v9724_v8, %v7991_v4  ;;  %v5028_v43 = vsel %vm782_vm7, %v9692_v18, %v7992_v36  ;;  %v5109_v8 = vld [vmem:[%s10971_s5 + $0x188] sm:$0xff]  ;;  %v5092_v18 = vld [vmem:[%s10971_s5 + $0x100] sm:$0xff] }
0x111e   : > { %v8000_v32 = vpop.permute.xlu1 %7999  ;;  %v7758_v15 = vpack.c.bf16 %v5109_v8, %v5108_v11  ;;  %v5117_v4 = vld [vmem:[%s10971_s5 + $0x1c8] sm:$0xff]  ;;  %v5120_v11 = vld [vmem:[%s10971_s5 + $0x1e0] sm:$0xff] }
0x111f   : > { %v8001_v6 = vunpack.i.l.bf16 %v8000_v32  ;;  %v8002_v21 = vunpack.i.h.bf16 %v8000_v32  ;;  %v5101_v36 = vld [vmem:[%s10971_s5 + $0x148] sm:$0xff] }
0x1120   : > { %7759 = vmatprep.subr.bf16.mxu1 %v7758_v15  ;;  %v5121_v8 = vld [vmem:[%s10971_s5 + $0x1e8] sm:$0xff] }
0x1121   : > { %v8321_v16 = vpop.eup %8320  ;;  %v7782_v15 = vpack.c.bf16 %v5121_v8, %v5120_v11  ;;  %v11253_v11 = vld [vmem:[#allocation80_spill] sm:$0xff] }
0x1122   : > { %v8323_v17 = vpop.eup %8322  ;;  %v4738_v57 = vmul.f32 %v8321_v16, %v10281_v44  ;;  %v5037_v44 = vsel %vm782_vm7, %v9722_v50, %v8001_v6  ;;  %v5093_v50 = vld [vmem:[%s10971_s5 + $0x108] sm:$0xff]  ;;  %v5099_v16 = vld [vmem:[%s10971_s5 + $0x138] sm:$0xff]  ;;  %v5118_v6 = vld [vmem:[%s10971_s5 + $0x1d0] sm:$0xff] }
0x1123   : > { %v4737_v5 = vmul.f32 %v8323_v17, %v10279_v7  ;;  %v5029_v7 = vsel %vm782_vm7, %v9690_v24, %v8002_v21  ;;  %v5110_v24 = vld [vmem:[%s10971_s5 + $0x190] sm:$0xff]  ;;  %v7760_v48 = vpack.c.bf16 %v5093_v50, %v5092_v18  ;;  %v5116_v17 = vld [vmem:[%s10971_s5 + $0x1c0] sm:$0xff] }
0x1124   : > { %v7762_v56 = vpack.c.bf16 %v5111_v33, %v5110_v24  ;;  %v7774_v32 = vpack.c.bf16 %v5117_v4, %v5116_v17  ;;  %v5104_v50 = vld [vmem:[%s10971_s5 + $0x160] sm:$0xff]  ;;  %v5105_v24 = vld [vmem:[%s10971_s5 + $0x168] sm:$0xff] }
0x1125   : > { %7357 = vmatprep.mubr.msk.f32.mxu0 %vm782_vm7, %v4737_v5  ;;  %7761 = vmatpush3.bf16.msra.mxu1 %v7760_v48  ;;  %v5100_v5 = vld [vmem:[%s10971_s5 + $0x140] sm:$0xff]  ;;  %v7784_v33 = vpack.c.bf16 %v5105_v24, %v5104_v50  ;;  %v5122_v48 = vld [vmem:[%s10971_s5 + $0x1f0] sm:$0xff] }
0x1126   : > { %7358 = vmatmul.mubr.msk.f32.gmra.mrb[106].mxu0 %vm782_vm7, %v4738_v57  ;;  %7763 = vmatprep.subr.bf16.mxu1 %v7762_v56  ;;  %v7772_v57 = vpack.c.bf16 %v5099_v16, %v5098_v38  ;;  %v7776_v21 = vpack.c.bf16 %v5101_v36, %v5100_v5  ;;  %v5123_v56 = vld [vmem:[%s10971_s5 + $0x1f8] sm:$0xff]  ;;  %v11247_v38 = vpack.i.bf16 %v9712_v58, %v9862_v19  ;;  %v11255_v24 = vld [vmem:[#allocation69_spill] sm:$0xff] }
0x1127   : > { %5195 = vmatprep.mubr.f32.mxu0 %v5036_v2  ;;  %v5119_v2 = vld [vmem:[%s10971_s5 + $0x1d8] sm:$0xff]  ;;  %v7786_v63 = vpack.c.bf16 %v5123_v56, %v5122_v48  ;;  %v11249_v58 = vpack.i.bf16 %v9716_v61, %v9870_v47  ;;  %v11250_v19 = vpack.i.bf16 %v9714_v12, %v9866_v30 }
0x1129   : > { %7765 = vmatpush3.bf16.msra.mxu1 %v7764_v62 }
0x112a   : > { %5196 = vmatmul.mubr.f32.vlgmr.msra.gmra.mrb[108].mxu0 %v5028_v43  ;;  %7767 = vmatprep.subr.bf16.mxu1 %v7766_v54  ;;  %v7778_v43 = vpack.c.bf16 %v5119_v2, %v5118_v6 }
0x112b   : > { %5200 = vmatprep.mubr.f32.mxu0 %v5037_v44  ;;  %v5102_v44 = vld [vmem:[%s10971_s5 + $0x150] sm:$0xff] }
0x112d   : > { %7769 = vmatpush3.bf16.msra.mxu1 %v7768_v1 }
0x112e   : > { %5201 = vmatmul.mubr.f32.gmra.mrb[110].mxu0 %v5029_v7  ;;  %7771 = vmatprep.subr.bf16.mxu1 %v7770_v34  ;;  %v5103_v7 = vld [vmem:[%s10971_s5 + $0x158] sm:$0xff] }
0x112f   : > { %v7780_v18 = vpack.c.bf16 %v5103_v7, %v5102_v44 }
0x1131   : > { %7773 = vmatpush3.bf16.msra.mxu1 %v7772_v57 }
0x1132   : > { %7775 = vmatprep.subr.bf16.mxu1 %v7774_v32 }
0x1135   : > { %7777 = vmatpush3.bf16.msra.mxu1 %v7776_v21 }
0x1136   : > { %7779 = vmatprep.subr.bf16.mxu1 %v7778_v43 }
0x1139   : > { %7781 = vmatpush3.bf16.msra.mxu1 %v7780_v18  ;;  %v11254_v18 = vld [vmem:[#allocation59_spill] sm:$0xff] }
0x113a   : > { %7783 = vmatprep.subr.bf16.mxu1 %v7782_v15 }
0x113d   : > { %7785 = vmatpush3.bf16.msra.mxu1 %v7784_v33 }
0x113e   : > { %7787 = vmatprep.subr.bf16.mxu1 %v7786_v63  ;;  %v11256_v63 = vld [vmem:[#allocation79_spill] sm:$0xff] }
0x1141   : > { %7789 = vmatpush3.bf16.msra.mxu1 %v7788_v14  ;;  %v11257_v14 = vld [vmem:[#allocation53_spill] sm:$0xff] }
0x11c5   : > { %v7350_v62 = vpop.f32.mrb[100].mxu0 }
0x11c6   : > { %v8003_v54 = vpack.i.bf16 %v10106_v59, %v7350_v62  ;;  %v4861_v27 = vpop.f32.mrb[101].mxu0 }
0x11c7   : > { %v7993_v28 = vpack.i.bf16 %v10108_v39, %v4861_v27 }
0x11c8   : > { %8004 = vrot.lane.b32.xlu1 %v8003_v54, %s8355_s17 }
0x11c9   : > { %7994 = vrot.lane.b32.xlu0 %v7993_v28, %s8355_s17  ;;  %v7353_v13 = vpop.f32.mrb[102].mxu0 }
0x11ca   : > { %v8023_v60 = vpack.i.bf16 %v10110_v25, %v7353_v13  ;;  %v4871_v1 = vpop.f32.mrb[103].mxu0  ;;  %v11248_v25 = vpack.i.bf16 %v9710_v53, %v9858_v42  ;;  %v11251_v53 = vpack.i.bf16 %v9720_v35, %v9878_v49  ;;  %v11252_v42 = vpack.i.bf16 %v9718_v26, %v9874_v0  ;;  %v11258_v13 = vld [vmem:[#allocation73_spill] sm:$0xff] }
0x11cb   : > { %v8018_v34 = vpack.i.bf16 %v10112_v9, %v4871_v1 }
0x11cd   : > { %8009 = vrot.lane.b32.xlu0 %v11247_v38, %s8355_s17  ;;  %8019 = vrot.lane.b32.xlu1 %v8018_v34, %s8355_s17  ;;  %v7356_v59 = vpop.f32.mrb[104].mxu0 }
0x11ce   : > { %v8043_v39 = vpack.i.bf16 %v10114_v45, %v7356_v59  ;;  %v4881_v16 = vpop.f32.mrb[105].mxu0  ;;  %v11259_v59 = vld [vmem:[#allocation82_spill] sm:$0xff] }
0x11cf   : > { %v8038_v17 = vpack.i.bf16 %v10116_v51, %v4881_v16  ;;  %v11260_v16 = vld [vmem:[#allocation76_spill] sm:$0xff] }
0x11d1   : > { %8014 = vrot.lane.b32.xlu0 %v11248_v25, %s8355_s17  ;;  %8024 = vrot.lane.b32.xlu1 %v8023_v60, %s8355_s17 }
0x11d5   : > { %8029 = vrot.lane.b32.xlu0 %v11249_v58, %s8355_s17  ;;  %8039 = vrot.lane.b32.xlu1 %v8038_v17, %s8355_s17 }
0x11d9   : > { %8034 = vrot.lane.b32.xlu0 %v11250_v19, %s8355_s17  ;;  %8044 = vrot.lane.b32.xlu1 %v8043_v39, %s8355_s17 }
0x11dd   : > { %8049 = vrot.lane.b32.xlu0 %v11251_v53, %s8355_s17  ;;  %v11261_v53 = vld [vmem:[#allocation68_spill] sm:$0xff] }
0x11e1   : > { %8054 = vrot.lane.b32.xlu0 %v11252_v42, %s8355_s17 }
0x11f9   : > { %v7359_v61 = vpop.f32.mrb[106].mxu0 }
0x11fa   : > { %v8063_v47 = vpack.i.bf16 %v10118_v3, %v7359_v61  ;;  %v4891_v9 = vpop.f32.mrb[107].mxu0 }
0x11fb   : > { %v8058_v45 = vpack.i.bf16 %v10120_v37, %v4891_v9 }
0x11fd   : > { %8059 = vrot.lane.b32.xlu1 %v8058_v45, %s8355_s17  ;;  %v6785_v12 = vpop.f32.mrb[108].mxu0  ;;  %v11262_v45 = vld [vmem:[#allocation81_spill] sm:$0xff] }
0x11fe   : > { %v6786_v30 = vpop.f32.mrb[109].mxu0 }
0x11ff   : > { %v10549_v51 = vadd.f32 %v6786_v30, %v6785_v12  ;;  %v11263_v30 = vld [vmem:[#allocation65_spill] sm:$0xff] }
0x1201   : > { %8064 = vrot.lane.b32.xlu1 %v8063_v47, %s8355_s17  ;;  %v6788_v35 = vpop.f32.mrb[110].mxu0 }
0x1202   : > { %v6789_v49 = vpop.f32.mrb[111].mxu0 }
0x1203   : > { %v10552_v4 = vadd.f32 %v6789_v49, %v6788_v35 }
0x123a   : > { %v8005_v26 = vpop.permute.xlu1 %8004 }
0x123b   : > { %v7995_v0 = vpop.permute.xlu0 %7994  ;;  %v8006_v57 = vunpack.i.l.bf16 %v8005_v26  ;;  %v8007_v36 = vunpack.i.h.bf16 %v8005_v26 }
0x123c   : > { %v7997_v32 = vunpack.i.h.bf16 %v7995_v0  ;;  %v7996_v3 = vunpack.i.l.bf16 %v7995_v0  ;;  %v11264_v0 = vld [vmem:[#allocation75_spill] sm:$0xff] }
0x123d   : > { %v5053_v7 = vsel %vm782_vm7, %v10210_v29, %v8006_v57  ;;  %v5045_v33 = vsel %vm782_vm7, %v11255_v24, %v8007_v36  ;;  %v11266_v36 = vld [vmem:[#allocation78_spill] sm:$0xff]  ;;  %v11270_v24 = vld [vmem:[#allocation71_spill] sm:$0xff] }
0x123e   : > { %v5052_v37 = vsel %vm782_vm7, %v10212_v41, %v7996_v3  ;;  %v5044_v5 = vsel %vm782_vm7, %v9980_v10, %v7997_v32 }
0x123f   : > { %v8010_v6 = vpop.permute.xlu0 %8009  ;;  %5300 = vmatprep.mubr.f32.mxu1 %v5052_v37  ;;  %v8020_v2 = vpop.permute.xlu1 %8019  ;;  %v11265_v37 = vld [vmem:[#allocation84_spill] sm:$0xff] }
0x1240   : > { %v8012_v21 = vunpack.i.h.bf16 %v8010_v6  ;;  %v8011_v43 = vunpack.i.l.bf16 %v8010_v6  ;;  %v8021_v44 = vunpack.i.l.bf16 %v8020_v2  ;;  %5301 = vmatmul.mubr.f32.vlgmr.msra.gmra.mrb[124].mxu1 %v5044_v5  ;;  %v8022_v15 = vunpack.i.h.bf16 %v8020_v2 }
0x1241   : > { %5305 = vmatprep.mubr.f32.mxu1 %v5053_v7 }
0x1242   : > { %v5038_v8 = vsel %vm782_vm7, %v11253_v11, %v8011_v43  ;;  %v5030_v41 = vsel %vm782_vm7, %v11254_v18, %v8012_v21  ;;  %v5054_v29 = vsel %vm782_vm7, %v10216_v46, %v8021_v44  ;;  %v5046_v60 = vsel %vm782_vm7, %v11258_v13, %v8022_v15  ;;  %v11267_v21 = vld [vmem:[#allocation72_spill] sm:$0xff]  ;;  %v11268_v11 = vld [vmem:[#allocation83_spill] sm:$0xff] }
0x1243   : > { %v8015_v10 = vpop.permute.xlu0 %8014  ;;  %5205 = vmatprep.mubr.f32.mxu0 %v5038_v8  ;;  %v8025_v50 = vpop.permute.xlu1 %8024 }
0x1244   : > { %v8017_v48 = vunpack.i.h.bf16 %v8015_v10  ;;  %v8016_v56 = vunpack.i.l.bf16 %v8015_v10  ;;  %v8026_v20 = vunpack.i.l.bf16 %v8025_v50  ;;  %5206 = vmatmul.mubr.f32.gmra.mrb[112].mxu0 %v5030_v41  ;;  %5306 = vmatmul.mubr.f32.gmra.mrb[126].mxu1 %v5045_v33  ;;  %v8027_v54 = vunpack.i.h.bf16 %v8025_v50 }
0x1245   : > { %5310 = vmatprep.mubr.f32.mxu1 %v5054_v29 }
0x1246   : > { %v5039_v55 = vsel %vm782_vm7, %v11256_v63, %v8016_v56  ;;  %v5031_v62 = vsel %vm782_vm7, %v11257_v14, %v8017_v48  ;;  %v5055_v46 = vsel %vm782_vm7, %v10214_v31, %v8026_v20  ;;  %v5047_v42 = vsel %vm782_vm7, %v11261_v53, %v8027_v54  ;;  %v11271_v63 = vld [vmem:[#allocation74_spill] sm:$0xff] }
0x1247   : > { %v8030_v27 = vpop.permute.xlu0 %8029  ;;  %5210 = vmatprep.mubr.f32.mxu0 %v5039_v55  ;;  %v8040_v28 = vpop.permute.xlu1 %8039  ;;  %v11272_v14 = vmov 0.0  }
0x1248   : > { %v8032_v1 = vunpack.i.h.bf16 %v8030_v27  ;;  %v8031_v34 = vunpack.i.l.bf16 %v8030_v27  ;;  %v8041_v38 = vunpack.i.l.bf16 %v8040_v28  ;;  %5211 = vmatmul.mubr.f32.gmra.mrb[114].mxu0 %v5031_v62  ;;  %5311 = vmatmul.mubr.f32.gmra.mrb[128].mxu1 %v5046_v60  ;;  %v8042_v25 = vunpack.i.h.bf16 %v8040_v28  ;;  %5478 = vst.msk [vmem:[#allocation2 + $0x8] sm:$0x3] %vm5477_vm10, %v11272_v14  ;;  %5480 = vst.msk [vmem:[#allocation2 + $0x18] sm:$0x3] %vm5477_vm10, %v11272_v14 }
0x1249   : > { %5315 = vmatprep.mubr.f32.mxu1 %v5055_v46  ;;  %5482 = vst.msk [vmem:[#allocation2 + $0x28] sm:$0x3] %vm5477_vm10, %v11272_v14  ;;  %5484 = vst.msk [vmem:[#allocation2 + $0x38] sm:$0x3] %vm5477_vm10, %v11272_v14 }
0x124a   : > { %v5040_v39 = vsel %vm782_vm7, %v11259_v59, %v8031_v34  ;;  %v5032_v17 = vsel %vm782_vm7, %v11260_v16, %v8032_v1  ;;  %v5056_v31 = vsel %vm782_vm7, %v10220_v22, %v8041_v38  ;;  %v5048_v57 = vsel %vm782_vm7, %v11264_v0, %v8042_v25  ;;  %5486 = vst.msk [vmem:[#allocation2 + $0x48] sm:$0x3] %vm5477_vm10, %v11272_v14 }
0x124b   : > { %v8035_v58 = vpop.permute.xlu0 %8034  ;;  %5215 = vmatprep.mubr.f32.mxu0 %v5040_v39  ;;  %v8045_v19 = vpop.permute.xlu1 %8044  ;;  %5488 = vst.msk [vmem:[#allocation2 + $0x58] sm:$0x3] %vm5477_vm10, %v11272_v14  ;;  %5490 = vst.msk [vmem:[#allocation2 + $0x68] sm:$0x3] %vm5477_vm10, %v11272_v14 }
0x124c   : > { %v8037_v61 = vunpack.i.h.bf16 %v8035_v58  ;;  %v8036_v47 = vunpack.i.l.bf16 %v8035_v58  ;;  %v8046_v9 = vunpack.i.l.bf16 %v8045_v19  ;;  %5216 = vmatmul.mubr.f32.gmra.mrb[116].mxu0 %v5032_v17  ;;  %5316 = vmatmul.mubr.f32.gmra.mrb[130].mxu1 %v5047_v42  ;;  %v8047_v49 = vunpack.i.h.bf16 %v8045_v19  ;;  %5492 = vst.msk [vmem:[#allocation2 + $0x78] sm:$0x3] %vm5477_vm10, %v11272_v14  ;;  %5494 = vst.msk [vmem:[#allocation2 + $0x88] sm:$0x3] %vm5477_vm10, %v11272_v14 }
0x124d   : > { %5320 = vmatprep.mubr.f32.mxu1 %v5056_v31  ;;  %5496 = vst.msk [vmem:[#allocation2 + $0x98] sm:$0x3] %vm5477_vm10, %v11272_v14 }
0x124e   : > { %v5041_v12 = vsel %vm782_vm7, %v11262_v45, %v8036_v47  ;;  %v5033_v35 = vsel %vm782_vm7, %v11263_v30, %v8037_v61  ;;  %v5057_v22 = vsel %vm782_vm7, %v10218_v23, %v8046_v9  ;;  %v5049_v43 = vsel %vm782_vm7, %v11267_v21, %v8047_v49  ;;  %v11269_v23 = vld [vmem:[#allocation77_spill] sm:$0xff] }
0x124f   : > { %v8050_v26 = vpop.permute.xlu0 %8049  ;;  %5220 = vmatprep.mubr.f32.mxu0 %v5041_v12 }
0x1250   : > { %v8052_v32 = vunpack.i.h.bf16 %v8050_v26  ;;  %v8051_v3 = vunpack.i.l.bf16 %v8050_v26  ;;  %5221 = vmatmul.mubr.f32.gmra.mrb[118].mxu0 %v5033_v35  ;;  %5321 = vmatmul.mubr.f32.gmra.mrb[132].mxu1 %v5048_v57 }
0x1251   : > { %5325 = vmatprep.mubr.f32.mxu1 %v5057_v22 }
0x1252   : > { %v5042_v5 = vsel %vm782_vm7, %v11265_v37, %v8051_v3  ;;  %v5034_v6 = vsel %vm782_vm7, %v11266_v36, %v8052_v32 }
0x1253   : > { %v8055_v2 = vpop.permute.xlu0 %8054  ;;  %5225 = vmatprep.mubr.f32.mxu0 %v5042_v5 }
0x1254   : > { %v8057_v44 = vunpack.i.h.bf16 %v8055_v2  ;;  %v8056_v7 = vunpack.i.l.bf16 %v8055_v2  ;;  %5226 = vmatmul.mubr.f32.gmra.mrb[120].mxu0 %v5034_v6  ;;  %5326 = vmatmul.mubr.f32.gmra.mrb[134].mxu1 %v5049_v43 }
0x1256   : > { %v5043_v8 = vsel %vm782_vm7, %v11268_v11, %v8056_v7  ;;  %v5035_v18 = vsel %vm782_vm7, %v11269_v23, %v8057_v44 }
0x1257   : > { %5230 = vmatprep.mubr.f32.mxu0 %v5043_v8 }
0x1258   : > { %5231 = vmatmul.mubr.f32.gmra.mrb[122].mxu0 %v5035_v18 }
0x126f   : > { %v8060_v41 = vpop.permute.xlu1 %8059 }
0x1270   : > { %v8062_v15 = vunpack.i.h.bf16 %v8060_v41  ;;  %v8061_v10 = vunpack.i.l.bf16 %v8060_v41 }
0x1272   : > { %v5058_v50 = vsel %vm782_vm7, %v10224_v52, %v8061_v10  ;;  %v5050_v33 = vsel %vm782_vm7, %v11270_v24, %v8062_v15 }
0x1273   : > { %v8065_v48 = vpop.permute.xlu1 %8064  ;;  %5330 = vmatprep.mubr.f32.mxu1 %v5058_v50 }
0x1274   : > { %v8067_v56 = vunpack.i.h.bf16 %v8065_v48  ;;  %v8066_v20 = vunpack.i.l.bf16 %v8065_v48  ;;  %5331 = vmatmul.mubr.f32.gmra.mrb[136].mxu1 %v5050_v33 }
0x1276   : > { %v5059_v29 = vsel %vm782_vm7, %v10222_v40, %v8066_v20  ;;  %v5051_v55 = vsel %vm782_vm7, %v11271_v63, %v8067_v56  ;;  %v10623_v40 = vld [vmem:[%s10972_s6] ss:$0 sm:$0xff] }
0x1277   : > { %5335 = vmatprep.mubr.f32.mxu1 %v5059_v29  ;;  %v5198_v54 = vadd.f32 %v10549_v51, %v10623_v40  ;;  %v5203_v38 = vadd.f32 %v10552_v4, %v10623_v40 }
0x1278   : > { %5336 = vmatmul.mubr.f32.gmra.mrb[138].mxu1 %v5051_v55 }
0x1313   : > { %v6841_v52 = vpop.f32.mrb[124].mxu1 }
0x1314   : > { %v6842_v62 = vpop.f32.mrb[125].mxu1 }
0x1315   : > { %v6843_v27 = vadd.f32 %v6842_v62, %v6841_v52 }
0x1317   : > { %v10627_v28 = vadd.f32 %v6843_v27, %v5198_v54  ;;  %v6791_v13 = vpop.f32.mrb[112].mxu0  ;;  %v6844_v60 = vpop.f32.mrb[126].mxu1  ;;  %v5514_v27 = vld [vmem:[#allocation2 + $0x1] sm:$0xff] }
0x1318   : > { %v6792_v1 = vpop.f32.mrb[113].mxu0  ;;  %v6845_v34 = vpop.f32.mrb[127].mxu1 }
0x1319   : > { %v6793_v46 = vadd.f32 %v6792_v1, %v6791_v13  ;;  %v6846_v59 = vadd.f32 %v6845_v34, %v6844_v60  ;;  %v5341_v39 = vsel %vm719_vm0, %v10627_v28, 0.0  ;;  %v5522_v13 = vld [vmem:[#allocation2 + $0x2] sm:$0xff]  ;;  %v5562_v60 = vld [vmem:[#allocation2 + $0x90] sm:$0xff] }
0x131a   : > { %5342 = vadd.xlane.f32.xlu0 %v5341_v39  ;;  %v5570_v1 = vld [vmem:[#allocation2 + $0x91] sm:$0xff] }
0x131b   : > { %v10633_v16 = vadd.f32 %v6846_v59, %v5203_v38  ;;  %v6794_v17 = vpop.f32.mrb[114].mxu0  ;;  %v6847_v51 = vpop.f32.mrb[128].mxu1  ;;  %v5208_v19 = vadd.f32 %v6793_v46, %v10623_v40 }
0x131c   : > { %v6795_v25 = vpop.f32.mrb[115].mxu0  ;;  %v6848_v58 = vpop.f32.mrb[129].mxu1 }
0x131d   : > { %v6796_v53 = vadd.f32 %v6795_v25, %v6794_v17  ;;  %v6849_v42 = vadd.f32 %v6848_v58, %v6847_v51  ;;  %v5344_v61 = vsel %vm719_vm0, %v10633_v16, 0.0 }
0x131e   : > { %5345 = vadd.xlane.f32.xlu1 %v5344_v61 }
0x131f   : > { %v10638_v4 = vadd.f32 %v6849_v42, %v5208_v19  ;;  %v6797_v47 = vpop.f32.mrb[116].mxu0  ;;  %v6850_v9 = vpop.f32.mrb[130].mxu1  ;;  %v5213_v12 = vadd.f32 %v6796_v53, %v10623_v40 }
0x1320   : > { %v6798_v31 = vpop.f32.mrb[117].mxu0  ;;  %v6851_v45 = vpop.f32.mrb[131].mxu1 }
0x1321   : > { %v6799_v30 = vadd.f32 %v6798_v31, %v6797_v47  ;;  %v6852_v35 = vadd.f32 %v6851_v45, %v6850_v9  ;;  %v5347_v49 = vsel %vm719_vm0, %v10638_v4, 0.0 }
0x1322   : > { %5348 = vadd.xlane.f32.xlu0 %v5347_v49 }
0x1323   : > { %v10643_v26 = vadd.f32 %v6852_v35, %v5213_v12  ;;  %v6800_v0 = vpop.f32.mrb[118].mxu0  ;;  %v6853_v57 = vpop.f32.mrb[132].mxu1  ;;  %v5218_v22 = vadd.f32 %v6799_v30, %v10623_v40 }
0x1324   : > { %v6801_v32 = vpop.f32.mrb[119].mxu0  ;;  %v6854_v3 = vpop.f32.mrb[133].mxu1 }
0x1325   : > { %v6802_v37 = vadd.f32 %v6801_v32, %v6800_v0  ;;  %v6855_v5 = vadd.f32 %v6854_v3, %v6853_v57  ;;  %v5350_v36 = vsel %vm719_vm0, %v10643_v26, 0.0 }
0x1326   : > { %5351 = vadd.xlane.f32.xlu0 %v5350_v36  ;;  %v5506_v36 = vld [vmem:[#allocation2] sm:$0xff] }
0x1327   : > { %v5323_v6 = vadd.f32 %v6855_v5, %v5218_v22  ;;  %v6803_v2 = vpop.f32.mrb[120].mxu0  ;;  %v6856_v21 = vpop.f32.mrb[134].mxu1  ;;  %v5223_v7 = vadd.f32 %v6802_v37, %v10623_v40 }
0x1328   : > { %v6804_v43 = vpop.f32.mrb[121].mxu0  ;;  %v6857_v44 = vpop.f32.mrb[135].mxu1 }
0x1329   : > { %v6805_v11 = vadd.f32 %v6804_v43, %v6803_v2  ;;  %v6858_v8 = vadd.f32 %v6857_v44, %v6856_v21  ;;  %v5353_v23 = vsel %vm719_vm0, %v5323_v6, 0.0 }
0x132a   : > { %5354 = vadd.xlane.f32.xlu1 %v5353_v23 }
0x132b   : > { %v5328_v18 = vadd.f32 %v6858_v8, %v5223_v7  ;;  %v6806_v41 = vpop.f32.mrb[122].mxu0  ;;  %v5228_v48 = vadd.f32 %v6805_v11, %v10623_v40 }
0x132c   : > { %v6807_v15 = vpop.f32.mrb[123].mxu0 }
0x132d   : > { %v6808_v10 = vadd.f32 %v6807_v15, %v6806_v41  ;;  %v5356_v50 = vsel %vm719_vm0, %v5328_v18, 0.0 }
0x132e   : > { %5357 = vadd.xlane.f32.xlu0 %v5356_v50 }
0x132f   : > { %v5233_v55 = vadd.f32 %v6808_v10, %v10623_v40 }
0x1347   : > { %v6859_v24 = vpop.f32.mrb[136].mxu1 }
0x1348   : > { %v6860_v33 = vpop.f32.mrb[137].mxu1 }
0x1349   : > { %v6861_v56 = vadd.f32 %v6860_v33, %v6859_v24 }
0x134b   : > { %v5333_v20 = vadd.f32 %v6861_v56, %v5228_v48  ;;  %v6862_v29 = vpop.f32.mrb[138].mxu1 }
0x134c   : > { %v6863_v63 = vpop.f32.mrb[139].mxu1 }
0x134d   : > { %v6864_v14 = vadd.f32 %v6863_v63, %v6862_v29  ;;  %v5359_v52 = vsel %vm719_vm0, %v5333_v20, 0.0 }
0x134e   : > { %5360 = vadd.xlane.f32.xlu1 %v5359_v52 }
0x134f   : > { %v5338_v62 = vadd.f32 %v6864_v14, %v5233_v55 }
0x1351   : > { %v5362_v54 = vsel %vm719_vm0, %v5338_v62, 0.0 }
0x1352   : > { %5363 = vadd.xlane.f32.xlu0 %v5362_v54  ;;  %v10714_v54 = vld [vmem:[%s10973_s7] ss:$0 sm:$0xff] }
0x135f   : > { %5587 = vrot.lane.b32.xlu1 %v5514_v27, %s8349_s25 }
0x1363   : > { %5619 = vrot.lane.b32.xlu1 %v5522_v13, %s8348_s24 }
0x1367   : > { %5761 = vrot.lane.b32.xlu1 %v5562_v60, %s8353_s12 }
0x136b   : > { %5793 = vrot.lane.b32.xlu1 %v5570_v1, %s8354_s13  ;;  %v10720_v1 = vld [vmem:[%s10974_s8] ss:$0 sm:$0xff] }
0x13a7   : > { %v5343_v40 = vpop.xlane.xlu0 %5342 }
0x13a8   : > { %v5366_v34 = vmul.f32 0.125, %v5343_v40 }
0x13aa   : > { %v10660_v38 = vsub.f32 %v10627_v28, %v5366_v34 }
0x13ab   : > { %v5346_v46 = vpop.xlane.xlu1 %5345 }
0x13ac   : > { %v5367_v59 = vmul.f32 0.125, %v5346_v46  ;;  %v5382_v39 = vmul.f32 %v10660_v38, %v10660_v38 }
0x13ae   : > { %v10665_v17 = vsub.f32 %v10633_v16, %v5367_v59  ;;  %v5390_v51 = vsel %vm719_vm0, %v5382_v39, 0.0 }
0x13af   : > { %5391 = vadd.xlane.f32.xlu1 %v5390_v51  ;;  %v5349_v25 = vpop.xlane.xlu0 %5348 }
0x13b0   : > { %v5368_v58 = vmul.f32 0.125, %v5349_v25  ;;  %v5383_v19 = vmul.f32 %v10665_v17, %v10665_v17 }
0x13b2   : > { %v10671_v53 = vsub.f32 %v10638_v4, %v5368_v58  ;;  %v5393_v28 = vsel %vm719_vm0, %v5383_v19, 0.0 }
0x13b3   : > { %5394 = vadd.xlane.f32.xlu0 %v5393_v28  ;;  %v5352_v42 = vpop.xlane.xlu0 %5351 }
0x13b4   : > { %v5369_v61 = vmul.f32 0.125, %v5352_v42  ;;  %v5384_v16 = vmul.f32 %v10671_v53, %v10671_v53 }
0x13b6   : > { %v10677_v47 = vsub.f32 %v10643_v26, %v5369_v61  ;;  %v5396_v9 = vsel %vm719_vm0, %v5384_v16, 0.0 }
0x13b7   : > { %v5355_v31 = vpop.xlane.xlu1 %5354  ;;  %5397 = vadd.xlane.f32.xlu1 %v5396_v9 }
0x13b8   : > { %v5370_v45 = vmul.f32 0.125, %v5355_v31  ;;  %v5385_v4 = vmul.f32 %v10677_v47, %v10677_v47 }
0x13ba   : > { %v10682_v12 = vsub.f32 %v5323_v6, %v5370_v45  ;;  %v5399_v30 = vsel %vm719_vm0, %v5385_v4, 0.0 }
0x13bb   : > { %5400 = vadd.xlane.f32.xlu0 %v5399_v30  ;;  %v5358_v35 = vpop.xlane.xlu0 %5357 }
0x13bc   : > { %v5371_v49 = vmul.f32 0.125, %v5358_v35  ;;  %v5386_v0 = vmul.f32 %v10682_v12, %v10682_v12 }
0x13be   : > { %v10687_v26 = vsub.f32 %v5328_v18, %v5371_v49  ;;  %v5402_v57 = vsel %vm719_vm0, %v5386_v0, 0.0 }
0x13bf   : > { %5403 = vadd.xlane.f32.xlu1 %v5402_v57 }
0x13c0   : > { %v5387_v32 = vmul.f32 %v10687_v26, %v10687_v26 }
0x13c2   : > { %v5405_v3 = vsel %vm719_vm0, %v5387_v32, 0.0 }
0x13c3   : > { %5406 = vadd.xlane.f32.xlu0 %v5405_v3 }
0x13db   : > { %v5361_v22 = vpop.xlane.xlu1 %5360 }
0x13dc   : > { %v5372_v37 = vmul.f32 0.125, %v5361_v22 }
0x13de   : > { %v10693_v5 = vsub.f32 %v5333_v20, %v5372_v37  ;;  %v5899_v37 = vld [vmem:[%s10975_s9] sm:$0xff] }
0x13df   : > { %v5364_v6 = vpop.xlane.xlu0 %5363  ;;  %v5588_v2 = vpop.permute.xlu1 %5587 }
0x13e0   : > { %v5373_v21 = vmul.f32 0.125, %v5364_v6  ;;  %v5388_v43 = vmul.f32 %v10693_v5, %v10693_v5  ;;  %v5835_v44 = vsel %vm719_vm0, %v5506_v36, %v5588_v2  ;;  %v5900_v36 = vld [vmem:[%s10975_s9 + $0x8] sm:$0xff] }
0x13e2   : > { %v10698_v7 = vsub.f32 %v5338_v62, %v5373_v21  ;;  %v5408_v11 = vsel %vm719_vm0, %v5388_v43, 0.0  ;;  %v5901_v21 = vld [vmem:[%s10975_s9 + $0x10] sm:$0xff]  ;;  %v5902_v43 = vld [vmem:[%s10975_s9 + $0x18] sm:$0xff] }
0x13e3   : > { %5409 = vadd.xlane.f32.xlu1 %v5408_v11  ;;  %v5620_v8 = vpop.permute.xlu1 %5619 }
0x13e4   : > { %v5389_v23 = vmul.f32 %v10698_v7, %v10698_v7  ;;  %v10704_v18 = vsel %vm728_vm1, %v5835_v44, %v5620_v8  ;;  %v7794_v44 = vpack.c.bf16 %v5902_v43, %v5901_v21  ;;  %v5903_v8 = vld [vmem:[%s10975_s9 + $0x20] sm:$0xff] }
0x13e6   : > { %v5411_v41 = vsel %vm719_vm0, %v5389_v23, 0.0  ;;  %v5904_v23 = vld [vmem:[%s10975_s9 + $0x28] sm:$0xff] }
0x13e7   : > { %5412 = vadd.xlane.f32.xlu0 %v5411_v41  ;;  %v10707_v15 = vpop.permute.xlu1 %5761  ;;  %v7798_v41 = vpack.c.bf16 %v5904_v23, %v5903_v8 }
0x13eb   : > { %v10709_v10 = vpop.permute.xlu1 %5793 }
0x143c   : > { %v5392_v50 = vpop.xlane.xlu1 %5391 }
0x143d   : > { %v5414_v24 = vmul.f32 0.125, %v5392_v50 }
0x143f   : > { %v5422_v33 = vadd.f32 1e-05, %v5414_v24  ;;  %v5905_v24 = vld [vmem:[%s10975_s9 + $0x30] sm:$0xff] }
0x1440   : > { %v5395_v48 = vpop.xlane.xlu0 %5394 }
0x1441   : > { %8324 = vrsqrt.f32 %v5422_v33  ;;  %v5415_v56 = vmul.f32 0.125, %v5395_v48  ;;  %v5906_v33 = vld [vmem:[%s10975_s9 + $0x38] sm:$0xff] }
0x1442   : > { %v7802_v48 = vpack.c.bf16 %v5906_v33, %v5905_v24 }
0x1443   : > { %v5423_v20 = vadd.f32 1e-05, %v5415_v56 }
0x1444   : > { %v5398_v29 = vpop.xlane.xlu1 %5397 }
0x1445   : > { %8326 = vrsqrt.f32 %v5423_v20  ;;  %v5416_v63 = vmul.f32 0.125, %v5398_v29 }
0x1447   : > { %v5424_v55 = vadd.f32 1e-05, %v5416_v63  ;;  %v5907_v63 = vld [vmem:[%s10975_s9 + $0x40] sm:$0xff] }
0x1448   : > { %v5401_v14 = vpop.xlane.xlu0 %5400 }
0x1449   : > { %8328 = vrsqrt.f32 %v5424_v55  ;;  %v5417_v52 = vmul.f32 0.125, %v5401_v14 }
0x144b   : > { %v8325_v62 = vpop.eup %8324  ;;  %v5425_v27 = vadd.f32 1e-05, %v5417_v52 }
0x144c   : > { %v5438_v13 = vmul.f32 %v8325_v62, %v10660_v38  ;;  %v5404_v60 = vpop.xlane.xlu1 %5403 }
0x144d   : > { %8330 = vrsqrt.f32 %v5425_v27  ;;  %v5418_v40 = vmul.f32 0.125, %v5404_v60 }
0x144e   : > { %v5453_v34 = vmul.f32 %v10714_v54, %v5438_v13 }
0x144f   : > { %v8327_v46 = vpop.eup %8326  ;;  %v5426_v59 = vadd.f32 1e-05, %v5418_v40 }
0x1450   : > { %v5468_v39 = vadd.f32 %v10720_v1, %v5453_v34  ;;  %v5439_v51 = vmul.f32 %v8327_v46, %v10665_v17  ;;  %v5407_v25 = vpop.xlane.xlu0 %5406 }
0x1451   : > { %8332 = vrsqrt.f32 %v5426_v59  ;;  %v5419_v58 = vmul.f32 0.125, %v5407_v25 }
0x1452   : > { %5498 = vst.msk [vmem:[#allocation2 + $0x11] sm:$0xff] %vm719_vm0, %v5468_v39  ;;  %v5454_v38 = vmul.f32 %v10714_v54, %v5439_v51 }
0x1453   : > { %v8329_v19 = vpop.eup %8328  ;;  %v5427_v28 = vadd.f32 1e-05, %v5419_v58 }
0x1454   : > { %v5469_v42 = vadd.f32 %v10720_v1, %v5454_v38  ;;  %v5440_v61 = vmul.f32 %v8329_v19, %v10671_v53 }
0x1455   : > { %8334 = vrsqrt.f32 %v5427_v28 }
0x1456   : > { %5499 = vst.msk [vmem:[#allocation2 + $0x21] sm:$0xff] %vm719_vm0, %v5469_v42  ;;  %v5455_v16 = vmul.f32 %v10714_v54, %v5440_v61 }
0x1457   : > { %v8331_v9 = vpop.eup %8330 }
0x1458   : > { %v5470_v17 = vadd.f32 %v10720_v1, %v5455_v16  ;;  %v5441_v31 = vmul.f32 %v8331_v9, %v10677_v47 }
0x1459   : > { %v5523_v45 = vld [vmem:[#allocation2 + $0x12] sm:$0xff] }
0x145a   : > { %v5515_v4 = vld [vmem:[#allocation2 + $0x11] sm:$0xff]  ;;  %5500 = vst.msk [vmem:[#allocation2 + $0x31] sm:$0xff] %vm719_vm0, %v5470_v17  ;;  %v5456_v30 = vmul.f32 %v10714_v54, %v5441_v31  ;;  %5621 = vrot.lane.b32.xlu1 %v5523_v45, %s8348_s24 }
0x145b   : > { %5589 = vrot.lane.b32.xlu0 %v5515_v4, %s8349_s25  ;;  %v8333_v53 = vpop.eup %8332  ;;  %v10739_v0 = vld [vmem:[#allocation2 + $0x10] sm:$0xff] }
0x145c   : > { %v5471_v35 = vadd.f32 %v10720_v1, %v5456_v30  ;;  %v5442_v49 = vmul.f32 %v8333_v53, %v10682_v12 }
0x145d   : > { %v10748_v22 = vld [vmem:[#allocation2 + $0x20] sm:$0xff] }
0x145e   : > { %5501 = vst.msk [vmem:[#allocation2 + $0x41] sm:$0xff] %vm719_vm0, %v5471_v35  ;;  %v5457_v47 = vmul.f32 %v10714_v54, %v5442_v49  ;;  %5715 = vrot.lane.b32.xlu1 %v5523_v45, %s8352_s22  ;;  %v5539_v2 = vld [vmem:[#allocation2 + $0x21] sm:$0xff]  ;;  %v5578_v45 = vld [vmem:[#allocation2 + $0x92] sm:$0xff] }
0x145f   : > { %5651 = vrot.lane.b32.xlu0 %v10739_v0, %s8350_s26  ;;  %v8335_v57 = vpop.eup %8334  ;;  %v5547_v11 = vld [vmem:[#allocation2 + $0x22] sm:$0xff] }
0x1460   : > { %v5472_v32 = vadd.f32 %v10720_v1, %v5457_v47  ;;  %v5443_v3 = vmul.f32 %v8335_v57, %v10687_v26  ;;  %v7790_v26 = vpack.c.bf16 %v5900_v36, %v5899_v37 }
0x1461   : > { %v5517_v50 = vld [vmem:[#allocation2 + $0x31] sm:$0xff] }
0x1462   : > { %5502 = vst.msk [vmem:[#allocation2 + $0x51] sm:$0xff] %vm719_vm0, %v5472_v32  ;;  %v5458_v12 = vmul.f32 %v10714_v54, %v5443_v3  ;;  %5653 = vrot.lane.b32.xlu1 %v10748_v22, %s8350_s26  ;;  %7791 = vmatprep.subr.bf16.mxu0 %v7790_v26  ;;  %v5525_v29 = vld [vmem:[#allocation2 + $0x32] sm:$0xff] }
0x1463   : > { %5683 = vrot.lane.b32.xlu0 %v5515_v4, %s11273_s28  ;;  %7793 = vmatpush3.bf16.msra.mxu0 %v7790_v26  ;;  %v10793_v62 = vld [vmem:[#allocation2 + $0x30] sm:$0xff] }
0x1464   : > { %v5473_v6 = vadd.f32 %v10720_v1, %v5458_v12  ;;  %7795 = vmatprep.subr.bf16.mxu0 %v7794_v44 }
0x1465   : > { %v10804_v40 = vld [vmem:[#allocation2 + $0x40] sm:$0xff] }
0x1466   : > { %5503 = vst.msk [vmem:[#allocation2 + $0x61] sm:$0xff] %vm719_vm0, %v5473_v6  ;;  %5591 = vrot.lane.b32.xlu1 %v5539_v2, %s8349_s25  ;;  %v5541_v51 = vld [vmem:[#allocation2 + $0x41] sm:$0xff] }
0x1467   : > { %5685 = vrot.lane.b32.xlu0 %v5539_v2, %s11273_s28  ;;  %7797 = vmatpush3.bf16.msra.mxu0 %v7794_v44  ;;  %v5526_v58 = vld [vmem:[#allocation2 + $0x42] sm:$0xff] }
0x1468   : > { %7799 = vmatprep.subr.bf16.mxu0 %v7798_v41 }
0x1469   : > { %v5519_v38 = vld [vmem:[#allocation2 + $0x51] sm:$0xff] }
0x146a   : > { %5623 = vrot.lane.b32.xlu1 %v5547_v11, %s8348_s24 }
0x146b   : > { %5717 = vrot.lane.b32.xlu0 %v5547_v11, %s8352_s22  ;;  %7801 = vmatpush3.bf16.msra.mxu0 %v7798_v41 }
0x146c   : > { %7803 = vmatprep.subr.bf16.mxu0 %v7802_v48 }
0x146d   : > { %v5543_v19 = vld [vmem:[#allocation2 + $0x61] sm:$0xff] }
0x146e   : > { %5747 = vrot.lane.b32.xlu1 %v10748_v22, %s8353_s12  ;;  %v5528_v28 = vld [vmem:[#allocation2 + $0x62] sm:$0xff] }
0x146f   : > { %5593 = vrot.lane.b32.xlu0 %v5517_v50, %s8349_s25  ;;  %7805 = vmatpush3.bf16.msra.mxu0 %v7802_v48 }
0x1470   : > { %v5410_v56 = vpop.xlane.xlu1 %5409  ;;  %7376 = vmatprep.subr.mxu0 %v5907_v63 }
0x1471   : > { %v5420_v20 = vmul.f32 0.125, %v5410_v56 }
0x1472   : > { %5779 = vrot.lane.b32.xlu1 %v5539_v2, %s8354_s13 }
0x1473   : > { %5625 = vrot.lane.b32.xlu0 %v5525_v29, %s8348_s24  ;;  %v5428_v55 = vadd.f32 1e-05, %v5420_v20  ;;  %7377 = vmatpush3.msra.mxu0 %v5907_v63 }
0x1474   : > { %v5413_v14 = vpop.xlane.xlu0 %5412 }
0x1475   : > { %8336 = vrsqrt.f32 %v5428_v55  ;;  %v5421_v52 = vmul.f32 0.125, %v5413_v14 }
0x1476   : > { %5811 = vrot.lane.b32.xlu1 %v5547_v11, %s8355_s17 }
0x1477   : > { %5749 = vrot.lane.b32.xlu0 %v10793_v62, %s8353_s12  ;;  %v5429_v27 = vadd.f32 1e-05, %v5421_v52 }
0x1479   : > { %8338 = vrsqrt.f32 %v5429_v27 }
0x147a   : > { %5655 = vrot.lane.b32.xlu1 %v10793_v62, %s8350_s26 }
0x147b   : > { %5781 = vrot.lane.b32.xlu0 %v5517_v50, %s8354_s13 }
0x147e   : > { %5687 = vrot.lane.b32.xlu1 %v5517_v50, %s11273_s28 }
0x147f   : > { %5719 = vrot.lane.b32.xlu0 %v5525_v29, %s8352_s22  ;;  %v8337_v13 = vpop.eup %8336 }
0x1480   : > { %v5444_v60 = vmul.f32 %v8337_v13, %v10693_v5 }
0x1482   : > { %v5459_v34 = vmul.f32 %v10714_v54, %v5444_v60  ;;  %5813 = vrot.lane.b32.xlu1 %v5525_v29, %s8355_s17 }
0x1483   : > { %5657 = vrot.lane.b32.xlu0 %v10804_v40, %s8350_s26  ;;  %v8339_v46 = vpop.eup %8338 }
0x1484   : > { %v5474_v59 = vadd.f32 %v10720_v1, %v5459_v34  ;;  %v5445_v39 = vmul.f32 %v8339_v46, %v10698_v7  ;;  %v5527_v7 = vld [vmem:[#allocation2 + $0x52] sm:$0xff] }
0x1486   : > { %5504 = vst.msk [vmem:[#allocation2 + $0x71] sm:$0xff] %vm719_vm0, %v5474_v59  ;;  %v5460_v25 = vmul.f32 %v10714_v54, %v5445_v39  ;;  %5689 = vrot.lane.b32.xlu1 %v5541_v51, %s11273_s28  ;;  %v10825_v54 = vld [vmem:[#allocation2 + $0x50] sm:$0xff] }
0x1487   : > { %5595 = vrot.lane.b32.xlu0 %v5541_v51, %s8349_s25 }
0x1488   : > { %v5475_v5 = vadd.f32 %v10720_v1, %v5460_v25  ;;  %v10835_v1 = vld [vmem:[#allocation2 + $0x60] sm:$0xff] }
0x148a   : > { %5505 = vst.msk [vmem:[#allocation2 + $0x81] sm:$0xff] %vm719_vm0, %v5475_v5  ;;  %5627 = vrot.lane.b32.xlu1 %v5526_v58, %s8348_s24 }
0x148b   : > { %5721 = vrot.lane.b32.xlu0 %v5526_v58, %s8352_s22 }
0x148d   : > { %v5521_v42 = vld [vmem:[#allocation2 + $0x71] sm:$0xff] }
0x148e   : > { %5751 = vrot.lane.b32.xlu1 %v10804_v40, %s8353_s12  ;;  %v5529_v61 = vld [vmem:[#allocation2 + $0x72] sm:$0xff] }
0x148f   : > { %5597 = vrot.lane.b32.xlu0 %v5519_v38, %s8349_s25  ;;  %v10849_v16 = vld [vmem:[#allocation2 + $0x70] sm:$0xff] }
0x1491   : > { %v5537_v9 = vld [vmem:[#allocation2 + $0x80] sm:$0xff] }
0x1492   : > { %5783 = vrot.lane.b32.xlu1 %v5541_v51, %s8354_s13  ;;  %v5553_v17 = vld [vmem:[#allocation2 + $0x82] sm:$0xff] }
0x1493   : > { %5629 = vrot.lane.b32.xlu0 %v5527_v7, %s8348_s24  ;;  %v5545_v31 = vld [vmem:[#allocation2 + $0x81] sm:$0xff] }
0x1496   : > { %5815 = vrot.lane.b32.xlu1 %v5526_v58, %s8355_s17 }
0x1497   : > { %5753 = vrot.lane.b32.xlu0 %v10825_v54, %s8353_s12 }
0x149a   : > { %5659 = vrot.lane.b32.xlu1 %v10825_v54, %s8350_s26 }
0x149b   : > { %5785 = vrot.lane.b32.xlu0 %v5519_v38, %s8354_s13 }
0x149e   : > { %5691 = vrot.lane.b32.xlu1 %v5519_v38, %s11273_s28 }
0x149f   : > { %5723 = vrot.lane.b32.xlu0 %v5527_v7, %s8352_s22 }
0x14a2   : > { %5817 = vrot.lane.b32.xlu1 %v5527_v7, %s8355_s17 }
0x14a3   : > { %5661 = vrot.lane.b32.xlu0 %v10835_v1, %s8350_s26 }
0x14a6   : > { %5693 = vrot.lane.b32.xlu1 %v5543_v19, %s11273_s28 }
0x14a7   : > { %5599 = vrot.lane.b32.xlu0 %v5543_v19, %s8349_s25 }
0x14aa   : > { %5631 = vrot.lane.b32.xlu1 %v5528_v28, %s8348_s24 }
0x14ab   : > { %5725 = vrot.lane.b32.xlu0 %v5528_v28, %s8352_s22 }
0x14ae   : > { %5755 = vrot.lane.b32.xlu1 %v10835_v1, %s8353_s12 }
0x14af   : > { %5601 = vrot.lane.b32.xlu0 %v5521_v42, %s8349_s25 }
0x14b2   : > { %5787 = vrot.lane.b32.xlu1 %v5543_v19, %s8354_s13 }
0x14b3   : > { %5633 = vrot.lane.b32.xlu0 %v5529_v61, %s8348_s24 }
0x14b6   : > { %5819 = vrot.lane.b32.xlu1 %v5528_v28, %s8355_s17 }
0x14b7   : > { %5757 = vrot.lane.b32.xlu0 %v10849_v16, %s8353_s12 }
0x14ba   : > { %5663 = vrot.lane.b32.xlu1 %v10849_v16, %s8350_s26 }
0x14bb   : > { %5789 = vrot.lane.b32.xlu0 %v5521_v42, %s8354_s13 }
0x14be   : > { %5695 = vrot.lane.b32.xlu1 %v5521_v42, %s11273_s28 }
0x14bf   : > { %5821 = vrot.lane.b32.xlu0 %v5529_v61, %s8355_s17 }
0x14c2   : > { %5727 = vrot.lane.b32.xlu1 %v5529_v61, %s8352_s22 }
0x14c3   : > { %5665 = vrot.lane.b32.xlu0 %v5537_v9, %s8350_s26  ;;  %s6168_s26 = sshll.u32 %s11276_s20, 3 }
0x14c6   : > { %5729 = vrot.lane.b32.xlu1 %v5553_v17, %s8352_s22 }
0x14c7   : > { %5697 = vrot.lane.b32.xlu0 %v5545_v31, %s11273_s28 }
0x14ca   : > { %5825 = vrot.lane.b32.xlu1 %v5578_v45, %s8355_s17 }
0x14cb   : > { %5759 = vrot.lane.b32.xlu0 %v5537_v9, %s8353_s12 }
0x14cc   : > { %v5622_v4 = vpop.permute.xlu1 %5621 }
0x14cd   : > { %v5590_v30 = vpop.permute.xlu0 %5589 }
0x14ce   : > { %v5836_v50 = vsel %vm719_vm0, %v10739_v0, %v5590_v30 }
0x14cf   : > { %5791 = vrot.lane.b32.xlu0 %v5545_v31, %s8354_s13  ;;  %v5844_v33 = vsel %vm728_vm1, %v5836_v50, %v5622_v4  ;;  %s386_s13 = scalar_lea.vmem %s10977_s11, %s6168_s26 }
0x14d0   : > { %v5716_v53 = vpop.permute.xlu1 %5715 }
0x14d1   : > { %v5652_v35 = vpop.permute.xlu0 %5651 }
0x14d2   : > { %v5851_v26 = vsel %vm737_vm2, %v10704_v18, %v5652_v35 }
0x14d3   : > { %5823 = vrot.lane.b32.xlu0 %v5553_v17, %s8355_s17 }
0x14d4   : > { %v5654_v49 = vpop.permute.xlu1 %5653 }
0x14d5   : > { %v5684_v47 = vpop.permute.xlu0 %5683  ;;  %v5852_v48 = vsel %vm737_vm2, %v5844_v33, %v5654_v49 }
0x14d6   : > { %v5859_v6 = vsel %vm746_vm3, %v5851_v26, %v5684_v47 }
0x14d7   : > { %v5867_v43 = vsel %vm755_vm4, %v5859_v6, %v5716_v53 }
0x14d8   : > { %v5592_v57 = vpop.permute.xlu1 %5591 }
0x14d9   : > { %v5686_v32 = vpop.permute.xlu0 %5685  ;;  %v5837_v59 = vsel %vm719_vm0, %v10748_v22, %v5592_v57 }
0x14da   : > { %v5860_v29 = vsel %vm746_vm3, %v5852_v48, %v5686_v32 }
0x14dc   : > { %v5624_v3 = vpop.permute.xlu1 %5623 }
0x14dd   : > { %v5718_v12 = vpop.permute.xlu0 %5717  ;;  %v5845_v25 = vsel %vm728_vm1, %v5837_v59, %v5624_v3 }
0x14de   : > { %v5868_v63 = vsel %vm755_vm4, %v5860_v29, %v5718_v12 }
0x14e0   : > { %v5748_v37 = vpop.permute.xlu1 %5747 }
0x14e1   : > { %v5594_v36 = vpop.permute.xlu0 %5593  ;;  %v5875_v44 = vsel %vm764_vm5, %v5867_v43, %v5748_v37 }
0x14e2   : > { %v5838_v45 = vsel %vm719_vm0, %v10793_v62, %v5594_v36 }
0x14e4   : > { %v5780_v2 = vpop.permute.xlu1 %5779 }
0x14e5   : > { %v5626_v21 = vpop.permute.xlu0 %5625  ;;  %v5883_v11 = vsel %vm773_vm6, %v5875_v44, %v5780_v2 }
0x14e6   : > { %v5846_v4 = vsel %vm728_vm1, %v5838_v45, %v5626_v21 }
0x14e8   : > { %v5812_v8 = vpop.permute.xlu1 %5811 }
0x14e9   : > { %v5750_v23 = vpop.permute.xlu0 %5749  ;;  %v5891_v41 = vsel %vm782_vm7, %v5883_v11, %v5812_v8 }
0x14ea   : > { %7378 = vmatprep.mubr.msk.f32.mxu0 %vm807_vm8, %v5891_v41  ;;  %v5876_v55 = vsel %vm764_vm5, %v5868_v63, %v5750_v23 }
0x14ec   : > { %v5656_v18 = vpop.permute.xlu1 %5655 }
0x14ed   : > { %v5782_v24 = vpop.permute.xlu0 %5781  ;;  %v5853_v5 = vsel %vm737_vm2, %v5845_v25, %v5656_v18 }
0x14ee   : > { %v5884_v14 = vsel %vm773_vm6, %v5876_v55, %v5782_v24 }
0x14f0   : > { %v5688_v56 = vpop.permute.xlu1 %5687 }
0x14f1   : > { %v5720_v20 = vpop.permute.xlu0 %5719  ;;  %v5861_v58 = vsel %vm746_vm3, %v5853_v5, %v5688_v56 }
0x14f2   : > { %v5869_v19 = vsel %vm755_vm4, %v5861_v58, %v5720_v20 }
0x14f4   : > { %v5814_v52 = vpop.permute.xlu1 %5813 }
0x14f5   : > { %v5658_v27 = vpop.permute.xlu0 %5657  ;;  %v5892_v0 = vsel %vm782_vm7, %v5884_v14, %v5814_v52 }
0x14f6   : > { %7379 = vmatmul.mubr.msk.f32.vlgmr.msra.gmra.mrb[124].mxu0 %vm807_vm8, %v5892_v0  ;;  %v5854_v30 = vsel %vm737_vm2, %v5846_v4, %v5658_v27 }
0x14f8   : > { %v5690_v13 = vpop.permute.xlu1 %5689 }
0x14f9   : > { %v5596_v60 = vpop.permute.xlu0 %5595  ;;  %v5862_v49 = vsel %vm746_vm3, %v5854_v30, %v5690_v13 }
0x14fa   : > { %v5839_v2 = vsel %vm719_vm0, %v10804_v40, %v5596_v60 }
0x14fc   : > { %v5628_v34 = vpop.permute.xlu1 %5627 }
0x14fd   : > { %v5722_v46 = vpop.permute.xlu0 %5721  ;;  %v5847_v44 = vsel %vm728_vm1, %v5839_v2, %v5628_v34 }
0x14fe   : > { %v5870_v47 = vsel %vm755_vm4, %v5862_v49, %v5722_v46 }
0x1500   : > { %v5752_v39 = vpop.permute.xlu1 %5751 }
0x1501   : > { %v5598_v51 = vpop.permute.xlu0 %5597  ;;  %v5877_v28 = vsel %vm764_vm5, %v5869_v19, %v5752_v39 }
0x1502   : > { %v5840_v56 = vsel %vm719_vm0, %v10825_v54, %v5598_v51 }
0x1504   : > { %v5784_v38 = vpop.permute.xlu1 %5783 }
0x1505   : > { %v5630_v7 = vpop.permute.xlu0 %5629  ;;  %v5885_v42 = vsel %vm773_vm6, %v5877_v28, %v5784_v38 }
0x1506   : > { %v5848_v20 = vsel %vm728_vm1, %v5840_v56, %v5630_v7 }
0x1508   : > { %v5816_v61 = vpop.permute.xlu1 %5815 }
0x1509   : > { %v5754_v9 = vpop.permute.xlu0 %5753  ;;  %v5893_v22 = vsel %vm782_vm7, %v5885_v42, %v5816_v61 }
0x150a   : > { %7381 = vmatprep.mubr.msk.f32.mxu0 %vm807_vm8, %v5893_v22  ;;  %v5878_v57 = vsel %vm764_vm5, %v5870_v47, %v5754_v9 }
0x150c   : > { %v5660_v17 = vpop.permute.xlu1 %5659 }
0x150d   : > { %v5786_v31 = vpop.permute.xlu0 %5785  ;;  %v5855_v11 = vsel %vm737_vm2, %v5847_v44, %v5660_v17 }
0x150e   : > { %v5886_v32 = vsel %vm773_vm6, %v5878_v57, %v5786_v31 }
0x1510   : > { %v5692_v53 = vpop.permute.xlu1 %5691 }
0x1511   : > { %v5724_v35 = vpop.permute.xlu0 %5723  ;;  %v5863_v8 = vsel %vm746_vm3, %v5855_v11, %v5692_v53 }
0x1512   : > { %v5871_v50 = vsel %vm755_vm4, %v5863_v8, %v5724_v35 }
0x1514   : > { %v5818_v3 = vpop.permute.xlu1 %5817 }
0x1515   : > { %v5662_v12 = vpop.permute.xlu0 %5661  ;;  %v5894_v37 = vsel %vm782_vm7, %v5886_v32, %v5818_v3 }
0x1516   : > { %7382 = vmatmul.mubr.msk.f32.gmra.mrb[126].mxu0 %vm807_vm8, %v5894_v37  ;;  %v5856_v29 = vsel %vm737_vm2, %v5848_v20, %v5662_v12  ;;  %v11274_v12 = vld [vmem:[#allocation4_spill] sm:$0xff] }
0x1518   : > { %v5694_v62 = vpop.permute.xlu1 %5693 }
0x1519   : > { %v5600_v36 = vpop.permute.xlu0 %5599  ;;  %v5864_v14 = vsel %vm746_vm3, %v5856_v29, %v5694_v62 }
0x151a   : > { %v5841_v19 = vsel %vm719_vm0, %v10835_v1, %v5600_v36 }
0x151c   : > { %v5632_v26 = vpop.permute.xlu1 %5631 }
0x151d   : > { %v5726_v6 = vpop.permute.xlu0 %5725  ;;  %v5849_v28 = vsel %vm728_vm1, %v5841_v19, %v5632_v26 }
0x151e   : > { %v5872_v52 = vsel %vm755_vm4, %v5864_v14, %v5726_v6 }
0x1520   : > { %v5756_v21 = vpop.permute.xlu1 %5755 }
0x1521   : > { %v5602_v43 = vpop.permute.xlu0 %5601  ;;  %v5879_v18 = vsel %vm764_vm5, %v5871_v50, %v5756_v21 }
0x1522   : > { %v5842_v59 = vsel %vm719_vm0, %v10849_v16, %v5602_v43 }
0x1524   : > { %v5788_v23 = vpop.permute.xlu1 %5787 }
0x1525   : > { %v5634_v41 = vpop.permute.xlu0 %5633  ;;  %v5887_v24 = vsel %vm773_vm6, %v5879_v18, %v5788_v23 }
0x1526   : > { %v5850_v39 = vsel %vm728_vm1, %v5842_v59, %v5634_v41 }
0x1528   : > { %v5820_v33 = vpop.permute.xlu1 %5819 }
0x1529   : > { %v5758_v48 = vpop.permute.xlu0 %5757  ;;  %v5895_v40 = vsel %vm782_vm7, %v5887_v24, %v5820_v33 }
0x152a   : > { %7384 = vmatprep.mubr.msk.f32.mxu0 %vm807_vm8, %v5895_v40  ;;  %v5880_v27 = vsel %vm764_vm5, %v5872_v52, %v5758_v48 }
0x152c   : > { %v5664_v63 = vpop.permute.xlu1 %5663 }
0x152d   : > { %v5790_v55 = vpop.permute.xlu0 %5789  ;;  %v5857_v42 = vsel %vm737_vm2, %v5849_v28, %v5664_v63 }
0x152e   : > { %v5888_v0 = vsel %vm773_vm6, %v5880_v27, %v5790_v55 }
0x1530   : > { %v5696_v13 = vpop.permute.xlu1 %5695 }
0x1531   : > { %v5822_v60 = vpop.permute.xlu0 %5821  ;;  %v5865_v9 = vsel %vm746_vm3, %v5857_v42, %v5696_v13 }
0x1532   : > { %v5896_v54 = vsel %vm782_vm7, %v5888_v0, %v5822_v60 }
0x1533   : > { %7385 = vmatmul.mubr.msk.f32.gmra.mrb[128].mxu0 %vm807_vm8, %v5896_v54 }
0x1534   : > { %v5728_v34 = vpop.permute.xlu1 %5727 }
0x1535   : > { %v5666_v46 = vpop.permute.xlu0 %5665  ;;  %v5873_v22 = vsel %vm755_vm4, %v5865_v9, %v5728_v34 }
0x1536   : > { %v5858_v25 = vsel %vm737_vm2, %v5850_v39, %v5666_v46 }
0x1538   : > { %v5730_v5 = vpop.permute.xlu1 %5729 }
0x1539   : > { %v5698_v51 = vpop.permute.xlu0 %5697 }
0x153a   : > { %v5866_v58 = vsel %vm746_vm3, %v5858_v25, %v5698_v51 }
0x153b   : > { %v5874_v7 = vsel %vm755_vm4, %v5866_v58, %v5730_v5 }
0x153c   : > { %v5882_v16 = vsel %vm764_vm5, %v5874_v7, %v10707_v15  ;;  %v5826_v17 = vpop.permute.xlu1 %5825  ;;  %v6469_v15 = vld [vmem:[%s10976_s10] ss:$0 sm:$0xff] }
0x153d   : > { %v5760_v38 = vpop.permute.xlu0 %5759  ;;  %v5890_v31 = vsel %vm773_vm6, %v5882_v16, %v10709_v10 }
0x153e   : > { %v5881_v45 = vsel %vm764_vm5, %v5873_v22, %v5760_v38  ;;  %v5898_v53 = vsel %vm782_vm7, %v5890_v31, %v5826_v17 }
0x1541   : > { %v5792_v61 = vpop.permute.xlu0 %5791 }
0x1542   : > { %v5889_v1 = vsel %vm773_vm6, %v5881_v45, %v5792_v61 }
0x1545   : > { %v5824_v4 = vpop.permute.xlu0 %5823 }
0x1546   : > { %v5897_v30 = vsel %vm782_vm7, %v5889_v1, %v5824_v4 }
0x1547   : > { %7387 = vmatprep.mubr.msk.f32.mxu0 %vm807_vm8, %v5897_v30 }
0x1548   : > { %7388 = vmatmul.mubr.msk.f32.gmra.mrb[130].mxu0 %vm807_vm8, %v5898_v53 }
0x15c9   : > { %v7380_v35 = vpop.f32.mrb[124].mxu0 }
0x15ca   : > { %v6011_v49 = vadd.f32 %v7380_v35, %v6469_v15  ;;  %v6005_v10 = vpop.f32.mrb[125].mxu0 }
0x15cb   : > { %v6006_v47 = vadd.f32 %v6469_v15, %v6005_v10 }
0x15cc   : > { %v6053_v57 = vmin.f32 %v6011_v49, 0.0  ;;  %v6045_v26 = vmax.f32 %v6011_v49, 0.0 }
0x15cd   : > { %v6052_v32 = vmin.f32 %v6006_v47, 0.0  ;;  %v6044_v3 = vmax.f32 %v6006_v47, 0.0 }
0x15ce   : > { %v6061_v62 = vmul.f32 %v6053_v57, %v11274_v12 }
0x15cf   : > { %v6060_v37 = vmul.f32 %v6052_v32, %v11274_v12 }
0x15d0   : > { %v6069_v6 = vadd.f32 %v6061_v62, %v6045_v26 }
0x15d1   : > { %v6068_v36 = vadd.f32 %v6060_v37, %v6044_v3 }
0x15d3   : > { %6076 = vxpose.xlu0.b32.start [1/8] (short) (narrow) %v6068_v36, 8 }
0x15d7   : > { %6077 = vxpose.xlu0.b32.cont [2/8] (short) (narrow) %v6069_v6, 8 }
0x15e9   : > { %v7383_v2 = vpop.f32.mrb[126].mxu0 }
0x15ea   : > { %v6021_v21 = vadd.f32 %v7383_v2, %v6469_v15  ;;  %v6015_v43 = vpop.f32.mrb[127].mxu0 }
0x15eb   : > { %v6016_v44 = vadd.f32 %v6469_v15, %v6015_v43 }
0x15ec   : > { %v6055_v11 = vmin.f32 %v6021_v21, 0.0  ;;  %v6047_v24 = vmax.f32 %v6021_v21, 0.0 }
0x15ed   : > { %v6054_v8 = vmin.f32 %v6016_v44, 0.0  ;;  %v6046_v23 = vmax.f32 %v6016_v44, 0.0 }
0x15ee   : > { %v6063_v50 = vmul.f32 %v6055_v11, %v11274_v12 }
0x15ef   : > { %v6062_v41 = vmul.f32 %v6054_v8, %v11274_v12 }
0x15f0   : > { %v6071_v33 = vadd.f32 %v6063_v50, %v6047_v24 }
0x15f1   : > { %v6070_v18 = vadd.f32 %v6062_v41, %v6046_v23 }
0x15f3   : > { %6078 = vxpose.xlu0.b32.cont [3/8] (short) (narrow) %v6070_v18, 8 }
0x15f7   : > { %6079 = vxpose.xlu0.b32.cont [4/8] (short) (narrow) %v6071_v33, 8 }
0x1606   : > { %v7386_v48 = vpop.f32.mrb[128].mxu0 }
0x1607   : > { %v6031_v40 = vadd.f32 %v7386_v48, %v6469_v15  ;;  %v6025_v56 = vpop.f32.mrb[129].mxu0 }
0x1608   : > { %v6026_v20 = vadd.f32 %v6469_v15, %v6025_v56 }
0x1609   : > { %v6057_v29 = vmin.f32 %v6031_v40, 0.0  ;;  %v6049_v0 = vmax.f32 %v6031_v40, 0.0 }
0x160a   : > { %v6056_v63 = vmin.f32 %v6026_v20, 0.0  ;;  %v6048_v55 = vmax.f32 %v6026_v20, 0.0 }
0x160b   : > { %v6065_v52 = vmul.f32 %v6057_v29, %v11274_v12 }
0x160c   : > { %v6064_v14 = vmul.f32 %v6056_v63, %v11274_v12 }
0x160d   : > { %v6073_v13 = vadd.f32 %v6065_v52, %v6049_v0 }
0x160e   : > { %v6072_v27 = vadd.f32 %v6064_v14, %v6048_v55 }
0x1610   : > { %6080 = vxpose.xlu0.b32.cont [5/8] (short) (narrow) %v6072_v27, 8 }
0x1614   : > { %6081 = vxpose.xlu0.b32.cont [6/8] (short) (narrow) %v6073_v13, 8 }
0x161b   : > { %v7389_v60 = vpop.f32.mrb[130].mxu0 }
0x161c   : > { %v6041_v54 = vadd.f32 %v7389_v60, %v6469_v15  ;;  %v6035_v34 = vpop.f32.mrb[131].mxu0 }
0x161d   : > { %v6036_v46 = vadd.f32 %v6469_v15, %v6035_v34 }
0x161e   : > { %v6059_v59 = vmin.f32 %v6041_v54, 0.0  ;;  %v6051_v38 = vmax.f32 %v6041_v54, 0.0 }
0x161f   : > { %v6058_v39 = vmin.f32 %v6036_v46, 0.0  ;;  %v6050_v51 = vmax.f32 %v6036_v46, 0.0 }
0x1620   : > { %v6067_v5 = vmul.f32 %v6059_v59, %v11274_v12 }
0x1621   : > { %v6066_v25 = vmul.f32 %v6058_v39, %v11274_v12 }
0x1622   : > { %v6075_v7 = vadd.f32 %v6067_v5, %v6051_v38 }
0x1623   : > { %v6074_v58 = vadd.f32 %v6066_v25, %v6050_v51 }
0x1625   : > { %6082 = vxpose.xlu0.b32.cont [7/8] (short) (narrow) %v6074_v58, 8 }
0x1629   : > { %6083 = vxpose.xlu0.b32.end [8/8] (short) (narrow) %v6075_v7, 8 }
0x168d   : > { %v6092_v19 = vpop.trf.xlu0 }
0x168e   : > { %6108 = vst.msk [vmem:[%s386_s13] sm:$0xff] %vm782_vm7, %v6092_v19 }
0x168f PF: > { %s23_s19 = sadd.s32 1, %s8346_s19  }
0x1690   : > { %p20_p4 = scmp.ge.s32.totalorder %s23_s19, 4  }
0x1692   :  { %22 = sbr.rel (!%p20_p4) target bundleno = 3 (0x3), region = 98 }

</bundles_post_ra>
